<compile_context>
chip_gen: v5e
topology: v5e:2x2
jax: 0.10.0
libtpu: 0.0.40
codegen_flags: <defaults>
</compile_context>

<pallas_src>
import functools
from math import sqrt

import jax
import jax.numpy as jnp
from jax.experimental import pallas as pl
from jax.experimental.pallas import tpu as pltpu

LANE = 128
SUBLANE = 8


def _round_up(v, m):
    return ((v + m - 1) // m) * m


def siren_kernel(x_ref, w_ref, b_ref, o_ref, *, w0):
    # x_ref: (tm, dim_in)  w_ref: (dim_in, tn)  b_ref: (1, tn)  o_ref: (tm, tn)
    x = x_ref[...]
    w = w_ref[...]
    b = b_ref[...].astype(jnp.float32)
    # MXU matmul with f32 accumulation; epilogue (bias, w0 scale, sin) in f32.
    y = jnp.dot(x, w, preferred_element_type=jnp.float32) + b
    o_ref[...] = jnp.sin(w0 * y).astype(o_ref.dtype)


def prepare_siren_params(weight, bias=None):
    """One-time preprocessing (do at model setup, NOT per forward call).

    weight: (dim_out, dim_in) PyTorch nn.Linear layout.
    Returns (wt, bias2d): wt (dim_in, dim_out) is the lane-dense MXU RHS.
    """
    dim_out = weight.shape[0]
    wt = weight.T
    if bias is None:
        bias = jnp.zeros((dim_out,), dtype=weight.dtype)
    return wt, bias.reshape(1, dim_out)


def _pick_tiles(N, dim_in, dim_out, itemsize):
    # tn: whole dim_out when small (block == full dim is always legal, avoids
    # any padding/slicing); otherwise a lane-dense 512/256 tile (>=256 keeps
    # v6e/v7x's 256x256 MXU full; tn=128 only implicitly for tiny dims).
    if dim_out <= 512:
        tn = dim_out
    elif dim_out % 512 == 0:
        tn = 512
    elif dim_out % 256 == 0:
        tn = 256
    else:
        tn = 512  # cdiv grid; last block partial (masked by Pallas)

    # tm: as large as possible within a double-buffered VMEM budget that fits
    # every generation (v7x physical VMEM is 64 MiB; v5e default scoped is only
    # 16 MiB, so we also raise vmem_limit_bytes explicitly below).
    budget = 24 * 1024 * 1024
    fixed = 2 * (dim_in * tn + tn) * itemsize            # W^T + bias buffers
    tm = 2048
    while tm > SUBLANE and fixed + 2 * tm * (dim_in + tn) * itemsize > budget:
        tm //= 2
    tm = max(SUBLANE, min(tm, _round_up(N, SUBLANE)))
    need = fixed + 2 * tm * (dim_in + tn) * itemsize
    return tm, tn, need


def siren_layer_fwd(x, wt, bias2d, w0=30.0, *, tm=None, tn=None):
    """out = sin(w0 * (x @ wt + bias)).

    x: (N, dim_in); wt: (dim_in, dim_out); bias2d: (1, dim_out).
    """
    N, dim_in = x.shape
    dim_out = wt.shape[1]
    out_dtype = x.dtype
    itemsize = max(jnp.dtype(x.dtype).itemsize, jnp.dtype(out_dtype).itemsize)

    atm, atn, need = _pick_tiles(N, dim_in, dim_out, itemsize)
    tm = atm if tm is None else max(SUBLANE, _round_up(tm, SUBLANE))
    tn = atn if tn is None else tn

    # Grid order: dim_out OUTER, batch INNER. W^T / bias block indices are
    # constant across the inner axis -> loaded once per column block; x streams;
    # both axes "parallel" so a 2-TC chip (v7x) can shard the batch axis.
    grid = (pl.cdiv(dim_out, tn), pl.cdiv(N, tm))

    cost = pl.CostEstimate(
        flops=2 * N * dim_in * dim_out,
        transcendentals=N * dim_out,
        bytes_accessed=(N * dim_in + dim_in * dim_out + dim_out) * itemsize
        + N * dim_out * jnp.dtype(out_dtype).itemsize,
    )

    vmem_limit = int(min(48 << 20, max(16 << 20, need + (4 << 20))))

    kernel = functools.partial(siren_kernel, w0=float(w0))
    return pl.pallas_call(
        kernel,
        out_shape=jax.ShapeDtypeStruct((N, dim_out), out_dtype),
        grid_spec=pltpu.PrefetchScalarGridSpec(
            num_scalar_prefetch=0,
            grid=grid,
            in_specs=[
                pl.BlockSpec((tm, dim_in), lambda j, i: (i, 0)),   # x tile (streams)
                pl.BlockSpec((dim_in, tn), lambda j, i: (0, j)),   # W^T (resident over i)
                pl.BlockSpec((1, tn), lambda j, i: (0, j)),        # bias (resident over i)
            ],
            out_specs=pl.BlockSpec((tm, tn), lambda j, i: (i, j)),
        ),
        compiler_params=pltpu.CompilerParams(
            dimension_semantics=("parallel", "parallel"),
            vmem_limit_bytes=vmem_limit,
        ),
        cost_estimate=cost,
    )(x, wt, bias2d)


def siren_layer(x, weight, bias=None, w0=30.0, **kw):
    """Compat wrapper taking PyTorch-layout weight (dim_out, dim_in).

    Transposes per call; prefer prepare_siren_params + siren_layer_fwd so the
    transpose happens once at setup.
    """
    wt, bias2d = prepare_siren_params(weight, bias)
    return siren_layer_fwd(x, wt, bias2d, w0, **kw)


if __name__ == "__main__":
    # Module config (is_first=False, use_bias=True, default Sine activation).
    dim_in, dim_out = 16, 32
    w0, c = 30.0, 6.0
    is_first = False
    N = 128  # small demo batch of input points

    key = jax.random.PRNGKey(0)
    kx, kw, kb = jax.random.split(key, 3)

    # SIREN init: uniform(-w_std, w_std)
    w_std = (1.0 / dim_in) if is_first else sqrt(c / dim_in) / w0
    weight = jax.random.uniform(
        kw, (dim_out, dim_in), jnp.float32, minval=-w_std, maxval=w_std
    )
    bias = jax.random.uniform(
        kb, (dim_out,), jnp.float32, minval=-w_std, maxval=w_std
    )
    x = jax.random.uniform(kx, (N, dim_in), jnp.float32, minval=-1.0, maxval=1.0)

    # One-time parameter prep (hoisted out of the per-call path).
    wt, bias2d = prepare_siren_params(weight, bias)

    out = siren_layer_fwd(x, wt, bias2d, w0=w0)
    out = jax.block_until_ready(out)

    # Reference check in plain JAX.
    ref = jnp.sin(w0 * (x @ weight.T + bias))
    assert out.shape == (N, dim_out)
    assert jnp.max(jnp.abs(out - ref)) < 1e-5

    print("KERNEL_OK")
</pallas_src>

<mosaic_0001>
module attributes {stable_mosaic.version = 11 : i64} {
  func.func @siren_kernel(%arg0: i32, %arg1: i32, %arg2: memref<128x16xf32, #tpu.memory_space<vmem>>, %arg3: memref<16x32xf32, #tpu.memory_space<vmem>>, %arg4: memref<1x32xf32, #tpu.memory_space<vmem>>, %arg5: memref<128x32xf32, #tpu.memory_space<vmem>>) attributes {dimension_semantics = [#tpu.dimension_semantics<parallel>, #tpu.dimension_semantics<parallel>], iteration_bounds = array<i64: 1, 1>, scalar_prefetch = 0 : i64, scratch_operands = 0 : i64, tpu.core_type = #tpu.core_type<tc>, window_params = [{transform_indices = @transform_0, window_bounds = array<i64: 128, 16>}, {transform_indices = @transform_1, window_bounds = array<i64: 16, 32>}, {transform_indices = @transform_2, window_bounds = array<i64: 1, 32>}, {transform_indices = @transform_3, window_bounds = array<i64: 128, 32>}]} {
    %c0 = arith.constant 0 : index
    %c0_0 = arith.constant 0 : index
    %0 = vector.load %arg2[%c0, %c0_0] : memref<128x16xf32, #tpu.memory_space<vmem>>, vector<128x16xf32>
    %c0_1 = arith.constant 0 : index
    %c0_2 = arith.constant 0 : index
    %1 = vector.load %arg3[%c0_1, %c0_2] : memref<16x32xf32, #tpu.memory_space<vmem>>, vector<16x32xf32>
    %c0_3 = arith.constant 0 : index
    %c0_4 = arith.constant 0 : index
    %2 = vector.load %arg4[%c0_3, %c0_4] : memref<1x32xf32, #tpu.memory_space<vmem>>, vector<1x32xf32>
    %cst = arith.constant dense<0.000000e+00> : vector<128x32xf32>
    %3 = tpu.matmul %0, %1, %cst {dimension_numbers = #tpu.dot_dimension_numbers<[1], [0], [0], [1], [0, 0, 1, 1], [], []>} : vector<128x16xf32>, vector<16x32xf32>, vector<128x32xf32> -> vector<128x32xf32>
    %4 = vector.broadcast %2 : vector<1x32xf32> to vector<128x32xf32>
    %5 = arith.addf %3, %4 : vector<128x32xf32>
    %cst_5 = arith.constant 3.000000e+01 : f32
    %6 = vector.broadcast %cst_5 : f32 to vector<128x32xf32>
    %7 = arith.mulf %6, %5 : vector<128x32xf32>
    %8 = math.sin %7 : vector<128x32xf32>
    %c0_6 = arith.constant 0 : index
    %c0_7 = arith.constant 0 : index
    %9 = vector.load %arg5[%c0_6, %c0_7] : memref<128x32xf32, #tpu.memory_space<vmem>>, vector<128x32xf32>
    tpu.vector_store %arg5[%c0_6, %c0_7], %8 {strides = array<i32>} : memref<128x32xf32, #tpu.memory_space<vmem>>, vector<128x32xf32>,
    return
  }
  func.func @transform_0(%arg0: i32, %arg1: i32) -> (i32, i32) {
    %c0_i32 = arith.constant 0 : i32
    %c0_i32_0 = arith.constant 0 : i32
    return %arg1, %c0_i32 : i32, i32
  }
  func.func @transform_1(%arg0: i32, %arg1: i32) -> (i32, i32) {
    %c0_i32 = arith.constant 0 : i32
    %c0_i32_0 = arith.constant 0 : i32
    return %c0_i32, %arg0 : i32, i32
  }
  func.func @transform_2(%arg0: i32, %arg1: i32) -> (i32, i32) {
    %c0_i32 = arith.constant 0 : i32
    %c0_i32_0 = arith.constant 0 : i32
    return %c0_i32, %arg0 : i32, i32
  }
  func.func @transform_3(%arg0: i32, %arg1: i32) -> (i32, i32) {
    %c0_i32 = arith.constant 0 : i32
    return %arg1, %arg0 : i32, i32
  }
}

</mosaic_0001>

<bundles_post_ra>
// kernel: tpu_custom_call.1
= control target key start
LH: loop header
LB: loop body
LE: loop exit
PB: predicated region body
PF: predicated region fallthrough
CT: control target
= control target key end

     0   :  { %vm36_vm0 = vcmask 130048   ;;  %v2748_v49 = vmov 683565275   ;;  %v2749_v51 = vmov 2475754826   ;;  %s4596_s1 = inlined_call_operand.vmem [shape: f32[16,32], index: 1, kind: input, shape index: {}]   ;;  %s4597_s0 = inlined_call_operand.vmem [shape: f32[128,16], index: 0, kind: input, shape index: {}]   ;;  %s4598_s2 = inlined_call_operand.vmem [shape: f32[1,32], index: 2, kind: input, shape index: {}]   ;;  %s4599_s3 = inlined_call_operand.vmem [shape: f32[128,32], index: 3, kind: output, shape index: {}]  }
   0x1   :  { %v31_v0 = vld [vmem:[%s4596_s1 + $0x8] sm:$0xff]  ;;  %v30_v1 = vld [vmem:[%s4596_s1] sm:$0xff]  ;;  %v16_v10 = vld [vmem:[%s4597_s0 + $0x10] sm:$0xff]  ;;  %v2750_v53 = vmov 2131351028  }
   0x2   :  { %99 = vmatpush.msra.mxu0 %v31_v0  ;;  %2731 = vmatpush.msra.mxu1 %v31_v0  ;;  %v14_v2 = vld [vmem:[%s4597_s0] sm:$0xff]  ;;  %v15_v6 = vld [vmem:[%s4597_s0 + $0x8] sm:$0xff]  ;;  %v20_v11 = vld [vmem:[%s4597_s0 + $0x30] sm:$0xff]  ;;  %v2751_v55 = vmov 2102212464  }
   0x3   :  { %2732 = vmatpush.msra.mxu2 %v31_v0  ;;  %2733 = vmatpush.msra.mxu3 %v31_v0  ;;  %v18_v3 = vld [vmem:[%s4597_s0 + $0x20] sm:$0xff]  ;;  %v19_v7 = vld [vmem:[%s4597_s0 + $0x28] sm:$0xff]  ;;  %v24_v12 = vld [vmem:[%s4597_s0 + $0x50] sm:$0xff]  ;;  %v2752_v57 = vmov 920167782  }
   0x4   :  { %100 = vmatpush.msra.mxu0 %v30_v1  ;;  %2734 = vmatpush.msra.mxu1 %v30_v1  ;;  %v22_v4 = vld [vmem:[%s4597_s0 + $0x40] sm:$0xff]  ;;  %v23_v8 = vld [vmem:[%s4597_s0 + $0x48] sm:$0xff]  ;;  %v28_v13 = vld [vmem:[%s4597_s0 + $0x70] sm:$0xff] }
   0x5   :  { %v26_v5 = vld [vmem:[%s4597_s0 + $0x60] sm:$0xff]  ;;  %2735 = vmatpush.msra.mxu2 %v30_v1  ;;  %2736 = vmatpush.msra.mxu3 %v30_v1  ;;  %v27_v9 = vld [vmem:[%s4597_s0 + $0x68] sm:$0xff]  ;;  %v17_v14 = vld [vmem:[%s4597_s0 + $0x18] sm:$0xff] }
   0x6   :  { %2667 = vmatmul.msk.f32.vlgmr.msra.gmra.mxu0 %vm36_vm0, %v14_v2  ;;  %2671 = vmatmul.msk.f32.vlgmr.msra.gmra.mxu1 %vm36_vm0, %v18_v3  ;;  %v21_v15 = vld [vmem:[%s4597_s0 + $0x38] sm:$0xff]  ;;  %v2848_v18 = vld [vmem:[%s4598_s2] ss:$0 sm:$0xff]  ;;  %v2753_v2 = vmov 1326507024  }
   0x7   :  { %2675 = vmatmul.msk.f32.vlgmr.msra.gmra.mxu2 %vm36_vm0, %v22_v4  ;;  %2679 = vmatmul.msk.f32.vlgmr.msra.gmra.mxu3 %vm36_vm0, %v26_v5  ;;  %v25_v16 = vld [vmem:[%s4597_s0 + $0x58] sm:$0xff] }
   0x8   :  { %v29_v17 = vld [vmem:[%s4597_s0 + $0x78] sm:$0xff] }
   0xe   :  { %2668 = vmatmul.msk.f32.gmra.mxu0 %vm36_vm0, %v15_v6  ;;  %2672 = vmatmul.msk.f32.gmra.mxu1 %vm36_vm0, %v19_v7 }
   0xf   :  { %2676 = vmatmul.msk.f32.gmra.mxu2 %vm36_vm0, %v23_v8  ;;  %2680 = vmatmul.msk.f32.gmra.mxu3 %vm36_vm0, %v27_v9 }
  0x16   :  { %2669 = vmatmul.msk.f32.gmra.mxu0 %vm36_vm0, %v16_v10  ;;  %2673 = vmatmul.msk.f32.gmra.mxu1 %vm36_vm0, %v20_v11 }
  0x17   :  { %2677 = vmatmul.msk.f32.gmra.mxu2 %vm36_vm0, %v24_v12  ;;  %2681 = vmatmul.msk.f32.gmra.mxu3 %vm36_vm0, %v28_v13 }
  0x1e   :  { %2670 = vmatmul.msk.f32.gmra.mxu0 %vm36_vm0, %v17_v14  ;;  %2674 = vmatmul.msk.f32.gmra.mxu1 %vm36_vm0, %v21_v15 }
  0x1f   :  { %2678 = vmatmul.msk.f32.gmra.mxu2 %vm36_vm0, %v25_v16  ;;  %2682 = vmatmul.msk.f32.gmra.mxu3 %vm36_vm0, %v29_v17 }
  0x83   :  { %v102_v19 = vpop.f32.mrf.mxu0  ;;  %v114_v20 = vpop.f32.mrf.mxu1 }
  0x84   :  { %v103_v21 = vadd.f32 %v2848_v18, %v102_v19  ;;  %v115_v22 = vadd.f32 %v2848_v18, %v114_v20 }
  0x86   :  { %v2852_v23 = vmul.f32 30.0, %v103_v21  ;;  %v2854_v24 = vmul.f32 30.0, %v115_v22 }
  0x88   :  { %v166_v25 = vand.u32 2147483647, %v2852_v23  ;;  %v169_v26 = vand.u32 2139095040, %v2852_v23  ;;  %v786_v27 = vand.u32 2147483647, %v2854_v24  ;;  %v789_v28 = vand.u32 2139095040, %v2854_v24 }
  0x8a   :  { %v170_v29 = vshrl.u32 %v169_v26, 23  ;;  %v173_v30 = vand.u32 8388607, %v166_v25  ;;  %v790_v31 = vshrl.u32 %v789_v28, 23  ;;  %v126_v33 = vpop.f32.mrf.mxu2  ;;  %v793_v36 = vand.u32 8388607, %v786_v27 }
  0x8b   :  { %v127_v39 = vadd.f32 %v2848_v18, %v126_v33 }
  0x8c   :  { %v2683_v32 = vadd.s32 4294967169, %v170_v29  ;;  %v174_v34 = vor.u32 8388608, %v173_v30  ;;  %v2695_v35 = vadd.s32 4294967169, %v790_v31  ;;  %v794_v42 = vor.u32 8388608, %v793_v36 }
  0x8d   :  { %v2871_v47 = vmul.f32 30.0, %v127_v39 }
  0x8e   :  { %v176_v37 = vadd.s32 1, %v2683_v32  ;;  %v796_v38 = vadd.s32 1, %v2695_v35  ;;  %v2865_v41 = vshll.u32 %v174_v34, 8  ;;  %v2879_v60 = vshll.u32 %v794_v42, 8 }
  0x8f   :  { %v1409_v10 = vand.u32 2139095040, %v2871_v47 }
  0x90   :  { %vm177_vm1 = vcmp.gt.s32.totalorder %v176_v37, 0  ;;  %vm797_vm2 = vcmp.gt.s32.totalorder %v796_v38, 0  ;;  %v215_v59 = vand.u32 65535, %v2865_v41  ;;  %v216_v0 = vshrl.u32 %v2865_v41, 16 }
  0x91   :  { %v178_v40 = vsel %vm177_vm1, %v176_v37, 0  ;;  %v798_v44 = vsel %vm797_vm2, %v796_v38, 0  ;;  %v2923_v30 = vand.u32 65535, %v2879_v60 }
  0x92   :  { %v180_v43 = vand.u32 31, %v178_v40  ;;  %v2867_v45 = vshrl.u32 %v178_v40, 5  ;;  %v2869_v46 = vand.u32 31, %v798_v44  ;;  %v2929_v37 = vshrl.u32 %v798_v44, 5 }
  0x94   :  { %v181_v48 = vsub.s32 32, %v180_v43  ;;  %v183_v50 = vshll.u32 %v2748_v49, %v180_v43  ;;  %v186_v52 = vshll.u32 %v2749_v51, %v180_v43  ;;  %v189_v54 = vshll.u32 %v2750_v53, %v180_v43 }
  0x95   :  { %v192_v56 = vshll.u32 %v2751_v55, %v180_v43  ;;  %v195_v58 = vshll.u32 %v2752_v57, %v180_v43  ;;  %vm198_vm3 = vcmp.lt.s32.totalorder %v2867_v45, 1  ;;  %vm201_vm4 = vcmp.lt.s32.totalorder %v2867_v45, 4 }
  0x96   :  { %v184_v61 = vshrl.u32 %v2749_v51, %v181_v48  ;;  %v187_v62 = vshrl.u32 %v2750_v53, %v181_v48  ;;  %v190_v63 = vshrl.u32 %v2751_v55, %v181_v48  ;;  %v193_v1 = vshrl.u32 %v2752_v57, %v181_v48 }
  0x97   :  { %v196_v3 = vshrl.u32 %v2753_v2, %v181_v48  ;;  %v2890_v7 = vsub.s32 32, %v2869_v46  ;;  %vm200_vm5 = vcmp.lt.s32.totalorder %v2867_v45, 3  ;;  %v182_v11 = vshrl.u32 %v2748_v49, %v181_v48 }
  0x98   :  { %v185_v4 = vor.u32 %v184_v61, %v183_v50  ;;  %v188_v5 = vor.u32 %v187_v62, %v186_v52  ;;  %v191_v6 = vor.u32 %v190_v63, %v189_v54  ;;  %v194_v8 = vor.u32 %v193_v1, %v192_v56 }
  0x99   :  { %v197_v9 = vor.u32 %v196_v3, %v195_v58  ;;  %vm199_vm6 = vcmp.lt.s32.totalorder %v2867_v45, 2  ;;  %v803_v16 = vshll.u32 %v2748_v49, %v2869_v46  ;;  %v806_v17 = vshll.u32 %v2749_v51, %v2869_v46 }
  0x9a   :  { %v206_v12 = vsel %vm198_vm3, %v185_v4, %v188_v5  ;;  %v210_v13 = vsel %vm198_vm3, %v188_v5, %v191_v6  ;;  %v207_v14 = vsel %vm201_vm4, %v194_v8, 920167782  ;;  %v203_v19 = vsel %vm201_vm4, %v191_v6, 2102212464 }
  0x9b   :  { %v211_v15 = vsel %vm201_vm4, %v197_v9, 1326507024  ;;  %v208_v20 = vsel %vm200_vm5, %v191_v6, %v207_v14  ;;  %v804_v22 = vshrl.u32 %v2749_v51, %v2890_v7  ;;  %v807_v29 = vshrl.u32 %v2750_v53, %v2890_v7 }
  0x9c   :  { %v212_v21 = vsel %vm200_vm5, %v194_v8, %v211_v15  ;;  %v209_v26 = vsel %vm199_vm6, %v206_v12, %v208_v20  ;;  %v202_v35 = vsel %vm198_vm3, %v182_v11, %v185_v4  ;;  %v204_v36 = vsel %vm200_vm5, %v188_v5, %v203_v19 }
  0x9d   :  { %v213_v28 = vsel %vm199_vm6, %v210_v13, %v212_v21  ;;  %v239_v33 = vand.u32 65535, %v209_v26  ;;  %v240_v34 = vshrl.u32 %v209_v26, 16  ;;  %v2931_v38 = vor.u32 %v804_v22, %v803_v16 }
  0x9e   :  { %v217_v31 = vand.u32 65535, %v213_v28  ;;  %v218_v32 = vshrl.u32 %v213_v28, 16  ;;  %v2933_v42 = vor.u32 %v807_v29, %v806_v17  ;;  %v809_v43 = vshll.u32 %v2750_v53, %v2869_v46 }
  0x9f   :  { %v242_v50 = vmul.u32 %v240_v34, %v215_v59  ;;  %v243_v52 = vmul.u32 %v239_v33, %v216_v0  ;;  %v810_v54 = vshrl.u32 %v2751_v55, %v2890_v7  ;;  %v241_v61 = vmul.u32 %v239_v33, %v215_v59 }
  0xa0   :  { %v220_v39 = vmul.u32 %v218_v32, %v215_v59  ;;  %v221_v40 = vmul.u32 %v217_v31, %v216_v0  ;;  %v219_v48 = vmul.u32 %v217_v31, %v215_v59  ;;  %v222_v56 = vmul.u32 %v218_v32, %v216_v0 }
  0xa1   :  { %v244_v44 = vmul.u32 %v240_v34, %v216_v0  ;;  %v245_v3 = vshll.u32 %v242_v50, 16  ;;  %v247_v5 = vshll.u32 %v243_v52, 16  ;;  %v812_v6 = vshll.u32 %v2751_v55, %v2869_v46 }
  0xa2   :  { %v223_v58 = vshll.u32 %v220_v39, 16  ;;  %v224_v62 = vshrl.u32 %v220_v39, 16  ;;  %v225_v63 = vshll.u32 %v221_v40, 16  ;;  %v226_v1 = vshrl.u32 %v221_v40, 16 }
  0xa3   :  { %v2754_v8 = vmov 0   ;;  %vm249_vm8 = vc.u32 %v241_v61, %v245_v3  ;;  %v251_v11 = vadd.s32 %v245_v3, %v241_v61  ;;  %v813_v12 = vshrl.u32 %v2752_v57, %v2890_v7 }
  0xa4   :  { %vm227_vm7 = vc.u32 %v219_v48, %v223_v58  ;;  %v229_v4 = vadd.s32 %v223_v58, %v219_v48  ;;  %v250_v0 = vsel %vm249_vm8, 1, %v2754_v8  ;;  %v815_v13 = vshll.u32 %v2752_v57, %v2869_v46 }
  0xa5   :  { %v228_v9 = vsel %vm227_vm7, 1, %v2754_v8  ;;  %v252_v15 = vadd.s32 %v250_v0, %v244_v44  ;;  %vm253_vm10 = vc.u32 %v251_v11, %v247_v5  ;;  %v811_v16 = vor.u32 %v810_v54, %v809_v43 }
  0xa6   :  { %v230_v59 = vadd.s32 %v228_v9, %v222_v56  ;;  %vm231_vm9 = vc.u32 %v229_v4, %v225_v63  ;;  %v254_v19 = vsel %vm253_vm10, 1, %v2754_v8  ;;  %v814_v20 = vor.u32 %v813_v12, %v812_v6 }
  0xa7   :  { %v232_v14 = vsel %vm231_vm9, 1, %v2754_v8  ;;  %v816_v21 = vshrl.u32 %v2753_v2, %v2890_v7  ;;  %v246_v22 = vshrl.u32 %v242_v50, 16  ;;  %v256_v26 = vadd.s32 %v254_v19, %v252_v15 }
  0xa8   :  { %v234_v17 = vadd.s32 %v232_v14, %v230_v59  ;;  %vm818_vm11 = vcmp.lt.s32.totalorder %v2929_v37, 1  ;;  %vm820_vm12 = vcmp.lt.s32.totalorder %v2929_v37, 3  ;;  %v248_v46 = vshrl.u32 %v243_v52, 16 }
  0xa9   :  { %v817_v29 = vor.u32 %v816_v21, %v815_v13  ;;  %vm821_vm13 = vcmp.lt.s32.totalorder %v2929_v37, 4  ;;  %v2954_v31 = vadd.s32 %v251_v11, %v247_v5  ;;  %v257_v32 = vadd.s32 %v256_v26, %v246_v22 }
  0xaa   :  { %v235_v28 = vadd.s32 %v234_v17, %v224_v62  ;;  %v826_v33 = vsel %vm818_vm11, %v2931_v38, %v2933_v42  ;;  %v827_v34 = vsel %vm821_vm13, %v814_v20, 920167782  ;;  %vm819_vm14 = vcmp.lt.s32.totalorder %v2929_v37, 2 }
  0xab   :  { %v828_v40 = vsel %vm820_vm12, %v811_v16, %v827_v34  ;;  %v830_v43 = vsel %vm818_vm11, %v2933_v42, %v811_v16  ;;  %v205_v48 = vsel %vm199_vm6, %v202_v35, %v204_v36  ;;  %v258_v50 = vadd.s32 %v257_v32, %v248_v46 }
  0xac   :  { %v2962_v39 = vadd.s32 %v235_v28, %v226_v1  ;;  %v829_v52 = vsel %vm819_vm14, %v826_v33, %v828_v40  ;;  %v831_v54 = vsel %vm821_vm13, %v817_v29, 1326507024  ;;  %v836_v58 = vshrl.u32 %v2879_v60, 16 }
  0xad   :  { %v832_v56 = vsel %vm820_vm12, %v814_v20, %v831_v54  ;;  %v859_v61 = vand.u32 65535, %v829_v52  ;;  %v262_v44 = vadd.s32 1, %v258_v50  ;;  %v860_v35 = vshrl.u32 %v829_v52, 16 }
  0xae   :  { %vm261_vm15 = vc.u32 %v2962_v39, %v2954_v31  ;;  %v833_v45 = vsel %vm819_vm14, %v830_v43, %v832_v56  ;;  %v1410_v36 = vshrl.u32 %v1409_v10, 23  ;;  %v259_v62 = vmul.u32 %v2865_v41, %v205_v48 }
  0xaf   :  { %v837_v63 = vand.u32 65535, %v833_v45  ;;  %v838_v1 = vshrl.u32 %v833_v45, 16  ;;  %v1406_v3 = vand.u32 2147483647, %v2871_v47  ;;  %v263_v4 = vsel %vm261_vm15, %v262_v44, %v258_v50 }
  0xb0   :  { %v802_v5 = vshrl.u32 %v2748_v49, %v2890_v7  ;;  %v862_v6 = vmul.u32 %v860_v35, %v2923_v30  ;;  %v863_v9 = vmul.u32 %v859_v61, %v836_v58  ;;  %v264_v11 = vadd.s32 %v263_v4, %v259_v62 }
  0xb1   :  { %v823_v12 = vsel %vm821_vm13, %v811_v16, 2102212464  ;;  %v840_v59 = vmul.u32 %v838_v1, %v2923_v30  ;;  %v841_v10 = vmul.u32 %v837_v63, %v836_v58  ;;  %v861_v41 = vmul.u32 %v859_v61, %v2923_v30 }
  0xb2   :  { %v864_v0 = vmul.u32 %v860_v35, %v836_v58  ;;  %v865_v13 = vshll.u32 %v862_v6, 16  ;;  %v2707_v14 = vadd.s32 4294967169, %v1410_v36  ;;  %v265_v15 = vadd.s32 536870912, %v264_v11 }
  0xb3   :  { %v839_v17 = vmul.u32 %v837_v63, %v2923_v30  ;;  %v842_v19 = vmul.u32 %v838_v1, %v836_v58  ;;  %v843_v7 = vshll.u32 %v840_v59, 16  ;;  %v845_v20 = vshll.u32 %v841_v10, 16 }
  0xb4   :  { %v867_v21 = vshll.u32 %v863_v9, 16  ;;  %vm869_vm0 = vc.u32 %v861_v41, %v865_v13  ;;  %v871_v22 = vadd.s32 %v865_v13, %v861_v41  ;;  %v266_v26 = vshrl.u32 %v265_v15, 30 }
  0xb5   :  { %vm847_vm1 = vc.u32 %v839_v17, %v843_v7  ;;  %v849_v16 = vadd.s32 %v843_v7, %v839_v17  ;;  %v870_v28 = vsel %vm869_vm0, 1, %v2754_v8  ;;  %v1413_v32 = vand.u32 8388607, %v1406_v3 }
  0xb6   :  { %v848_v46 = vsel %vm847_vm1, 1, %v2754_v8  ;;  %v872_v29 = vadd.s32 %v870_v28, %v864_v0  ;;  %vm873_vm2 = vc.u32 %v871_v22, %v867_v21  ;;  %v267_v33 = vshll.u32 %v266_v26, 30 }
  0xb7   :  { %v822_v30 = vsel %vm818_vm11, %v802_v5, %v2931_v38  ;;  %v850_v34 = vadd.s32 %v848_v46, %v842_v19  ;;  %vm851_vm3 = vc.u32 %v849_v16, %v845_v20  ;;  %v824_v40 = vsel %vm820_vm12, %v2933_v42, %v823_v12 }
  0xb8   :  { %v852_v43 = vsel %vm851_vm3, 1, %v2754_v8  ;;  %v874_v48 = vsel %vm873_vm2, 1, %v2754_v8  ;;  %v1416_v50 = vadd.s32 1, %v2707_v14  ;;  %v268_v52 = vsub.s32 %v264_v11, %v267_v33 }
  0xb9   :  { %v844_v54 = vshrl.u32 %v840_v59, 16  ;;  %v854_v56 = vadd.s32 %v852_v43, %v850_v34  ;;  %v876_v58 = vadd.s32 %v874_v48, %v872_v29  ;;  %vm168_vm4 = vcmp.lt.s32.totalorder %v2852_v23, 0 }
  0xba   :  { %v290_v61 = vsub.s32 4, %v266_v26  ;;  %v866_v44 = vshrl.u32 %v862_v6, 16  ;;  %vm1417_vm5 = vcmp.gt.s32.totalorder %v1416_v50, 0  ;;  %vm269_vm6 = vcmp.lt.s32.totalorder %v268_v52, 0 }
  0xbb   :  { %v270_v38 = vsub.s32 0, %v268_v52  ;;  %v846_v45 = vshrl.u32 %v841_v10, 16  ;;  %v855_v35 = vadd.s32 %v854_v56, %v844_v54  ;;  %v825_v42 = vsel %vm819_vm14, %v822_v30, %v824_v40 }
  0xbc   :  { %v868_v36 = vshrl.u32 %v863_v9, 16  ;;  %v877_v62 = vadd.s32 %v876_v58, %v866_v44  ;;  %v1418_v63 = vsel %vm1417_vm5, %v1416_v50, 0  ;;  %v3012_v5 = vadd.s32 %v871_v22, %v867_v21 }
  0xbd   :  { %v271_v1 = vsel %vm269_vm6, %v270_v38, %v268_v52  ;;  %v3010_v4 = vadd.s32 %v855_v35, %v846_v45  ;;  %v1414_v11 = vor.u32 8388608, %v1413_v32  ;;  %v291_v6 = vsel %vm168_vm4, %v290_v61, %v266_v26 }
  0xbe   :  { %v272_v12 = vclz %v271_v1  ;;  %v878_v59 = vadd.s32 %v877_v62, %v868_v36  ;;  %v1420_v41 = vand.u32 31, %v1418_v63  ;;  %vm3018_vm7 = vcmp.le.f32.partialorder %v166_v25, 0.7853982 }
  0xbf   :  { %vm881_vm8 = vc.u32 %v3010_v4, %v3012_v5  ;;  %v260_v13 = vadd.s32 %v2954_v31, %v2962_v39  ;;  %v293_v14 = vsel %vm3018_vm7, 0, %v291_v6  ;;  %v879_v15 = vmul.u32 %v2879_v60, %v825_v42  ;;  %v138_v6 = vpop.f32.mrf.mxu3 }
  0xc0   :  { %v2684_v9 = vadd.s32 4294967294, %v272_v12  ;;  %v882_v10 = vadd.s32 1, %v878_v59  ;;  %v3024_v0 = vsub.s32 32, %v1420_v41  ;;  %v3031_v17 = vshrl.u32 %v1418_v63, 5 }
  0xc1   :  { %v3033_v19 = vshll.u32 %v1414_v11, 8  ;;  %v1423_v26 = vshll.u32 %v2748_v49, %v1420_v41  ;;  %v1426_v60 = vshll.u32 %v2749_v51, %v1420_v41  ;;  %v1432_v46 = vshll.u32 %v2751_v55, %v1420_v41 }
  0xc2   :  { %vm2685_vm9 = vcmp.lt.s32.totalorder %v2684_v9, 0  ;;  %v883_v25 = vsel %vm881_vm8, %v882_v10, %v878_v59  ;;  %v1424_v21 = vshrl.u32 %v2749_v51, %v3024_v0  ;;  %v1427_v22 = vshrl.u32 %v2750_v53, %v3024_v0 }
  0xc3   :  { %v275_v7 = vsel %vm2685_vm9, 0, %v2684_v9  ;;  %v884_v20 = vadd.s32 %v883_v25, %v879_v15  ;;  %v1430_v28 = vshrl.u32 %v2751_v55, %v3024_v0  ;;  %v1433_v29 = vshrl.u32 %v2752_v57, %v3024_v0 }
  0xc4   :  { %v276_v31 = vsub.s32 32, %v275_v7  ;;  %v280_v39 = vsub.s32 4294967266, %v275_v7  ;;  %v277_v32 = vshll.u32 %v268_v52, %v275_v7  ;;  %v1436_v34 = vshrl.u32 %v2753_v2, %v3024_v0 }
  0xc5   :  { %v885_v16 = vadd.s32 536870912, %v884_v20  ;;  %v1425_v43 = vor.u32 %v1424_v21, %v1423_v26  ;;  %v3048_v48 = vor.u32 %v1427_v22, %v1426_v60  ;;  %v1429_v50 = vshll.u32 %v2750_v53, %v1420_v41 }
  0xc6   :  { %v278_v33 = vshrl.u32 %v260_v13, %v276_v31  ;;  %v281_v30 = vadd.s32 127, %v280_v39  ;;  %v1434_v58 = vor.u32 %v1433_v29, %v1432_v46  ;;  %v1435_v61 = vshll.u32 %v2752_v57, %v1420_v41 }
  0xc7   :  { %v886_v40 = vshrl.u32 %v885_v16, 30  ;;  %v310_v44 = vadd.s32 3, %v293_v14  ;;  %v1431_v45 = vor.u32 %v1430_v28, %v1429_v50  ;;  %vm1438_vm10 = vcmp.lt.s32.totalorder %v3031_v17, 1 }
  0xc8   :  { %v279_v54 = vor.u32 %v278_v33, %v277_v32  ;;  %v282_v56 = vshll.u32 %v281_v30, 23  ;;  %v1437_v35 = vor.u32 %v1436_v34, %v1435_v61  ;;  %v1455_v42 = vand.u32 65535, %v3033_v19 }
  0xc9   :  { %v887_v38 = vshll.u32 %v886_v40, 30  ;;  %vm788_vm11 = vcmp.lt.s32.totalorder %v2854_v24, 0  ;;  %vm1441_vm12 = vcmp.lt.s32.totalorder %v3031_v17, 4  ;;  %v1446_v62 = vsel %vm1438_vm10, %v1425_v43, %v3048_v48 }
  0xca   :  { %v283_v52 = vor.u32 4788187, %v282_v56  ;;  %v3062_v63 = vshrl.u32 %v3033_v19, 16  ;;  %v286_v11 = vcvt.s32.f32 %v279_v54  ;;  %vm1440_vm13 = vcmp.lt.s32.totalorder %v3031_v17, 3 }
  0xcb   :  { %v3055_v36 = vsub.s32 %v884_v20, %v887_v38  ;;  %v1447_v12 = vsel %vm1441_vm12, %v1434_v58, 920167782  ;;  %vm1439_vm15 = vcmp.lt.s32.totalorder %v3031_v17, 2  ;;  %v1450_v13 = vsel %vm1438_vm10, %v3048_v48, %v1431_v45 }
  0xcc   :  { %v284_v1 = vand.u32 2147483647, %v283_v52  ;;  %v1448_v41 = vsel %vm1440_vm13, %v1431_v45, %v1447_v12  ;;  %v1451_v14 = vsel %vm1441_vm12, %v1437_v35, 1326507024  ;;  %v3079_v15 = vand.u32 3, %v310_v44 }
  0xcd   :  { %vm889_vm14 = vcmp.lt.s32.totalorder %v3055_v36, 0  ;;  %v890_v59 = vsub.s32 0, %v3055_v36  ;;  %v1449_v10 = vsel %vm1439_vm15, %v1446_v62, %v1448_v41  ;;  %v1452_v7 = vsel %vm1440_vm13, %v1434_v58, %v1451_v14 }
  0xce   :  { %v287_v9 = vmul.f32 %v286_v11, %v284_v1  ;;  %v3085_v20 = vadd.f32 %v2848_v18, %v138_v6  ;;  %v910_v31 = vsub.s32 4, %v886_v40  ;;  %v1453_v39 = vsel %vm1439_vm15, %v1450_v13, %v1452_v7 }
  0xcf   :  { %v891_v25 = vsel %vm889_vm14, %v890_v59, %v3055_v36  ;;  %v1422_v26 = vshrl.u32 %v2748_v49, %v3024_v0  ;;  %v1457_v60 = vand.u32 65535, %v1453_v39  ;;  %v1479_v16 = vand.u32 65535, %v1449_v10 }
  0xd0   :  { %v288_v21 = vxor.u32 2147483648, %v287_v9  ;;  %v892_v22 = vclz %v891_v25  ;;  %v1480_v28 = vshrl.u32 %v1449_v10, 16  ;;  %v880_v29 = vadd.s32 %v3012_v5, %v3010_v4 }
  0xd1   :  { %v1458_v33 = vshrl.u32 %v1453_v39, 16  ;;  %v3102_v34 = vsel %vm1438_vm10, %v1422_v26, %v1425_v43  ;;  %v1443_v0 = vsel %vm1441_vm12, %v1431_v45, 2102212464  ;;  %v3107_v50 = vmul.u32 %v1457_v60, %v3062_v63 }
  0xd2   :  { %v289_v46 = vsel %vm168_vm4, %v288_v21, %v287_v9  ;;  %v2696_v32 = vadd.s32 4294967294, %v892_v22  ;;  %v3113_v5 = vsel %vm788_vm11, %v910_v31, %v886_v40  ;;  %v1459_v56 = vmul.u32 %v1457_v60, %v1455_v42 }
  0xd3   :  { %v3098_v30 = vsel %vm3018_vm7, %v2852_v23, %v289_v46  ;;  %v1460_v37 = vmul.u32 %v1458_v33, %v1455_v42  ;;  %v1481_v58 = vmul.u32 %v1479_v16, %v1455_v42  ;;  %v3115_v43 = vmul.u32 %v1480_v28, %v1455_v42 }
  0xd4   :  { %v294_v4 = vmul.f32 %v3098_v30, %v3098_v30  ;;  %vm2697_vm0 = vcmp.lt.s32.totalorder %v2696_v32, 0  ;;  %v1462_v45 = vmul.u32 %v1458_v33, %v3062_v63  ;;  %v1465_v62 = vshll.u32 %v3107_v50, 16 }
  0xd5   :  { %v895_v54 = vsel %vm2697_vm0, 0, %v2696_v32  ;;  %v1463_v35 = vshll.u32 %v1460_v37, 16  ;;  %v3120_v1 = vmul.u32 %v1479_v16, %v3062_v63  ;;  %v1485_v41 = vshll.u32 %v3115_v43, 16 }
  0xd6   :  { %v295_v61 = vmul.f32 -0.001358992, %v294_v4  ;;  %v302_v44 = vmul.f32 -0.00019511016, %v294_v4  ;;  %v896_v38 = vsub.s32 32, %v895_v54  ;;  %v900_v52 = vsub.s32 4294967266, %v895_v54 }
  0xd7   :  { %v897_v12 = vshll.u32 %v3055_v36, %v895_v54  ;;  %vm1467_vm1 = vc.u32 %v1459_v56, %v1463_v35  ;;  %v1469_v42 = vadd.s32 %v1463_v35, %v1459_v56  ;;  %vm3126_vm2 = vcmp.le.f32.partialorder %v786_v27, 0.7853982 }
  0xd8   :  { %v296_v40 = vadd.f32 0.041655596, %v295_v61  ;;  %v303_v11 = vadd.f32 0.008332121, %v302_v44  ;;  %v898_v6 = vshrl.u32 %v880_v29, %v896_v38  ;;  %v901_v59 = vadd.s32 127, %v900_v52 }
  0xd9   :  { %v1464_v14 = vshrl.u32 %v1460_v37, 16  ;;  %v1468_v25 = vsel %vm1467_vm1, 1, %v2754_v8  ;;  %vm1471_vm3 = vc.u32 %v1469_v42, %v1465_v62  ;;  %vm316_vm4 = vcmp.eq.s32.totalorder %v3079_v15, 2 }
  0xda   :  { %v297_v9 = vmul.f32 %v296_v40, %v294_v4  ;;  %v304_v10 = vmul.f32 %v303_v11, %v294_v4  ;;  %v899_v7 = vor.u32 %v898_v6, %v897_v12  ;;  %v902_v21 = vshll.u32 %v901_v59, 23 }
  0xdb   :  { %v1470_v36 = vadd.s32 %v1468_v25, %v1462_v45  ;;  %v1472_v39 = vsel %vm1471_vm3, 1, %v2754_v8  ;;  %v1484_v26 = vmul.u32 %v1480_v28, %v3062_v63  ;;  %vm313_vm5 = vcmp.eq.s32.totalorder %v3079_v15, 0 }
  0xdc   :  { %v298_v22 = vadd.f32 -0.4999988, %v297_v9  ;;  %v305_v31 = vadd.f32 -0.16666654, %v304_v10  ;;  %v903_v27 = vor.u32 4788187, %v902_v21  ;;  %vm1489_vm6 = vc.u32 %v1481_v58, %v1485_v41 }
  0xdd   :  { %v1474_v60 = vadd.s32 %v1472_v39, %v1470_v36  ;;  %v1487_v16 = vshll.u32 %v3120_v1, 16  ;;  %vm312_vm7 = vcmp.lt.s32.totalorder %v3079_v15, 2  ;;  %vm2646_vm8 = vcmask 261120  }
  0xde   :  { %v299_v46 = vmul.f32 %v298_v22, %v294_v4  ;;  %v306_v29 = vmul.f32 %v305_v31, %v294_v4  ;;  %v1490_v32 = vsel %vm1489_vm6, 1, %v2754_v8  ;;  %v1491_v33 = vadd.s32 %v1485_v41, %v1481_v58  ;;  %v105_v41 = vpop.f32.mrf.mxu0 }
  0xdf   :  { %vm309_vm9 = vweird.f32 %v2852_v23  ;;  %v904_v37 = vand.u32 2147483647, %v903_v27  ;;  %v906_v54 = vcvt.s32.f32 %v899_v7  ;;  %v1475_v63 = vadd.s32 %v1474_v60, %v1464_v14 }
  0xe0   :  { %v1492_v28 = vadd.s32 %v1490_v32, %v1484_v26  ;;  %v300_v56 = vadd.f32 1.0, %v299_v46  ;;  %v307_v61 = vadd.f32 1.0, %v306_v29  ;;  %v1444_v44 = vsel %vm1440_vm13, %v3048_v48, %v1443_v0 }
  0xe1   :  { %vm1493_vm10 = vc.u32 %v1491_v33, %v1487_v16  ;;  %v907_v4 = vmul.f32 %v906_v54, %v904_v37  ;;  %v1466_v38 = vshrl.u32 %v3107_v50, 16  ;;  %v3145_v58 = vmul.f32 30.0, %v3085_v20 }
  0xe2   :  { %v1494_v45 = vsel %vm1493_vm10, 1, %v2754_v8  ;;  %v308_v52 = vmul.f32 %v307_v61, %v3098_v30  ;;  %v317_v35 = vxor.u32 2147483648, %v300_v56  ;;  %v1486_v62 = vshrl.u32 %v3115_v43, 16 }
  0xe3   :  { %v1496_v40 = vadd.s32 %v1494_v45, %v1492_v28  ;;  %v908_v11 = vxor.u32 2147483648, %v907_v4  ;;  %v913_v48 = vsel %vm3126_vm2, 0, %v3113_v5  ;;  %v1476_v0 = vadd.s32 %v1475_v63, %v1466_v38 }
  0xe4   :  { %v2026_v12 = vand.u32 2147483647, %v3145_v58  ;;  %v314_v50 = vxor.u32 2147483648, %v308_v52  ;;  %v1445_v20 = vsel %vm1439_vm15, %v3102_v34, %v1444_v44  ;;  %v1488_v6 = vshrl.u32 %v3120_v1, 16 }
  0xe5   :  { %v1497_v30 = vadd.s32 %v1496_v40, %v1486_v62  ;;  %v318_v43 = vsel %vm316_vm4, %v317_v35, %v308_v52  ;;  %v909_v59 = vsel %vm788_vm11, %v908_v11, %v907_v4  ;;  %v1495_v42 = vadd.s32 %v1491_v33, %v1487_v16 }
  0xe6   :  { %v2029_v5 = vand.u32 2139095040, %v3145_v58  ;;  %v315_v9 = vsel %vm313_vm5, %v300_v56, %v314_v50  ;;  %v912_v17 = vsel %vm3126_vm2, %v2854_v24, %v909_v59  ;;  %v2033_v1 = vand.u32 8388607, %v2026_v12 }
  0xe7   :  { %v1498_v34 = vadd.s32 %v1497_v30, %v1488_v6  ;;  %v319_v10 = vsel %vm312_vm7, %v315_v9, %v318_v43  ;;  %v914_v14 = vmul.f32 %v912_v17, %v912_v17  ;;  %vm1501_vm11 = vc.u32 %v1476_v0, %v1495_v42 }
  0xe8   :  { %v2030_v25 = vshrl.u32 %v2029_v5, 23  ;;  %v320_v7 = vsel %vm309_vm9, nan, %v319_v10  ;;  %v930_v21 = vadd.s32 3, %v913_v48  ;;  %v106_v22 = vadd.f32 %v2848_v18, %v105_v41 }
  0xe9   :  { %v1502_v36 = vadd.s32 1, %v1498_v34  ;;  %2647 = vst.msk [vmem:[%s4599_s3] sm:$0xff] %vm2646_vm8, %v320_v7  ;;  %v915_v13 = vmul.f32 -0.001358992, %v914_v14  ;;  %v922_v31 = vmul.f32 -0.00019511016, %v914_v14  ;;  %v1499_v15 = vmul.u32 %v3033_v19, %v1445_v20 }
  0xea   :  { %v2719_v39 = vadd.s32 4294967169, %v2030_v25  ;;  %v2034_v27 = vor.u32 8388608, %v2033_v1  ;;  %v931_v29 = vand.u32 3, %v930_v21  ;;  %v3179_v32 = vmul.f32 30.0, %v106_v22 }
  0xeb   :  { %v1503_v26 = vsel %vm1501_vm11, %v1502_v36, %v1498_v34  ;;  %v916_v60 = vadd.f32 0.041655596, %v915_v13  ;;  %v923_v16 = vadd.f32 0.008332121, %v922_v31  ;;  %vm1408_vm13 = vcmp.lt.s32.totalorder %v2871_v47, 0 }
  0xec   :  { %v1504_v23 = vadd.s32 %v1503_v26, %v1499_v15  ;;  %v2036_v46 = vadd.s32 1, %v2719_v39  ;;  %v3181_v63 = vshll.u32 %v2034_v27, 8  ;;  %v321_v44 = vand.u32 2147483647, %v3179_v32 }
  0xed   :  { %v917_v18 = vmul.f32 %v916_v60, %v914_v14  ;;  %v924_v33 = vmul.f32 %v923_v16, %v914_v14  ;;  %v324_v4 = vand.u32 2139095040, %v3179_v32  ;;  %vm932_vm14 = vcmp.lt.s32.totalorder %v931_v29, 2 }
  0xee   :  { %v1505_v37 = vadd.s32 536870912, %v1504_v23  ;;  %vm2037_vm12 = vcmp.gt.s32.totalorder %v2036_v46, 0  ;;  %vm933_vm15 = vcmp.eq.s32.totalorder %v931_v29, 0  ;;  %vm929_vm0 = vweird.f32 %v2854_v24 }
  0xef   :  { %v2038_v54 = vsel %vm2037_vm12, %v2036_v46, 0  ;;  %v918_v28 = vadd.f32 -0.4999988, %v917_v18  ;;  %v925_v56 = vadd.f32 -0.16666654, %v924_v33  ;;  %vm936_vm1 = vcmp.eq.s32.totalorder %v931_v29, 2 }
  0xf0   :  { %v1506_v19 = vshrl.u32 %v1505_v37, 30  ;;  %v2040_v61 = vand.u32 31, %v2038_v54  ;;  %v1500_v35 = vadd.s32 %v1495_v42, %v1476_v0  ;;  %v3188_v40 = vand.u32 65535, %v3181_v63 }
  0xf1   :  { %v919_v38 = vmul.f32 %v918_v28, %v914_v14  ;;  %v926_v45 = vmul.f32 %v925_v56, %v914_v14  ;;  %vm3192_vm2 = vcmp.le.f32.partialorder %v1406_v3, 0.7853982  ;;  %v3196_v30 = vshrl.u32 %v2038_v54, 5 }
  0xf2   :  { %v1507_v52 = vshll.u32 %v1506_v19, 30  ;;  %v2041_v62 = vsub.s32 32, %v2040_v61  ;;  %v1530_v6 = vsub.s32 4, %v1506_v19  ;;  %v325_v59 = vshrl.u32 %v324_v4, 23 }
  0xf3   :  { %v920_v11 = vadd.f32 1.0, %v919_v38  ;;  %v927_v48 = vadd.f32 1.0, %v926_v45  ;;  %v3201_v0 = vand.u32 8388607, %v321_v44  ;;  %v2043_v3 = vshll.u32 %v2748_v49, %v2040_v61 }
  0xf4   :  { %v1508_v20 = vsub.s32 %v1504_v23, %v1507_v52  ;;  %v2044_v43 = vshrl.u32 %v2749_v51, %v2041_v62  ;;  %v2046_v9 = vshll.u32 %v2749_v51, %v2040_v61  ;;  %v2047_v34 = vshrl.u32 %v2750_v53, %v2041_v62 }
  0xf5   :  { %v928_v42 = vmul.f32 %v927_v48, %v912_v17  ;;  %v937_v5 = vxor.u32 2147483648, %v920_v11  ;;  %v2050_v1 = vshrl.u32 %v2751_v55, %v2041_v62  ;;  %v1531_v25 = vsel %vm1408_vm13, %v1530_v6, %v1506_v19 }
  0xf6   :  { %vm1509_vm3 = vcmp.lt.s32.totalorder %v1508_v20, 0  ;;  %v1510_v41 = vsub.s32 0, %v1508_v20  ;;  %v2049_v7 = vshll.u32 %v2750_v53, %v2040_v61  ;;  %v2045_v36 = vor.u32 %v2044_v43, %v2043_v3 }
  0xf7   :  { %v934_v10 = vxor.u32 2147483648, %v928_v42  ;;  %v938_v17 = vsel %vm936_vm1, %v937_v5, %v928_v42  ;;  %v2053_v22 = vshrl.u32 %v2752_v57, %v2041_v62  ;;  %v2052_v31 = vshll.u32 %v2751_v55, %v2040_v61 }
  0xf8   :  { %v1511_v14 = vsel %vm1509_vm3, %v1510_v41, %v1508_v20  ;;  %v2055_v15 = vshll.u32 %v2752_v57, %v2040_v61  ;;  %v2056_v39 = vshrl.u32 %v2753_v2, %v2041_v62  ;;  %v2048_v60 = vor.u32 %v2047_v34, %v2046_v9 }
  0xf9   :  { %v1512_v21 = vclz %v1511_v14  ;;  %v935_v13 = vsel %vm933_vm15, %v920_v11, %v934_v10  ;;  %v2051_v16 = vor.u32 %v2050_v1, %v2049_v7  ;;  %v2054_v46 = vor.u32 %v2053_v22, %v2052_v31 }
  0xfa   :  { %v939_v26 = vsel %vm932_vm14, %v935_v13, %v938_v17  ;;  %v2057_v18 = vor.u32 %v2056_v39, %v2055_v15  ;;  %v2686_v33 = vadd.s32 4294967169, %v325_v59  ;;  %v1533_v37 = vsel %vm3192_vm2, 0, %v1531_v25 }
  0xfb   :  { %v2708_v27 = vadd.s32 4294967294, %v1512_v21  ;;  %v940_v23 = vsel %vm929_vm0, nan, %v939_v26  ;;  %v2042_v29 = vshrl.u32 %v2748_v49, %v2041_v62  ;;  %vm2058_vm5 = vcmp.lt.s32.totalorder %v3196_v30, 1 }
  0xfc   :  { %2651 = vst.msk [vmem:[%s4599_s3 + $0x20] sm:$0xff] %vm2646_vm8, %v940_v23  ;;  %vm2059_vm6 = vcmp.lt.s32.totalorder %v3196_v30, 2  ;;  %vm2060_vm7 = vcmp.lt.s32.totalorder %v3196_v30, 3  ;;  %vm2061_vm9 = vcmp.lt.s32.totalorder %v3196_v30, 4  ;;  %v2066_v19 = vsel %vm2058_vm5, %v2045_v36, %v2048_v60 }
  0xfd   :  { %vm2709_vm4 = vcmp.lt.s32.totalorder %v2708_v27, 0  ;;  %v2063_v56 = vsel %vm2061_vm9, %v2051_v16, 2102212464  ;;  %v2067_v4 = vsel %vm2061_vm9, %v2054_v46, 920167782  ;;  %v2070_v38 = vsel %vm2058_vm5, %v2048_v60, %v2051_v16 }
  0xfe   :  { %v1515_v54 = vsel %vm2709_vm4, 0, %v2708_v27  ;;  %v2071_v45 = vsel %vm2061_vm9, %v2057_v18, 1326507024  ;;  %v2068_v11 = vsel %vm2060_vm7, %v2051_v16, %v2067_v4  ;;  %v2062_v6 = vsel %vm2058_vm5, %v2042_v29, %v2045_v36 }
  0xff   :  { %v1516_v24 = vsub.s32 32, %v1515_v54  ;;  %v1520_v28 = vsub.s32 4294967266, %v1515_v54  ;;  %v1517_v61 = vshll.u32 %v1508_v20, %v1515_v54  ;;  %v2072_v48 = vsel %vm2060_vm7, %v2054_v46, %v2071_v45 }
 0x100   :  { %v2064_v43 = vsel %vm2060_vm7, %v2048_v60, %v2063_v56  ;;  %v2069_v59 = vsel %vm2059_vm6, %v2066_v19, %v2068_v11  ;;  %v2073_v42 = vsel %vm2059_vm6, %v2070_v38, %v2072_v48  ;;  %v2076_v9 = vshrl.u32 %v3181_v63, 16 }
 0x101   :  { %v1518_v52 = vshrl.u32 %v1500_v35, %v1516_v24  ;;  %v1521_v62 = vadd.s32 127, %v1520_v28  ;;  %v2077_v41 = vand.u32 65535, %v2073_v42  ;;  %v2078_v3 = vshrl.u32 %v2073_v42, 16 }
 0x102   :  { %v2099_v35 = vand.u32 65535, %v2069_v59  ;;  %v2100_v34 = vshrl.u32 %v2069_v59, 16  ;;  %v331_v1 = vadd.s32 1, %v2686_v33  ;;  %v3241_v14 = vadd.s32 3, %v1533_v37 }
 0x103   :  { %v1519_v20 = vor.u32 %v1518_v52, %v1517_v61  ;;  %v1522_v5 = vshll.u32 %v1521_v62, 23  ;;  %v2080_v25 = vmul.u32 %v2078_v3, %v3188_v40  ;;  %v329_v7 = vor.u32 8388608, %v3201_v0 }
 0x104   :  { %v3247_v21 = vsel %vm2059_vm6, %v2062_v6, %v2064_v43  ;;  %v2081_v36 = vmul.u32 %v2077_v41, %v2076_v9  ;;  %v2102_v22 = vmul.u32 %v2100_v34, %v3188_v40  ;;  %v2079_v31 = vmul.u32 %v2077_v41, %v3188_v40 }
 0x105   :  { %v1523_v10 = vor.u32 4788187, %v1522_v5  ;;  %v1526_v17 = vcvt.s32.f32 %v1519_v20  ;;  %v2083_v15 = vshll.u32 %v2080_v25, 16  ;;  %v2103_v39 = vmul.u32 %v2099_v35, %v2076_v9 }
 0x106   :  { %v2082_v26 = vmul.u32 %v2078_v3, %v2076_v9  ;;  %v2101_v27 = vmul.u32 %v2099_v35, %v3188_v40  ;;  %v2105_v60 = vshll.u32 %v2102_v22, 16  ;;  %vm332_vm10 = vcmp.gt.s32.totalorder %v331_v1, 0 }
 0x107   :  { %v1524_v13 = vand.u32 2147483647, %v1523_v10  ;;  %v2085_v23 = vshll.u32 %v2081_v36, 16  ;;  %vm2087_vm11 = vc.u32 %v2079_v31, %v2083_v15  ;;  %v2089_v46 = vadd.s32 %v2083_v15, %v2079_v31 }
 0x108   :  { %v2088_v30 = vsel %vm2087_vm11, 1, %v2754_v8  ;;  %v2104_v18 = vmul.u32 %v2100_v34, %v2076_v9  ;;  %v2107_v33 = vshll.u32 %v2103_v39, 16  ;;  %vm2109_vm12 = vc.u32 %v2101_v27, %v2105_v60 }
 0x109   :  { %v1527_v16 = vmul.f32 %v1526_v17, %v1524_v13  ;;  %v2090_v29 = vadd.s32 %v2088_v30, %v2082_v26  ;;  %vm2091_vm14 = vc.u32 %v2089_v46, %v2085_v23  ;;  %v2110_v54 = vsel %vm2109_vm12, 1, %v2754_v8 }
 0x10a   :  { %v2092_v24 = vsel %vm2091_vm14, 1, %v2754_v8  ;;  %v2111_v28 = vadd.s32 %v2105_v60, %v2101_v27  ;;  %v2112_v40 = vadd.s32 %v2110_v54, %v2104_v18  ;;  %v333_v56 = vsel %vm332_vm10, %v331_v1, 0 }
 0x10b   :  { %v1528_v37 = vxor.u32 2147483648, %v1527_v16  ;;  %v2084_v61 = vshrl.u32 %v2080_v25, 16  ;;  %v2094_v4 = vadd.s32 %v2092_v24, %v2090_v29  ;;  %v335_v38 = vand.u32 31, %v333_v56 }
 0x10c   :  { %v2086_v52 = vshrl.u32 %v2081_v36, 16  ;;  %vm2113_vm15 = vc.u32 %v2111_v28, %v2107_v33  ;;  %v2119_v62 = vmul.u32 %v3181_v63, %v3247_v21  ;;  %v2106_v59 = vshrl.u32 %v2102_v22, 16 }
 0x10d   :  { %v1529_v19 = vsel %vm1408_vm13, %v1528_v37, %v1527_v16  ;;  %v2095_v48 = vadd.s32 %v2094_v4, %v2084_v61  ;;  %v2114_v6 = vsel %vm2113_vm15, 1, %v2754_v8  ;;  %v3264_v43 = vsub.s32 32, %v335_v38 }
 0x10e   :  { %v1532_v45 = vsel %vm3192_vm2, %v2871_v47, %v1529_v19  ;;  %v2108_v42 = vshrl.u32 %v2103_v39, 16  ;;  %v2116_v20 = vadd.s32 %v2114_v6, %v2112_v40  ;;  %v338_v5 = vshll.u32 %v2748_v49, %v335_v38 }
 0x10f   :  { %v1534_v11 = vmul.f32 %v1532_v45, %v1532_v45  ;;  %v3267_v50 = vadd.s32 %v2095_v48, %v2086_v52  ;;  %v3269_v9 = vadd.s32 %v2111_v28, %v2107_v33  ;;  %v339_v63 = vshrl.u32 %v2749_v51, %v3264_v43 }
 0x110   :  { %v2117_v35 = vadd.s32 %v2116_v20, %v2106_v59  ;;  %v341_v34 = vshll.u32 %v2749_v51, %v335_v38  ;;  %v342_v1 = vshrl.u32 %v2750_v53, %v3264_v43  ;;  %v3276_v17 = vshrl.u32 %v333_v56, 5 }
 0x111   :  { %v1535_v41 = vmul.f32 -0.001358992, %v1534_v11  ;;  %v1542_v3 = vmul.f32 -0.00019511016, %v1534_v11  ;;  %v344_v21 = vshll.u32 %v2750_v53, %v335_v38  ;;  %vm2121_vm13 = vc.u32 %v3267_v50, %v3269_v9 }
 0x112   :  { %v2118_v36 = vadd.s32 %v2117_v35, %v2108_v42  ;;  %v3281_v22 = vor.u32 %v339_v63, %v338_v5  ;;  %v345_v13 = vshrl.u32 %v2751_v55, %v3264_v43  ;;  %v347_v39 = vshll.u32 %v2751_v55, %v335_v38 }
 0x113   :  { %v1536_v10 = vadd.f32 0.041655596, %v1535_v41  ;;  %v1543_v25 = vadd.f32 0.008332121, %v1542_v3  ;;  %v348_v26 = vshrl.u32 %v2752_v57, %v3264_v43  ;;  %v3288_v60 = vor.u32 %v342_v1, %v341_v34 }
 0x114   :  { %v2122_v27 = vadd.s32 1, %v2118_v36  ;;  %v350_v16 = vshll.u32 %v2752_v57, %v335_v38  ;;  %v351_v23 = vshrl.u32 %v2753_v2, %v3264_v43  ;;  %vm353_vm0 = vcmp.lt.s32.totalorder %v3276_v17, 1 }
 0x115   :  { %v1537_v31 = vmul.f32 %v1536_v10, %v1534_v11  ;;  %v1544_v15 = vmul.f32 %v1543_v25, %v1534_v11  ;;  %v349_v18 = vor.u32 %v348_v26, %v347_v39  ;;  %v346_v37 = vor.u32 %v345_v13, %v344_v21 }
 0x116   :  { %v2123_v33 = vsel %vm2121_vm13, %v2122_v27, %v2118_v36  ;;  %v352_v29 = vor.u32 %v351_v23, %v350_v16  ;;  %vm356_vm1 = vcmp.lt.s32.totalorder %v3276_v17, 4  ;;  %vm355_vm2 = vcmp.lt.s32.totalorder %v3276_v17, 3 }
 0x117   :  { %v1538_v46 = vadd.f32 -0.4999988, %v1537_v31  ;;  %v1545_v30 = vadd.f32 -0.16666654, %v1544_v15  ;;  %v2124_v28 = vadd.s32 %v2123_v33, %v2119_v62  ;;  %v1551_v40 = vand.u32 3, %v3241_v14 }
 0x118   :  { %v361_v56 = vsel %vm353_vm0, %v3281_v22, %v3288_v60  ;;  %v362_v19 = vsel %vm356_vm1, %v349_v18, 920167782  ;;  %v3305_v52 = vshll.u32 %v329_v7, 8  ;;  %vm354_vm3 = vcmp.lt.s32.totalorder %v3276_v17, 2 }
 0x119   :  { %v1539_v54 = vmul.f32 %v1538_v46, %v1534_v11  ;;  %v1546_v24 = vmul.f32 %v1545_v30, %v1534_v11  ;;  %v2125_v38 = vadd.s32 536870912, %v2124_v28  ;;  %v363_v14 = vsel %vm355_vm2, %v346_v37, %v362_v19 }
 0x11a   :  { %v365_v62 = vsel %vm353_vm0, %v3288_v60, %v346_v37  ;;  %v366_v11 = vsel %vm356_vm1, %v352_v29, 1326507024  ;;  %v364_v0 = vsel %vm354_vm3, %v361_v56, %v363_v14  ;;  %vm1552_vm4 = vcmp.lt.s32.totalorder %v1551_v40, 2 }
 0x11b   :  { %v1540_v61 = vadd.f32 1.0, %v1539_v54  ;;  %v1547_v4 = vadd.f32 1.0, %v1546_v24  ;;  %v3315_v59 = vshrl.u32 %v2125_v38, 30  ;;  %vm1553_vm5 = vcmp.eq.s32.totalorder %v1551_v40, 0 }
 0x11c   :  { %v367_v7 = vsel %vm355_vm2, %v349_v18, %v366_v11  ;;  %v395_v42 = vshrl.u32 %v364_v0, 16  ;;  %vm1556_vm6 = vcmp.eq.s32.totalorder %v1551_v40, 2  ;;  %v370_v41 = vand.u32 65535, %v3305_v52 }
 0x11d   :  { %v1548_v48 = vmul.f32 %v1547_v4, %v1532_v45  ;;  %v1557_v6 = vxor.u32 2147483648, %v1540_v61  ;;  %v2127_v5 = vshll.u32 %v3315_v59, 30  ;;  %v337_v45 = vshrl.u32 %v2748_v49, %v3264_v43  ;;  %v117_v4 = vpop.f32.mrf.mxu1 }
 0x11e   :  { %v368_v35 = vsel %vm354_vm3, %v365_v62, %v367_v7  ;;  %v394_v63 = vand.u32 65535, %v364_v0  ;;  %v3327_v25 = vmul.u32 %v395_v42, %v370_v41  ;;  %vm1549_vm7 = vweird.f32 %v2871_v47 }
 0x11f   :  { %v1554_v20 = vxor.u32 2147483648, %v1548_v48  ;;  %v1558_v3 = vsel %vm1556_vm6, %v1557_v6, %v1548_v48  ;;  %v2128_v1 = vsub.s32 %v2124_v28, %v2127_v5  ;;  %v372_v10 = vand.u32 65535, %v368_v35  ;;  %v3352_v5 = vld [vmem:[%s4598_s2] ss:$0 sm:$0xff] }
 0x120   :  { %v371_v36 = vshrl.u32 %v3305_v52, 16  ;;  %v373_v13 = vshrl.u32 %v368_v35, 16  ;;  %v2120_v43 = vadd.s32 %v3269_v9, %v3267_v50  ;;  %v357_v47 = vsel %vm353_vm0, %v337_v45, %v3281_v22 }
 0x121   :  { %v1555_v34 = vsel %vm1553_vm5, %v1540_v61, %v1554_v20  ;;  %vm2129_vm9 = vcmp.lt.s32.totalorder %v2128_v1, 0  ;;  %v2130_v15 = vsub.s32 0, %v2128_v1  ;;  %v400_v23 = vshll.u32 %v3327_v25, 16 }
 0x122   :  { %v1559_v21 = vsel %vm1552_vm4, %v1555_v34, %v1558_v3  ;;  %v375_v39 = vmul.u32 %v373_v13, %v370_v41  ;;  %v376_v26 = vmul.u32 %v372_v10, %v371_v36  ;;  %v398_v16 = vmul.u32 %v394_v63, %v371_v36 }
 0x123   :  { %v1560_v31 = vsel %vm1549_vm7, nan, %v1559_v21  ;;  %v2131_v27 = vsel %vm2129_vm9, %v2130_v15, %v2128_v1  ;;  %v358_v30 = vsel %vm356_vm1, %v346_v37, 2102212464  ;;  %v374_v18 = vmul.u32 %v372_v10, %v370_v41  ;;  %v129_v21 = vpop.f32.mrf.mxu2 }
 0x124   :  { %2655 = vst.msk [vmem:[%s4599_s3 + $0x40] sm:$0xff] %vm2646_vm8, %v1560_v31  ;;  %v2132_v46 = vclz %v2131_v27  ;;  %v378_v33 = vshll.u32 %v375_v39, 16  ;;  %v377_v29 = vmul.u32 %v373_v13, %v371_v36  ;;  %v396_v54 = vmul.u32 %v394_v63, %v370_v41 }
 0x125   :  { %v399_v24 = vmul.u32 %v395_v42, %v371_v36  ;;  %v401_v50 = vshrl.u32 %v3327_v25, 16  ;;  %v380_v28 = vshll.u32 %v376_v26, 16  ;;  %v402_v56 = vshll.u32 %v398_v16, 16 }
 0x126   :  { %v2720_v9 = vadd.s32 4294967294, %v2132_v46  ;;  %vm382_vm10 = vc.u32 %v374_v18, %v378_v33  ;;  %v384_v40 = vadd.s32 %v378_v33, %v374_v18  ;;  %vm404_vm11 = vc.u32 %v396_v54, %v400_v23 }
 0x127   :  { %v383_v22 = vsel %vm382_vm10, 1, %v2754_v8  ;;  %v406_v19 = vadd.s32 %v400_v23, %v396_v54  ;;  %v405_v37 = vsel %vm404_vm11, 1, %v2754_v8  ;;  %v379_v6 = vshrl.u32 %v375_v39, 16 }
 0x128   :  { %vm2721_vm12 = vcmp.lt.s32.totalorder %v2720_v9, 0  ;;  %v385_v61 = vadd.s32 %v383_v22, %v377_v29  ;;  %vm386_vm14 = vc.u32 %v384_v40, %v380_v28  ;;  %v407_v62 = vadd.s32 %v405_v37, %v399_v24 }
 0x129   :  { %v2135_v38 = vsel %vm2721_vm12, 0, %v2720_v9  ;;  %v387_v14 = vsel %vm386_vm14, 1, %v2754_v8  ;;  %vm408_vm15 = vc.u32 %v406_v19, %v402_v56  ;;  %v381_v42 = vshrl.u32 %v376_v26, 16 }
 0x12a   :  { %v2136_v11 = vsub.s32 32, %v2135_v38  ;;  %v2140_v48 = vsub.s32 4294967266, %v2135_v38  ;;  %v389_v0 = vadd.s32 %v387_v14, %v385_v61  ;;  %v2137_v7 = vshll.u32 %v2128_v1, %v2135_v38 }
 0x12b   :  { %v409_v20 = vsel %vm408_vm15, 1, %v2754_v8  ;;  %v118_v41 = vadd.f32 %v3352_v5, %v117_v4  ;;  %v2150_v34 = vsub.s32 4, %v3315_v59  ;;  %v359_v1 = vsel %vm355_vm2, %v3288_v60, %v358_v30 }
 0x12c   :  { %v2138_v3 = vshrl.u32 %v2120_v43, %v2136_v11  ;;  %v2141_v45 = vadd.s32 127, %v2140_v48  ;;  %v390_v35 = vadd.s32 %v389_v0, %v379_v6  ;;  %v411_v63 = vadd.s32 %v409_v20, %v407_v62 }
 0x12d   :  { %v403_v10 = vshrl.u32 %v398_v16, 16  ;;  %v3359_v25 = vmul.f32 30.0, %v118_v41  ;;  %vm2028_vm13 = vcmp.lt.s32.totalorder %v3145_v58, 0  ;;  %v410_v43 = vadd.s32 %v406_v19, %v402_v56 }
 0x12e   :  { %v2139_v36 = vor.u32 %v2138_v3, %v2137_v7  ;;  %v2142_v13 = vshll.u32 %v2141_v45, 23  ;;  %v391_v31 = vadd.s32 %v390_v35, %v381_v42  ;;  %v412_v15 = vadd.s32 %v411_v63, %v401_v50 }
 0x12f   :  { %v941_v39 = vand.u32 2147483647, %v3359_v25  ;;  %v944_v26 = vand.u32 2139095040, %v3359_v25  ;;  %v360_v23 = vsel %vm354_vm3, %v357_v47, %v359_v1  ;;  %v130_v16 = vadd.f32 %v3352_v5, %v129_v21 }
 0x130   :  { %v2143_v27 = vor.u32 4788187, %v2142_v13  ;;  %v413_v60 = vadd.s32 %v412_v15, %v403_v10  ;;  %v2151_v46 = vsel %vm2028_vm13, %v2150_v34, %v3315_v59  ;;  %vm416_vm0 = vc.u32 %v391_v31, %v410_v43 }
 0x131   :  { %v945_v30 = vshrl.u32 %v944_v26, 23  ;;  %v948_v18 = vand.u32 8388607, %v941_v39  ;;  %v2146_v29 = vcvt.s32.f32 %v2139_v36  ;;  %vm3374_vm1 = vcmp.le.f32.partialorder %v2026_v12, 0.7853982 }
 0x132   :  { %v2144_v33 = vand.u32 2147483647, %v2143_v27  ;;  %v417_v54 = vadd.s32 1, %v413_v60  ;;  %v414_v47 = vmul.u32 %v3305_v52, %v360_v23  ;;  %v2153_v59 = vsel %vm3374_vm1, 0, %v2151_v46 }
 0x133   :  { %v2698_v24 = vadd.s32 4294967169, %v945_v30  ;;  %v3381_v28 = vmul.f32 30.0, %v130_v16  ;;  %v949_v22 = vor.u32 8388608, %v948_v18  ;;  %v2170_v61 = vadd.s32 3, %v2153_v59 }
 0x134   :  { %v2147_v50 = vmul.f32 %v2146_v29, %v2144_v33  ;;  %v418_v9 = vsel %vm416_vm0, %v417_v54, %v413_v60  ;;  %vm323_vm3 = vcmp.lt.s32.totalorder %v3179_v32, 0  ;;  %v415_v3 = vadd.s32 %v410_v43, %v391_v31 }
 0x135   :  { %v419_v40 = vadd.s32 %v418_v9, %v414_v47  ;;  %v951_v56 = vadd.s32 1, %v2698_v24  ;;  %v1561_v52 = vand.u32 2147483647, %v3381_v28  ;;  %v3391_v11 = vshll.u32 %v949_v22, 8 }
 0x136   :  { %v2148_v19 = vxor.u32 2147483648, %v2147_v50  ;;  %v3396_v6 = vand.u32 3, %v2170_v61  ;;  %v1564_v42 = vand.u32 2139095040, %v3381_v28  ;;  %vm2169_vm9 = vweird.f32 %v3145_v58 }
 0x137   :  { %v420_v37 = vadd.s32 536870912, %v419_v40  ;;  %vm952_vm2 = vcmp.gt.s32.totalorder %v951_v56, 0  ;;  %v3401_v45 = vand.u32 8388607, %v1561_v52  ;;  %v3406_v34 = vand.u32 65535, %v3391_v11 }
 0x138   :  { %v2149_v12 = vsel %vm2028_vm13, %v2148_v19, %v2147_v50  ;;  %v953_v4 = vsel %vm952_vm2, %v951_v56, 0  ;;  %v3409_v1 = vshrl.u32 %v3391_v11, 16  ;;  %vm2176_vm5 = vcmp.eq.s32.totalorder %v3396_v6, 2 }
 0x139   :  { %v3389_v38 = vsel %vm3374_vm1, %v3145_v58, %v2149_v12  ;;  %v421_v14 = vshrl.u32 %v420_v37, 30  ;;  %v955_v62 = vand.u32 31, %v953_v4  ;;  %v3417_v23 = vshrl.u32 %v953_v4, 5 }
 0x13a   :  { %v2154_v48 = vmul.f32 %v3389_v38, %v3389_v38  ;;  %v1565_v17 = vshrl.u32 %v1564_v42, 23  ;;  %vm2173_vm6 = vcmp.eq.s32.totalorder %v3396_v6, 0  ;;  %vm2172_vm7 = vcmp.lt.s32.totalorder %v3396_v6, 2 }
 0x13b   :  { %v422_v0 = vshll.u32 %v421_v14, 30  ;;  %v956_v7 = vsub.s32 32, %v955_v62  ;;  %v445_v63 = vsub.s32 4, %v421_v14  ;;  %v958_v36 = vshll.u32 %v2748_v49, %v955_v62 }
 0x13c   :  { %v2155_v20 = vmul.f32 -0.001358992, %v2154_v48  ;;  %v2162_v41 = vmul.f32 -0.00019511016, %v2154_v48  ;;  %v961_v13 = vshll.u32 %v2749_v51, %v955_v62  ;;  %v964_v60 = vshll.u32 %v2750_v53, %v955_v62 }
 0x13d   :  { %v3403_v35 = vsub.s32 %v419_v40, %v422_v0  ;;  %v959_v15 = vshrl.u32 %v2749_v51, %v956_v7  ;;  %v962_v43 = vshrl.u32 %v2750_v53, %v956_v7  ;;  %v965_v46 = vshrl.u32 %v2751_v55, %v956_v7 }
 0x13e   :  { %v2156_v10 = vadd.f32 0.041655596, %v2155_v20  ;;  %v2163_v21 = vadd.f32 0.008332121, %v2162_v41  ;;  %v967_v30 = vshll.u32 %v2751_v55, %v955_v62  ;;  %v968_v18 = vshrl.u32 %v2752_v57, %v956_v7 }
 0x13f   :  { %vm424_vm4 = vcmp.lt.s32.totalorder %v3403_v35, 0  ;;  %v425_v31 = vsub.s32 0, %v3403_v35  ;;  %v3428_v47 = vsel %vm323_vm3, %v445_v63, %v421_v14  ;;  %v957_v24 = vshrl.u32 %v2748_v49, %v956_v7 }
 0x140   :  { %v2157_v26 = vmul.f32 %v2156_v10, %v2154_v48  ;;  %v2164_v27 = vmul.f32 %v2163_v21, %v2154_v48  ;;  %v960_v50 = vor.u32 %v959_v15, %v958_v36  ;;  %v963_v59 = vor.u32 %v962_v43, %v961_v13 }
 0x141   :  { %v426_v16 = vsel %vm424_vm4, %v425_v31, %v3403_v35  ;;  %v970_v56 = vshll.u32 %v2752_v57, %v955_v62  ;;  %v966_v19 = vor.u32 %v965_v46, %v964_v60  ;;  %v969_v61 = vor.u32 %v968_v18, %v967_v30 }
 0x142   :  { %v2158_v33 = vadd.f32 -0.4999988, %v2157_v26  ;;  %v2165_v29 = vadd.f32 -0.16666654, %v2164_v27  ;;  %v427_v54 = vclz %v426_v16  ;;  %v971_v37 = vshrl.u32 %v2753_v2, %v956_v7 }
 0x143   :  { %vm973_vm10 = vcmp.lt.s32.totalorder %v3417_v23, 1  ;;  %vm976_vm12 = vcmp.lt.s32.totalorder %v3417_v23, 4  ;;  %vm3439_vm14 = vcmp.le.f32.partialorder %v321_v44, 0.7853982  ;;  %vm974_vm15 = vcmp.lt.s32.totalorder %v3417_v23, 2 }
 0x144   :  { %v2159_v9 = vmul.f32 %v2158_v33, %v2154_v48  ;;  %v2166_v40 = vmul.f32 %v2165_v29, %v2154_v48  ;;  %v2687_v22 = vadd.s32 4294967294, %v427_v54  ;;  %v972_v48 = vor.u32 %v971_v37, %v970_v56 }
 0x145   :  { %vm975_vm13 = vcmp.lt.s32.totalorder %v3417_v23, 3  ;;  %v977_v20 = vsel %vm973_vm10, %v957_v24, %v960_v50  ;;  %v978_v44 = vsel %vm976_vm12, %v966_v19, 2102212464  ;;  %v981_v63 = vsel %vm973_vm10, %v960_v50, %v963_v59 }
 0x146   :  { %v2160_v12 = vadd.f32 1.0, %v2159_v9  ;;  %v2167_v4 = vadd.f32 1.0, %v2166_v40  ;;  %vm2688_vm11 = vcmp.lt.s32.totalorder %v2687_v22, 0  ;;  %v982_v10 = vsel %vm976_vm12, %v969_v61, 920167782 }
 0x147   :  { %v430_v62 = vsel %vm2688_vm11, 0, %v2687_v22  ;;  %v983_v15 = vsel %vm975_vm13, %v966_v19, %v982_v10  ;;  %v985_v43 = vsel %vm973_vm10, %v963_v59, %v966_v19  ;;  %v986_v26 = vsel %vm976_vm12, %v972_v48, 1326507024 }
 0x148   :  { %v2168_v0 = vmul.f32 %v2167_v4, %v3389_v38  ;;  %v2177_v7 = vxor.u32 2147483648, %v2160_v12  ;;  %v431_v42 = vsub.s32 32, %v430_v62  ;;  %v435_v41 = vsub.s32 4294967266, %v430_v62 }
 0x149   :  { %v432_v38 = vshll.u32 %v3403_v35, %v430_v62  ;;  %v984_v16 = vsel %vm974_vm15, %v981_v63, %v983_v15  ;;  %v979_v29 = vsel %vm975_vm13, %v963_v59, %v978_v44  ;;  %v1569_v40 = vor.u32 8388608, %v3401_v45 }
 0x14a   :  { %v2174_v21 = vxor.u32 2147483648, %v2168_v0  ;;  %v2178_v36 = vsel %vm2176_vm5, %v2177_v7, %v2168_v0  ;;  %v433_v13 = vshrl.u32 %v415_v3, %v431_v42  ;;  %v436_v31 = vadd.s32 127, %v435_v41 }
 0x14b   :  { %v987_v3 = vsel %vm975_vm13, %v969_v61, %v986_v26  ;;  %v1014_v18 = vand.u32 65535, %v984_v16  ;;  %v1015_v50 = vshrl.u32 %v984_v16, 16  ;;  %v448_v58 = vsel %vm3439_vm14, 0, %v3428_v47 }
 0x14c   :  { %v2175_v27 = vsel %vm2173_vm6, %v2160_v12, %v2174_v21  ;;  %v434_v60 = vor.u32 %v433_v13, %v432_v38  ;;  %v437_v46 = vshll.u32 %v436_v31, 23  ;;  %v988_v30 = vsel %vm974_vm15, %v985_v43, %v987_v3 }
 0x14d   :  { %v2179_v35 = vsel %vm2172_vm7, %v2175_v27, %v2178_v36  ;;  %v992_v54 = vand.u32 65535, %v988_v30  ;;  %v993_v24 = vshrl.u32 %v988_v30, 16  ;;  %v1018_v9 = vmul.u32 %v1014_v18, %v3409_v1 }
 0x14e   :  { %v2180_v33 = vsel %vm2169_vm9, nan, %v2179_v35  ;;  %v438_v6 = vor.u32 4788187, %v437_v46  ;;  %v2710_v56 = vadd.s32 4294967169, %v1565_v17  ;;  %v441_v61 = vcvt.s32.f32 %v434_v60 }
 0x14f   :  { %2659 = vst.msk [vmem:[%s4599_s3 + $0x60] sm:$0xff] %vm2646_vm8, %v2180_v33  ;;  %v995_v22 = vmul.u32 %v993_v24, %v3406_v34  ;;  %v996_v59 = vmul.u32 %v992_v54, %v3409_v1  ;;  %v3490_v37 = vsel %vm974_vm15, %v977_v20, %v979_v29  ;;  %v1017_v12 = vmul.u32 %v1015_v50, %v3406_v34 }
 0x150   :  { %v439_v19 = vand.u32 2147483647, %v438_v6  ;;  %v994_v4 = vmul.u32 %v992_v54, %v3406_v34  ;;  %v997_v62 = vmul.u32 %v993_v24, %v3409_v1  ;;  %v1016_v47 = vmul.u32 %v1014_v18, %v3406_v34 }
 0x151   :  { %v998_v48 = vshll.u32 %v995_v22, 16  ;;  %v1019_v7 = vmul.u32 %v1015_v50, %v3409_v1  ;;  %v1020_v42 = vshll.u32 %v1017_v12, 16  ;;  %v1022_v17 = vshll.u32 %v1018_v9, 16 }
 0x152   :  { %v442_v0 = vmul.f32 %v441_v61, %v439_v19  ;;  %v1000_v41 = vshll.u32 %v996_v59, 16  ;;  %v1571_v23 = vadd.s32 1, %v2710_v56  ;;  %v999_v31 = vshrl.u32 %v995_v22, 16 }
 0x153   :  { %vm1002_vm0 = vc.u32 %v994_v4, %v998_v48  ;;  %v1004_v44 = vadd.s32 %v998_v48, %v994_v4  ;;  %vm1024_vm1 = vc.u32 %v1016_v47, %v1020_v42  ;;  %v1026_v10 = vadd.s32 %v1020_v42, %v1016_v47 }
 0x154   :  { %v443_v20 = vxor.u32 2147483648, %v442_v0  ;;  %v1003_v63 = vsel %vm1002_vm0, 1, %v2754_v8  ;;  %v1025_v36 = vsel %vm1024_vm1, 1, %v2754_v8  ;;  %vm1572_vm4 = vcmp.gt.s32.totalorder %v1571_v23, 0 }
 0x155   :  { %v1005_v21 = vadd.s32 %v1003_v63, %v997_v62  ;;  %vm1006_vm2 = vc.u32 %v1004_v44, %v1000_v41  ;;  %v1027_v38 = vadd.s32 %v1025_v36, %v1019_v7  ;;  %vm1028_vm5 = vc.u32 %v1026_v10, %v1022_v17 }
 0x156   :  { %v444_v34 = vsel %vm323_vm3, %v443_v20, %v442_v0  ;;  %v1007_v1 = vsel %vm1006_vm2, 1, %v2754_v8  ;;  %v1029_v43 = vsel %vm1028_vm5, 1, %v2754_v8  ;;  %v1021_v27 = vshrl.u32 %v1017_v12, 16 }
 0x157   :  { %v447_v13 = vsel %vm3439_vm14, %v3179_v32, %v444_v34  ;;  %v1009_v15 = vadd.s32 %v1007_v1, %v1005_v21  ;;  %v1031_v60 = vadd.s32 %v1029_v43, %v1027_v38  ;;  %v1573_v16 = vsel %vm1572_vm4, %v1571_v23, 0 }
 0x158   :  { %v449_v26 = vmul.f32 %v447_v13, %v447_v13  ;;  %v465_v3 = vadd.s32 3, %v448_v58  ;;  %v1001_v35 = vshrl.u32 %v996_v59, 16  ;;  %v1575_v30 = vand.u32 31, %v1573_v16 }
 0x159   :  { %v1010_v46 = vadd.s32 %v1009_v15, %v999_v31  ;;  %v1023_v29 = vshrl.u32 %v1018_v9, 16  ;;  %v1032_v54 = vadd.s32 %v1031_v60, %v1021_v27  ;;  %v3508_v14 = vadd.s32 %v1026_v10, %v1022_v17 }
 0x15a   :  { %v450_v18 = vmul.f32 -0.001358992, %v449_v26  ;;  %v457_v33 = vmul.f32 -0.00019511016, %v449_v26  ;;  %v1034_v6 = vmul.u32 %v3391_v11, %v3490_v37  ;;  %v3512_v50 = vsub.s32 32, %v1575_v30 }
 0x15b   :  { %v3506_v24 = vadd.s32 %v1010_v46, %v1001_v35  ;;  %v1033_v19 = vadd.s32 %v1032_v54, %v1023_v29  ;;  %v3514_v58 = vshrl.u32 %v1573_v16, 5  ;;  %v1578_v9 = vshll.u32 %v2748_v49, %v1575_v30 }
 0x15c   :  { %v451_v22 = vadd.f32 0.041655596, %v450_v18  ;;  %v458_v56 = vadd.f32 0.008332121, %v457_v33  ;;  %v1579_v59 = vshrl.u32 %v2749_v51, %v3512_v50  ;;  %v1581_v61 = vshll.u32 %v2749_v51, %v1575_v30 }
 0x15d   :  { %vm1036_vm3 = vc.u32 %v3506_v24, %v3508_v14  ;;  %v1037_v11 = vadd.s32 1, %v1033_v19  ;;  %v1582_v37 = vshrl.u32 %v2750_v53, %v3512_v50  ;;  %v1584_v62 = vshll.u32 %v2750_v53, %v1575_v30 }
 0x15e   :  { %v452_v12 = vmul.f32 %v451_v22, %v449_v26  ;;  %v459_v4 = vmul.f32 %v458_v56, %v449_v26  ;;  %v1585_v48 = vshrl.u32 %v2751_v55, %v3512_v50  ;;  %v1587_v47 = vshll.u32 %v2751_v55, %v1575_v30 }
 0x15f   :  { %v1588_v0 = vshrl.u32 %v2752_v57, %v3512_v50  ;;  %v1038_v17 = vsel %vm1036_vm3, %v1037_v11, %v1033_v19  ;;  %v1580_v41 = vor.u32 %v1579_v59, %v1578_v9  ;;  %v3530_v23 = vor.u32 %v1582_v37, %v1581_v61 }
 0x160   :  { %v453_v7 = vadd.f32 -0.4999988, %v452_v12  ;;  %v460_v42 = vadd.f32 -0.16666654, %v459_v4  ;;  %v1039_v44 = vadd.s32 %v1038_v17, %v1034_v6  ;;  %v1586_v20 = vor.u32 %v1585_v48, %v1584_v62 }
 0x161   :  { %v1589_v63 = vor.u32 %v1588_v0, %v1587_v47  ;;  %v1590_v36 = vshll.u32 %v2752_v57, %v1575_v30  ;;  %v1591_v34 = vshrl.u32 %v2753_v2, %v3512_v50  ;;  %v466_v1 = vand.u32 3, %v465_v3 }
 0x162   :  { %v454_v10 = vmul.f32 %v453_v7, %v449_v26  ;;  %v461_v21 = vmul.f32 %v460_v42, %v449_v26  ;;  %v1040_v38 = vadd.s32 536870912, %v1039_v44  ;;  %v3537_v31 = vshll.u32 %v1569_v40, 8 }
 0x163   :  { %v1592_v27 = vor.u32 %v1591_v34, %v1590_v36  ;;  %vm1596_vm6 = vcmp.lt.s32.totalorder %v3514_v58, 4  ;;  %vm1593_vm7 = vcmp.lt.s32.totalorder %v3514_v58, 1  ;;  %vm1595_vm9 = vcmp.lt.s32.totalorder %v3514_v58, 3 }
 0x164   :  { %v455_v15 = vadd.f32 1.0, %v454_v10  ;;  %v462_v43 = vadd.f32 1.0, %v461_v21  ;;  %v3540_v60 = vshrl.u32 %v1040_v38, 30  ;;  %v1602_v26 = vsel %vm1596_vm6, %v1589_v63, 920167782 }
 0x165   :  { %v1601_v45 = vsel %vm1593_vm7, %v1580_v41, %v3530_v23  ;;  %v1603_v40 = vsel %vm1595_vm9, %v1586_v20, %v1602_v26  ;;  %vm464_vm10 = vweird.f32 %v3179_v32  ;;  %vm467_vm11 = vcmp.lt.s32.totalorder %v466_v1, 2 }
 0x166   :  { %v463_v16 = vmul.f32 %v462_v43, %v447_v13  ;;  %v472_v3 = vxor.u32 2147483648, %v455_v15  ;;  %vm468_vm12 = vcmp.eq.s32.totalorder %v466_v1, 0  ;;  %v1042_v35 = vshll.u32 %v3540_v60, 30 }
 0x167   :  { %vm1594_vm14 = vcmp.lt.s32.totalorder %v3514_v58, 2  ;;  %v1605_v13 = vsel %vm1593_vm7, %v3530_v23, %v1586_v20  ;;  %v1606_v30 = vsel %vm1596_vm6, %v1592_v27, 1326507024  ;;  %vm471_vm15 = vcmp.eq.s32.totalorder %v466_v1, 2 }
 0x168   :  { %v469_v46 = vxor.u32 2147483648, %v463_v16  ;;  %v1043_v18 = vsub.s32 %v1039_v44, %v1042_v35  ;;  %v1604_v33 = vsel %vm1594_vm14, %v1601_v45, %v1603_v40  ;;  %v1607_v29 = vsel %vm1595_vm9, %v1589_v63, %v1606_v30  ;;  %v141_v35 = vpop.f32.mrf.mxu3 }
 0x169   :  { %v473_v6 = vsel %vm471_vm15, %v472_v3, %v463_v16  ;;  %v1608_v22 = vsel %vm1594_vm14, %v1605_v13, %v1607_v29  ;;  %v1610_v56 = vand.u32 65535, %v3537_v31  ;;  %v1611_v59 = vshrl.u32 %v3537_v31, 16  ;;  %v108_v29 = vpop.f32.mrf.mxu0 }
 0x16a   :  { %v470_v54 = vsel %vm468_vm12, %v455_v15, %v469_v46  ;;  %vm1044_vm13 = vcmp.lt.s32.totalorder %v1043_v18, 0  ;;  %v1045_v9 = vsub.s32 0, %v1043_v18  ;;  %v1612_v12 = vand.u32 65535, %v1608_v22 }
 0x16b   :  { %v474_v19 = vsel %vm467_vm11, %v470_v54, %v473_v6  ;;  %v1613_v4 = vshrl.u32 %v1608_v22, 16  ;;  %v1634_v11 = vand.u32 65535, %v1604_v33  ;;  %v1577_v62 = vshrl.u32 %v2748_v49, %v3512_v50 }
 0x16c   :  { %v475_v61 = vsel %vm464_vm10, nan, %v474_v19  ;;  %v1046_v37 = vsel %vm1044_vm13, %v1045_v9, %v1043_v18  ;;  %v1635_v48 = vshrl.u32 %v1604_v33, 16  ;;  %v1616_v7 = vmul.u32 %v1612_v12, %v1611_v59 }
 0x16d   :  { %2648 = vst.msk [vmem:[%s4599_s3 + $0x8] sm:$0xff] %vm2646_vm8, %v475_v61  ;;  %v1047_v47 = vclz %v1046_v37  ;;  %v1615_v0 = vmul.u32 %v1613_v4, %v1610_v56  ;;  %v1035_v32 = vadd.s32 %v3508_v14, %v3506_v24  ;;  %v1065_v42 = vsub.s32 4, %v3540_v60 }
 0x16e   :  { %v1597_v17 = vsel %vm1593_vm7, %v1577_v62, %v1580_v41  ;;  %v1598_v44 = vsel %vm1596_vm6, %v1586_v20, 2102212464  ;;  %v1614_v10 = vmul.u32 %v1612_v12, %v1610_v56  ;;  %v1638_v36 = vmul.u32 %v1634_v11, %v1611_v59 }
 0x16f   :  { %v2699_v63 = vadd.s32 4294967294, %v1047_v47  ;;  %v1618_v21 = vshll.u32 %v1615_v0, 16  ;;  %v1617_v50 = vmul.u32 %v1613_v4, %v1611_v59  ;;  %v1619_v34 = vshrl.u32 %v1615_v0, 16 }
 0x170   :  { %v1636_v1 = vmul.u32 %v1634_v11, %v1610_v56  ;;  %v1637_v38 = vmul.u32 %v1635_v48, %v1610_v56  ;;  %v1620_v15 = vshll.u32 %v1616_v7, 16  ;;  %v1639_v27 = vmul.u32 %v1635_v48, %v1611_v59 }
 0x171   :  { %vm2700_vm0 = vcmp.lt.s32.totalorder %v2699_v63, 0  ;;  %vm1622_vm1 = vc.u32 %v1614_v10, %v1618_v21  ;;  %v1624_v24 = vadd.s32 %v1618_v21, %v1614_v10  ;;  %vm943_vm2 = vcmp.lt.s32.totalorder %v3359_v25, 0 }
 0x172   :  { %v1050_v14 = vsel %vm2700_vm0, 0, %v2699_v63  ;;  %v1623_v43 = vsel %vm1622_vm1, 1, %v2754_v8  ;;  %v1640_v41 = vshll.u32 %v1637_v38, 16  ;;  %v1642_v3 = vshll.u32 %v1638_v36, 16 }
 0x173   :  { %v1051_v20 = vsub.s32 32, %v1050_v14  ;;  %v1055_v26 = vsub.s32 4294967266, %v1050_v14  ;;  %v1625_v16 = vadd.s32 %v1623_v43, %v1617_v50  ;;  %v1052_v45 = vshll.u32 %v1043_v18, %v1050_v14 }
 0x174   :  { %vm1626_vm4 = vc.u32 %v1624_v24, %v1620_v15  ;;  %vm1644_vm5 = vc.u32 %v1636_v1, %v1640_v41  ;;  %v1646_v40 = vadd.s32 %v1640_v41, %v1636_v1  ;;  %v1621_v54 = vshrl.u32 %v1616_v7, 16 }
 0x175   :  { %v1053_v46 = vshrl.u32 %v1035_v32, %v1051_v20  ;;  %v1056_v13 = vadd.s32 127, %v1055_v26  ;;  %v1627_v30 = vsel %vm1626_vm4, 1, %v2754_v8  ;;  %v1645_v33 = vsel %vm1644_vm5, 1, %v2754_v8 }
 0x176   :  { %v1629_v6 = vadd.s32 %v1627_v30, %v1625_v16  ;;  %v1647_v22 = vadd.s32 %v1645_v33, %v1639_v27  ;;  %vm1648_vm3 = vc.u32 %v1646_v40, %v1642_v3  ;;  %v142_v18 = vadd.f32 %v3352_v5, %v141_v35 }
 0x177   :  { %v1054_v56 = vor.u32 %v1053_v46, %v1052_v45  ;;  %v1057_v19 = vshll.u32 %v1056_v13, 23  ;;  %v1649_v9 = vsel %vm1648_vm3, 1, %v2754_v8  ;;  %v1641_v61 = vshrl.u32 %v1637_v38, 16 }
 0x178   :  { %v1630_v59 = vadd.s32 %v1629_v6, %v1619_v34  ;;  %v1651_v12 = vadd.s32 %v1649_v9, %v1647_v22  ;;  %v109_v4 = vadd.f32 %v3352_v5, %v108_v29  ;;  %v1599_v37 = vsel %vm1595_vm9, %v3530_v23, %v1598_v44 }
 0x179   :  { %v1058_v11 = vor.u32 4788187, %v1057_v19  ;;  %v1643_v62 = vshrl.u32 %v1638_v36, 16  ;;  %v3592_v48 = vmul.f32 30.0, %v142_v18  ;;  %v1650_v0 = vadd.s32 %v1646_v40, %v1642_v3 }
 0x17a   :  { %v1631_v47 = vadd.s32 %v1630_v59, %v1621_v54  ;;  %v1652_v7 = vadd.s32 %v1651_v12, %v1641_v61  ;;  %v3594_v32 = vmul.f32 30.0, %v109_v4  ;;  %v1061_v10 = vcvt.s32.f32 %v1054_v56 }
 0x17b   :  { %v1059_v63 = vand.u32 2147483647, %v1058_v11  ;;  %v2181_v21 = vand.u32 2147483647, %v3592_v48  ;;  %v2184_v50 = vand.u32 2139095040, %v3592_v48  ;;  %v1066_v5 = vsel %vm943_vm2, %v1065_v42, %v3540_v60 }
 0x17c   :  { %v1600_v23 = vsel %vm1594_vm14, %v1597_v17, %v1599_v37  ;;  %v1653_v44 = vadd.s32 %v1652_v7, %v1643_v62  ;;  %vm1656_vm6 = vc.u32 %v1631_v47, %v1650_v0  ;;  %vm942_vm7 = vcmp.le.f32.partialorder %v941_v39, 0.7853982 }
 0x17d   :  { %v1062_v36 = vmul.f32 %v1061_v10, %v1059_v63  ;;  %v2185_v34 = vshrl.u32 %v2184_v50, 23  ;;  %v2188_v1 = vand.u32 8388607, %v2181_v21  ;;  %v479_v15 = vand.u32 2139095040, %v3594_v32 }
 0x17e   :  { %v1657_v38 = vadd.s32 1, %v1653_v44  ;;  %v1068_v14 = vsel %vm942_vm7, 0, %v1066_v5  ;;  %v1654_v60 = vmul.u32 %v3537_v31, %v1600_v23  ;;  %v476_v31 = vand.u32 2147483647, %v3594_v32 }
 0x17f   :  { %v1063_v24 = vxor.u32 2147483648, %v1062_v36  ;;  %v2722_v42 = vadd.s32 4294967169, %v2185_v34  ;;  %v2189_v17 = vor.u32 8388608, %v2188_v1  ;;  %v1085_v26 = vadd.s32 3, %v1068_v14 }
 0x180   :  { %v1658_v58 = vsel %vm1656_vm6, %v1657_v38, %v1653_v44  ;;  %v480_v16 = vshrl.u32 %v479_v15, 23  ;;  %vm1563_vm10 = vcmp.lt.s32.totalorder %v3381_v28, 0  ;;  %v3618_v56 = vadd.s32 %v1650_v0, %v1631_v47 }
 0x181   :  { %v1064_v43 = vsel %vm943_vm2, %v1063_v24, %v1062_v36  ;;  %v1659_v27 = vadd.s32 %v1658_v58, %v1654_v60  ;;  %v2191_v41 = vadd.s32 1, %v2722_v42  ;;  %v3612_v40 = vshll.u32 %v2189_v17, 8 }
 0x182   :  { %v1067_v20 = vsel %vm942_vm7, %v3359_v25, %v1064_v43  ;;  %v3615_v30 = vand.u32 3, %v1085_v26  ;;  %v2689_v29 = vadd.s32 4294967169, %v480_v16  ;;  %v3625_v18 = vand.u32 8388607, %v476_v31 }
 0x183   :  { %v1069_v39 = vmul.f32 %v1067_v20, %v1067_v20  ;;  %v1660_v3 = vadd.s32 536870912, %v1659_v27  ;;  %vm2192_vm9 = vcmp.gt.s32.totalorder %v2191_v41, 0  ;;  %v3621_v9 = vand.u32 65535, %v3612_v40 }
 0x184   :  { %v2193_v45 = vsel %vm2192_vm9, %v2191_v41, 0  ;;  %v3630_v4 = vshrl.u32 %v3612_v40, 16  ;;  %vm1091_vm11 = vcmp.eq.s32.totalorder %v3615_v30, 2  ;;  %v3636_v47 = vadd.s32 1, %v2689_v29 }
 0x185   :  { %v1070_v35 = vmul.f32 -0.001358992, %v1069_v39  ;;  %v1077_v46 = vmul.f32 -0.00019511016, %v1069_v39  ;;  %v1661_v13 = vshrl.u32 %v1660_v3, 30  ;;  %v2195_v33 = vand.u32 31, %v2193_v45 }
 0x186   :  { %v3633_v37 = vshrl.u32 %v2193_v45, 5  ;;  %vm1088_vm14 = vcmp.eq.s32.totalorder %v3615_v30, 0  ;;  %vm1087_vm15 = vcmp.lt.s32.totalorder %v3615_v30, 2  ;;  %vm1084_vm13 = vweird.f32 %v3359_v25 }
 0x187   :  { %v1071_v54 = vadd.f32 0.041655596, %v1070_v35  ;;  %v1078_v6 = vadd.f32 0.008332121, %v1077_v46  ;;  %v1662_v22 = vshll.u32 %v1661_v13, 30  ;;  %v2196_v19 = vsub.s32 32, %v2195_v33 }
 0x188   :  { %v1685_v11 = vsub.s32 4, %v1661_v13  ;;  %v2198_v62 = vshll.u32 %v2748_v49, %v2195_v33  ;;  %v2201_v50 = vshll.u32 %v2749_v51, %v2195_v33  ;;  %v2204_v23 = vshll.u32 %v2750_v53, %v2195_v33 }
 0x189   :  { %v1072_v59 = vmul.f32 %v1071_v54, %v1069_v39  ;;  %v1079_v61 = vmul.f32 %v1078_v6, %v1069_v39  ;;  %v3627_v12 = vsub.s32 %v1659_v27, %v1662_v22  ;;  %v2199_v10 = vshrl.u32 %v2749_v51, %v2196_v19 }
 0x18a   :  { %v2202_v5 = vshrl.u32 %v2750_v53, %v2196_v19  ;;  %v2205_v1 = vshrl.u32 %v2751_v55, %v2196_v19  ;;  %v1686_v15 = vsel %vm1563_vm10, %v1685_v11, %v1661_v13  ;;  %v2197_v24 = vshrl.u32 %v2748_v49, %v2196_v19 }
 0x18b   :  { %v1073_v0 = vadd.f32 -0.4999988, %v1072_v59  ;;  %v1080_v7 = vadd.f32 -0.16666654, %v1079_v61  ;;  %vm1664_vm12 = vcmp.lt.s32.totalorder %v3627_v12, 0  ;;  %v1665_v63 = vsub.s32 0, %v3627_v12 }
 0x18c   :  { %v2208_v14 = vshrl.u32 %v2752_v57, %v2196_v19  ;;  %v2207_v58 = vshll.u32 %v2751_v55, %v2195_v33  ;;  %v2211_v17 = vshrl.u32 %v2753_v2, %v2196_v19  ;;  %vm3657_vm0 = vcmp.le.f32.partialorder %v1561_v52, 0.7853982 }
 0x18d   :  { %v1074_v44 = vmul.f32 %v1073_v0, %v1069_v39  ;;  %v1081_v36 = vmul.f32 %v1080_v7, %v1069_v39  ;;  %v1666_v34 = vsel %vm1664_vm12, %v1665_v63, %v3627_v12  ;;  %v2200_v41 = vor.u32 %v2199_v10, %v2198_v62 }
 0x18e   :  { %v1667_v38 = vclz %v1666_v34  ;;  %v2203_v26 = vor.u32 %v2202_v5, %v2201_v50  ;;  %v2210_v16 = vshll.u32 %v2752_v57, %v2195_v33  ;;  %v2206_v45 = vor.u32 %v2205_v1, %v2204_v23 }
 0x18f   :  { %v1075_v60 = vadd.f32 1.0, %v1074_v44  ;;  %v1082_v42 = vadd.f32 1.0, %v1081_v36  ;;  %v2209_v35 = vor.u32 %v2208_v14, %v2207_v58  ;;  %vm2213_vm2 = vcmp.lt.s32.totalorder %v3633_v37, 1 }
 0x190   :  { %v2711_v27 = vadd.s32 4294967294, %v1667_v38  ;;  %v2212_v46 = vor.u32 %v2211_v17, %v2210_v16  ;;  %vm2214_vm4 = vcmp.lt.s32.totalorder %v3633_v37, 2  ;;  %vm2215_vm5 = vcmp.lt.s32.totalorder %v3633_v37, 3 }
 0x191   :  { %v1083_v39 = vmul.f32 %v1082_v42, %v1067_v20  ;;  %v1092_v3 = vxor.u32 2147483648, %v1075_v60  ;;  %vm2216_vm3 = vcmp.lt.s32.totalorder %v3633_v37, 4  ;;  %v2221_v19 = vsel %vm2213_vm2, %v2200_v41, %v2203_v26 }
 0x192   :  { %vm2712_vm1 = vcmp.lt.s32.totalorder %v2711_v27, 0  ;;  %v2218_v22 = vsel %vm2216_vm3, %v2206_v45, 2102212464  ;;  %v2222_v59 = vsel %vm2216_vm3, %v2209_v35, 920167782  ;;  %v2217_v62 = vsel %vm2213_vm2, %v2197_v24, %v2200_v41 }
 0x193   :  { %v1089_v13 = vxor.u32 2147483648, %v1083_v39  ;;  %v1093_v52 = vsel %vm1091_vm11, %v1092_v3, %v1083_v39  ;;  %v1670_v29 = vsel %vm2712_vm1, 0, %v2711_v27  ;;  %v2219_v7 = vsel %vm2215_vm5, %v2203_v26, %v2218_v22 }
 0x194   :  { %v1671_v54 = vsub.s32 32, %v1670_v29  ;;  %v1672_v33 = vshll.u32 %v3627_v12, %v1670_v29  ;;  %v1675_v20 = vsub.s32 4294967266, %v1670_v29  ;;  %v2223_v63 = vsel %vm2215_vm5, %v2206_v45, %v2222_v59 }
 0x195   :  { %v1090_v6 = vsel %vm1088_vm14, %v1075_v60, %v1089_v13  ;;  %v2225_v10 = vsel %vm2213_vm2, %v2203_v26, %v2206_v45  ;;  %v2224_v25 = vsel %vm2214_vm4, %v2221_v19, %v2223_v63  ;;  %v2226_v50 = vsel %vm2216_vm3, %v2212_v46, 1326507024 }
 0x196   :  { %v1094_v61 = vsel %vm1087_vm15, %v1090_v6, %v1093_v52  ;;  %v1673_v12 = vshrl.u32 %v3618_v56, %v1671_v54  ;;  %v1676_v11 = vadd.s32 127, %v1675_v20  ;;  %v1688_v5 = vsel %vm3657_vm0, 0, %v1686_v15 }
 0x197   :  { %v1095_v0 = vsel %vm1084_vm13, nan, %v1094_v61  ;;  %v2227_v23 = vsel %vm2215_vm5, %v2209_v35, %v2226_v50  ;;  %v2254_v44 = vand.u32 65535, %v2224_v25  ;;  %v2255_v36 = vshrl.u32 %v2224_v25, 16 }
 0x198   :  { %2652 = vst.msk [vmem:[%s4599_s3 + $0x28] sm:$0xff] %vm2646_vm8, %v1095_v0  ;;  %v1674_v30 = vor.u32 %v1673_v12, %v1672_v33  ;;  %v1677_v56 = vshll.u32 %v1676_v11, 23  ;;  %v3704_v1 = vsel %vm2214_vm4, %v2217_v62, %v2219_v7  ;;  %v2228_v38 = vsel %vm2214_vm4, %v2225_v10, %v2227_v23 }
 0x199   :  { %vm487_vm6 = vcmp.gt.s32.totalorder %v3636_v47, 0  ;;  %v2232_v24 = vand.u32 65535, %v2228_v38  ;;  %v2233_v14 = vshrl.u32 %v2228_v38, 16  ;;  %v2257_v60 = vmul.u32 %v2255_v36, %v3621_v9 }
 0x19a   :  { %v1678_v34 = vor.u32 4788187, %v1677_v56  ;;  %v484_v15 = vor.u32 8388608, %v3625_v18  ;;  %v1681_v58 = vcvt.s32.f32 %v1674_v30  ;;  %v3711_v17 = vadd.s32 3, %v1688_v5 }
 0x19b   :  { %v2258_v27 = vmul.u32 %v2254_v44, %v3630_v4  ;;  %v2235_v41 = vmul.u32 %v2233_v14, %v3621_v9  ;;  %v2236_v26 = vmul.u32 %v2232_v24, %v3630_v4  ;;  %v2274_v37 = vmul.u32 %v3612_v40, %v3704_v1 }
 0x19c   :  { %v1679_v42 = vand.u32 2147483647, %v1678_v34  ;;  %v488_v16 = vsel %vm487_vm6, %v3636_v47, 0  ;;  %v2256_v3 = vmul.u32 %v2254_v44, %v3621_v9  ;;  %v2259_v45 = vmul.u32 %v2255_v36, %v3630_v4 }
 0x19d   :  { %v2260_v35 = vshll.u32 %v2257_v60, 16  ;;  %v2234_v46 = vmul.u32 %v2232_v24, %v3621_v9  ;;  %v2237_v13 = vmul.u32 %v2233_v14, %v3630_v4  ;;  %v2238_v52 = vshll.u32 %v2235_v41, 16 }
 0x19e   :  { %v1682_v39 = vmul.f32 %v1681_v58, %v1679_v42  ;;  %v2262_v29 = vshll.u32 %v2258_v27, 16  ;;  %v2240_v33 = vshll.u32 %v2236_v26, 16  ;;  %v490_v22 = vand.u32 31, %v488_v16 }
 0x19f   :  { %vm2264_vm7 = vc.u32 %v2256_v3, %v2260_v35  ;;  %v2266_v20 = vadd.s32 %v2260_v35, %v2256_v3  ;;  %vm2242_vm9 = vc.u32 %v2234_v46, %v2238_v52  ;;  %v2244_v6 = vadd.s32 %v2238_v52, %v2234_v46 }
 0x1a0   :  { %v1683_v54 = vxor.u32 2147483648, %v1682_v39  ;;  %v2265_v47 = vsel %vm2264_vm7, 1, %v2754_v8  ;;  %v2243_v59 = vsel %vm2242_vm9, 1, %v2754_v8  ;;  %v2261_v0 = vshrl.u32 %v2257_v60, 16 }
 0x1a1   :  { %v2267_v61 = vadd.s32 %v2265_v47, %v2259_v45  ;;  %vm2268_vm11 = vc.u32 %v2266_v20, %v2262_v29  ;;  %v2245_v4 = vadd.s32 %v2243_v59, %v2237_v13  ;;  %vm2246_vm12 = vc.u32 %v2244_v6, %v2240_v33 }
 0x1a2   :  { %v1684_v19 = vsel %vm1563_vm10, %v1683_v54, %v1682_v39  ;;  %v2269_v12 = vsel %vm2268_vm11, 1, %v2754_v8  ;;  %v2247_v62 = vsel %vm2246_vm12, 1, %v2754_v8  ;;  %v2239_v63 = vshrl.u32 %v2235_v41, 16 }
 0x1a3   :  { %v1687_v9 = vsel %vm3657_vm0, %v3381_v28, %v1684_v19  ;;  %v2271_v7 = vadd.s32 %v2269_v12, %v2267_v61  ;;  %v2241_v10 = vshrl.u32 %v2236_v26, 16  ;;  %v2249_v30 = vadd.s32 %v2247_v62, %v2245_v4 }
 0x1a4   :  { %v1689_v11 = vmul.f32 %v1687_v9, %v1687_v9  ;;  %v491_v56 = vsub.s32 32, %v490_v22  ;;  %v2263_v5 = vshrl.u32 %v2258_v27, 16  ;;  %v3732_v43 = vadd.s32 %v2266_v20, %v2262_v29 }
 0x1a5   :  { %v2272_v23 = vadd.s32 %v2271_v7, %v2261_v0  ;;  %v2250_v44 = vadd.s32 %v2249_v30, %v2239_v63  ;;  %v493_v36 = vshll.u32 %v2748_v49, %v490_v22  ;;  %v496_v34 = vshll.u32 %v2749_v51, %v490_v22 }
 0x1a6   :  { %v1690_v25 = vmul.f32 -0.001358992, %v1689_v11  ;;  %v1697_v50 = vmul.f32 -0.00019511016, %v1689_v11  ;;  %v499_v60 = vshll.u32 %v2750_v53, %v490_v22  ;;  %v494_v58 = vshrl.u32 %v2749_v51, %v491_v56 }
 0x1a7   :  { %v2273_v14 = vadd.s32 %v2272_v23, %v2263_v5  ;;  %v3737_v42 = vadd.s32 %v2250_v44, %v2241_v10  ;;  %v497_v41 = vshrl.u32 %v2750_v53, %v491_v56  ;;  %v502_v27 = vshll.u32 %v2751_v55, %v490_v22 }
 0x1a8   :  { %v1691_v38 = vadd.f32 0.041655596, %v1690_v25  ;;  %v1698_v24 = vadd.f32 0.008332121, %v1697_v50  ;;  %v500_v45 = vshrl.u32 %v2751_v55, %v491_v56  ;;  %v3745_v35 = vshrl.u32 %v488_v16, 5 }
 0x1a9   :  { %v2277_v3 = vadd.s32 1, %v2273_v14  ;;  %vm2276_vm10 = vc.u32 %v3737_v42, %v3732_v43  ;;  %v503_v46 = vshrl.u32 %v2752_v57, %v491_v56  ;;  %v505_v13 = vshll.u32 %v2752_v57, %v490_v22 }
 0x1aa   :  { %v1692_v26 = vmul.f32 %v1691_v38, %v1689_v11  ;;  %v1699_v39 = vmul.f32 %v1698_v24, %v1689_v11  ;;  %v506_v33 = vshrl.u32 %v2753_v2, %v491_v56  ;;  %v1706_v20 = vand.u32 3, %v3711_v17 }
 0x1ab   :  { %v2278_v54 = vsel %vm2276_vm10, %v2277_v3, %v2273_v14  ;;  %v495_v47 = vor.u32 %v494_v58, %v493_v36  ;;  %v504_v19 = vor.u32 %v503_v46, %v502_v27  ;;  %v498_v61 = vor.u32 %v497_v41, %v496_v34 }
 0x1ac   :  { %v1693_v52 = vadd.f32 -0.4999988, %v1692_v26  ;;  %v1700_v29 = vadd.f32 -0.16666654, %v1699_v39  ;;  %v2279_v6 = vadd.s32 %v2278_v54, %v2274_v37  ;;  %v501_v4 = vor.u32 %v500_v45, %v499_v60 }
 0x1ad   :  { %v507_v62 = vor.u32 %v506_v33, %v505_v13  ;;  %vm508_vm14 = vcmp.lt.s32.totalorder %v3745_v35, 1  ;;  %vm511_vm15 = vcmp.lt.s32.totalorder %v3745_v35, 4  ;;  %vm510_vm13 = vcmp.lt.s32.totalorder %v3745_v35, 3 }
 0x1ae   :  { %v1694_v59 = vmul.f32 %v1693_v52, %v1689_v11  ;;  %v1701_v16 = vmul.f32 %v1700_v29, %v1689_v11  ;;  %v2280_v12 = vadd.s32 536870912, %v2279_v6  ;;  %v517_v40 = vsel %vm511_vm15, %v504_v19, 920167782 }
 0x1af   :  { %vm1704_vm0 = vweird.f32 %v3381_v28  ;;  %vm1707_vm1 = vcmp.lt.s32.totalorder %v1706_v20, 2  ;;  %v516_v11 = vsel %vm508_vm14, %v495_v47, %v498_v61  ;;  %v520_v7 = vsel %vm508_vm14, %v498_v61, %v501_v4 }
 0x1b0   :  { %v1695_v22 = vadd.f32 1.0, %v1694_v59  ;;  %v1702_v0 = vadd.f32 1.0, %v1701_v16  ;;  %v3760_v1 = vshrl.u32 %v2280_v12, 30  ;;  %v518_v10 = vsel %vm510_vm13, %v501_v4, %v517_v40 }
 0x1b1   :  { %v521_v30 = vsel %vm511_vm15, %v507_v62, 1326507024  ;;  %v3773_v25 = vshll.u32 %v484_v15, 8  ;;  %vm1708_vm2 = vcmp.eq.s32.totalorder %v1706_v20, 0  ;;  %vm509_vm4 = vcmp.lt.s32.totalorder %v3745_v35, 2 }
 0x1b2   :  { %v1703_v17 = vmul.f32 %v1702_v0, %v1687_v9  ;;  %v1712_v37 = vxor.u32 2147483648, %v1695_v22  ;;  %v2282_v63 = vshll.u32 %v3760_v1, 30  ;;  %v522_v50 = vsel %vm510_vm13, %v504_v19, %v521_v30 }
 0x1b3   :  { %vm1711_vm5 = vcmp.eq.s32.totalorder %v1706_v20, 2  ;;  %v492_v23 = vshrl.u32 %v2748_v49, %v491_v56  ;;  %v523_v44 = vsel %vm509_vm4, %v520_v7, %v522_v50  ;;  %v519_v18 = vsel %vm509_vm4, %v516_v11, %v518_v10  ;;  %v120_v11 = vpop.f32.mrf.mxu1 }
 0x1b4   :  { %v1709_v9 = vxor.u32 2147483648, %v1703_v17  ;;  %v2283_v5 = vsub.s32 %v2279_v6, %v2282_v63  ;;  %v1713_v34 = vsel %vm1711_vm5, %v1712_v37, %v1703_v17  ;;  %v527_v15 = vand.u32 65535, %v523_v44 }
 0x1b5   :  { %v526_v14 = vshrl.u32 %v3773_v25, 16  ;;  %v513_v56 = vsel %vm511_vm15, %v501_v4, 2102212464  ;;  %v525_v58 = vand.u32 65535, %v3773_v25  ;;  %v528_v41 = vshrl.u32 %v523_v44, 16 }
 0x1b6   :  { %v1710_v36 = vsel %vm1708_vm2, %v1695_v22, %v1709_v9  ;;  %vm2284_vm3 = vcmp.lt.s32.totalorder %v2283_v5, 0  ;;  %v2285_v24 = vsub.s32 0, %v2283_v5  ;;  %v549_v39 = vand.u32 65535, %v519_v18  ;;  %v132_v9 = vpop.f32.mrf.mxu2 }
 0x1b7   :  { %v1714_v38 = vsel %vm1707_vm1, %v1710_v36, %v1713_v34  ;;  %v531_v26 = vmul.u32 %v527_v15, %v526_v14  ;;  %v550_v3 = vshrl.u32 %v519_v18, 16  ;;  %v530_v46 = vmul.u32 %v528_v41, %v525_v58 }
 0x1b8   :  { %v1715_v60 = vsel %vm1704_vm0, nan, %v1714_v38  ;;  %v2286_v27 = vsel %vm2284_vm3, %v2285_v24, %v2283_v5  ;;  %v2275_v28 = vadd.s32 %v3732_v43, %v3737_v42  ;;  %v512_v13 = vsel %vm508_vm14, %v492_v23, %v495_v47 }
 0x1b9   :  { %2656 = vst.msk [vmem:[%s4599_s3 + $0x48] sm:$0xff] %vm2646_vm8, %v1715_v60  ;;  %v2287_v45 = vclz %v2286_v27  ;;  %v514_v52 = vsel %vm510_vm13, %v498_v61, %v513_v56  ;;  %v529_v54 = vmul.u32 %v527_v15, %v525_v58  ;;  %v533_v33 = vshll.u32 %v530_v46, 16 }
 0x1ba   :  { %v552_v20 = vmul.u32 %v550_v3, %v525_v58  ;;  %v532_v6 = vmul.u32 %v528_v41, %v526_v14  ;;  %v535_v19 = vshll.u32 %v531_v26, 16  ;;  %v551_v59 = vmul.u32 %v549_v39, %v525_v58 }
 0x1bb   :  { %v2723_v29 = vadd.s32 4294967294, %v2287_v45  ;;  %v553_v16 = vmul.u32 %v549_v39, %v526_v14  ;;  %vm537_vm7 = vc.u32 %v529_v54, %v533_v33  ;;  %v539_v4 = vadd.s32 %v533_v33, %v529_v54 }
 0x1bc   :  { %v555_v12 = vshll.u32 %v552_v20, 16  ;;  %v536_v43 = vshrl.u32 %v531_v26, 16  ;;  %v538_v42 = vsel %vm537_vm7, 1, %v2754_v8  ;;  %v554_v47 = vmul.u32 %v550_v3, %v526_v14 }
 0x1bd   :  { %vm2724_vm6 = vcmp.lt.s32.totalorder %v2723_v29, 0  ;;  %v540_v61 = vadd.s32 %v538_v42, %v532_v6  ;;  %v557_v40 = vshll.u32 %v553_v16, 16  ;;  %vm541_vm9 = vc.u32 %v539_v4, %v535_v19 }
 0x1be   :  { %v2290_v62 = vsel %vm2724_vm6, 0, %v2723_v29  ;;  %vm559_vm11 = vc.u32 %v551_v59, %v555_v12  ;;  %v561_v37 = vadd.s32 %v555_v12, %v551_v59  ;;  %v542_v10 = vsel %vm541_vm9, 1, %v2754_v8 }
 0x1bf   :  { %v2291_v22 = vsub.s32 32, %v2290_v62  ;;  %v2295_v0 = vsub.s32 4294967266, %v2290_v62  ;;  %v2292_v17 = vshll.u32 %v2283_v5, %v2290_v62  ;;  %v560_v30 = vsel %vm559_vm11, 1, %v2754_v8  ;;  %v3807_v5 = vld [vmem:[%s4598_s2] ss:$0 sm:$0xff] }
 0x1c0   :  { %v534_v50 = vshrl.u32 %v530_v46, 16  ;;  %v544_v23 = vadd.s32 %v542_v10, %v540_v61  ;;  %v562_v44 = vadd.s32 %v560_v30, %v554_v47  ;;  %vm563_vm12 = vc.u32 %v561_v37, %v557_v40 }
 0x1c1   :  { %v2293_v7 = vshrl.u32 %v2275_v28, %v2291_v22  ;;  %v2296_v63 = vadd.s32 127, %v2295_v0  ;;  %v564_v18 = vsel %vm563_vm12, 1, %v2754_v8  ;;  %v121_v15 = vadd.f32 %v3807_v5, %v120_v11 }
 0x1c2   :  { %v545_v38 = vadd.s32 %v544_v23, %v534_v50  ;;  %v556_v24 = vshrl.u32 %v552_v20, 16  ;;  %v566_v14 = vadd.s32 %v564_v18, %v562_v44  ;;  %v133_v60 = vadd.f32 %v3807_v5, %v132_v9 }
 0x1c3   :  { %v2294_v36 = vor.u32 %v2293_v7, %v2292_v17  ;;  %v2297_v34 = vshll.u32 %v2296_v63, 23  ;;  %v2305_v58 = vsub.s32 4, %v3760_v1  ;;  %v558_v41 = vshrl.u32 %v553_v16, 16 }
 0x1c4   :  { %v3812_v27 = vmul.f32 30.0, %v121_v15  ;;  %v546_v26 = vadd.s32 %v545_v38, %v536_v43  ;;  %v565_v39 = vadd.s32 %v561_v37, %v557_v40  ;;  %v567_v3 = vadd.s32 %v566_v14, %v556_v24 }
 0x1c5   :  { %v2298_v56 = vor.u32 4788187, %v2297_v34  ;;  %v3814_v45 = vmul.f32 30.0, %v133_v60  ;;  %v2301_v28 = vcvt.s32.f32 %v2294_v36  ;;  %v515_v33 = vsel %vm509_vm4, %v512_v13, %v514_v52 }
 0x1c6   :  { %v1096_v29 = vand.u32 2147483647, %v3812_v27  ;;  %v1099_v54 = vand.u32 2139095040, %v3812_v27  ;;  %v568_v20 = vadd.s32 %v567_v3, %v558_v41  ;;  %vm2183_vm10 = vcmp.lt.s32.totalorder %v3592_v48, 0 }
 0x1c7   :  { %v2299_v46 = vand.u32 2147483647, %v2298_v56  ;;  %vm571_vm14 = vc.u32 %v546_v26, %v565_v39  ;;  %v2306_v59 = vsel %vm2183_vm10, %v2305_v58, %v3760_v1  ;;  %v1719_v12 = vand.u32 2139095040, %v3814_v45 }
 0x1c8   :  { %v1100_v19 = vshrl.u32 %v1099_v54, 23  ;;  %v572_v16 = vadd.s32 1, %v568_v20  ;;  %v1103_v4 = vand.u32 8388607, %v1096_v29  ;;  %v569_v43 = vmul.u32 %v3773_v25, %v515_v33 }
 0x1c9   :  { %v2302_v6 = vmul.f32 %v2301_v28, %v2299_v46  ;;  %vm2182_vm15 = vcmp.le.f32.partialorder %v2181_v21, 0.7853982  ;;  %v1720_v61 = vshrl.u32 %v1719_v12, 23  ;;  %vm478_vm0 = vcmp.lt.s32.totalorder %v3594_v32, 0 }
 0x1ca   :  { %v2701_v42 = vadd.s32 4294967169, %v1100_v19  ;;  %v573_v35 = vsel %vm571_vm14, %v572_v16, %v568_v20  ;;  %v2308_v52 = vsel %vm2182_vm15, 0, %v2306_v59  ;;  %v1104_v0 = vor.u32 8388608, %v1103_v4 }
 0x1cb   :  { %v2303_v62 = vxor.u32 2147483648, %v2302_v6  ;;  %v574_v47 = vadd.s32 %v573_v35, %v569_v43  ;;  %v2325_v37 = vadd.s32 3, %v2308_v52  ;;  %v2713_v21 = vadd.s32 4294967169, %v1720_v61 }
 0x1cc   :  { %v1106_v22 = vadd.s32 1, %v2701_v42  ;;  %v3829_v30 = vshll.u32 %v1104_v0, 8  ;;  %v570_v36 = vadd.s32 %v565_v39, %v546_v26  ;;  %v1716_v24 = vand.u32 2147483647, %v3814_v45 }
 0x1cd   :  { %v2304_v13 = vsel %vm2183_vm10, %v2303_v62, %v2302_v6  ;;  %v575_v17 = vadd.s32 536870912, %v574_v47  ;;  %v3831_v44 = vand.u32 3, %v2325_v37  ;;  %v3842_v58 = vadd.s32 1, %v2713_v21 }
 0x1ce   :  { %v2307_v1 = vsel %vm2182_vm15, %v3592_v48, %v2304_v13  ;;  %vm1107_vm13 = vcmp.gt.s32.totalorder %v1106_v22, 0  ;;  %v3840_v56 = vand.u32 65535, %v3829_v30  ;;  %vm2324_vm3 = vweird.f32 %v3592_v48 }
 0x1cf   :  { %v2309_v40 = vmul.f32 %v2307_v1, %v2307_v1  ;;  %v1108_v11 = vsel %vm1107_vm13, %v1106_v22, 0  ;;  %v576_v63 = vshrl.u32 %v575_v17, 30  ;;  %vm2328_vm2 = vcmp.eq.s32.totalorder %v3831_v44, 0 }
 0x1d0   :  { %v1110_v10 = vand.u32 31, %v1108_v11  ;;  %v3837_v60 = vshrl.u32 %v1108_v11, 5  ;;  %vm2331_vm4 = vcmp.eq.s32.totalorder %v3831_v44, 2  ;;  %vm2327_vm5 = vcmp.lt.s32.totalorder %v3831_v44, 2 }
 0x1d1   :  { %v2310_v7 = vmul.f32 -0.001358992, %v2309_v40  ;;  %v2317_v25 = vmul.f32 -0.00019511016, %v2309_v40  ;;  %v577_v23 = vshll.u32 %v576_v63, 30  ;;  %v600_v14 = vsub.s32 4, %v576_v63 }
 0x1d2   :  { %v1111_v34 = vsub.s32 32, %v1110_v10  ;;  %v1113_v39 = vshll.u32 %v2748_v49, %v1110_v10  ;;  %v1116_v28 = vshll.u32 %v2749_v51, %v1110_v10  ;;  %v1122_v19 = vshll.u32 %v2751_v55, %v1110_v10 }
 0x1d3   :  { %v2311_v9 = vadd.f32 0.041655596, %v2310_v7  ;;  %v2318_v50 = vadd.f32 0.008332121, %v2317_v25  ;;  %v3834_v38 = vsub.s32 %v574_v47, %v577_v23  ;;  %v1119_v16 = vshll.u32 %v2750_v53, %v1110_v10 }
 0x1d4   :  { %v1114_v46 = vshrl.u32 %v2749_v51, %v1111_v34  ;;  %v1117_v54 = vshrl.u32 %v2750_v53, %v1111_v34  ;;  %v1120_v4 = vshrl.u32 %v2751_v55, %v1111_v34  ;;  %v1123_v12 = vshrl.u32 %v2752_v57, %v1111_v34 }
 0x1d5   :  { %v2312_v18 = vmul.f32 %v2311_v9, %v2309_v40  ;;  %v2319_v15 = vmul.f32 %v2318_v50, %v2309_v40  ;;  %vm579_vm1 = vcmp.lt.s32.totalorder %v3834_v38, 0  ;;  %v580_v26 = vsub.s32 0, %v3834_v38 }
 0x1d6   :  { %v1125_v42 = vshll.u32 %v2752_v57, %v1110_v10  ;;  %v1126_v35 = vshrl.u32 %v2753_v2, %v1111_v34  ;;  %vm3863_vm6 = vcmp.le.f32.partialorder %v476_v31, 0.7853982  ;;  %v601_v47 = vsel %vm478_vm0, %v600_v14, %v576_v63 }
 0x1d7   :  { %v2313_v41 = vadd.f32 -0.4999988, %v2312_v18  ;;  %v2320_v3 = vadd.f32 -0.16666654, %v2319_v15  ;;  %v581_v6 = vsel %vm579_vm1, %v580_v26, %v3834_v38  ;;  %v1115_v22 = vor.u32 %v1114_v46, %v1113_v39 }
 0x1d8   :  { %v582_v59 = vclz %v581_v6  ;;  %v1146_v0 = vshrl.u32 %v3829_v30, 16  ;;  %v1118_v17 = vor.u32 %v1117_v54, %v1116_v28  ;;  %v1124_v37 = vor.u32 %v1123_v12, %v1122_v19 }
 0x1d9   :  { %v2314_v33 = vmul.f32 %v2313_v41, %v2309_v40  ;;  %v2321_v20 = vmul.f32 %v2320_v3, %v2309_v40  ;;  %v1112_v11 = vshrl.u32 %v2748_v49, %v1111_v34  ;;  %v1121_v7 = vor.u32 %v1120_v4, %v1119_v16 }
 0x1da   :  { %v2690_v52 = vadd.s32 4294967294, %v582_v59  ;;  %vm1128_vm9 = vcmp.lt.s32.totalorder %v3837_v60, 1  ;;  %vm1727_vm11 = vcmp.gt.s32.totalorder %v3842_v58, 0  ;;  %v1127_v10 = vor.u32 %v1126_v35, %v1125_v42 }
 0x1db   :  { %v2315_v62 = vadd.f32 1.0, %v2314_v33  ;;  %v2322_v43 = vadd.f32 1.0, %v2321_v20  ;;  %vm1131_vm12 = vcmp.lt.s32.totalorder %v3837_v60, 4  ;;  %vm1129_vm10 = vcmp.lt.s32.totalorder %v3837_v60, 2 }
 0x1dc   :  { %vm2691_vm7 = vcmp.lt.s32.totalorder %v2690_v52, 0  ;;  %vm1130_vm14 = vcmp.lt.s32.totalorder %v3837_v60, 3  ;;  %v1136_v50 = vsel %vm1128_vm9, %v1115_v22, %v1118_v17  ;;  %v1137_v23 = vsel %vm1131_vm12, %v1124_v37, 920167782 }
 0x1dd   :  { %v2323_v61 = vmul.f32 %v2322_v43, %v2307_v1  ;;  %v2332_v40 = vxor.u32 2147483648, %v2315_v62  ;;  %v585_v25 = vsel %vm2691_vm7, 0, %v2690_v52  ;;  %v1133_v3 = vsel %vm1131_vm12, %v1121_v7, 2102212464 }
 0x1de   :  { %v586_v63 = vsub.s32 32, %v585_v25  ;;  %v590_v21 = vsub.s32 4294967266, %v585_v25  ;;  %v587_v18 = vshll.u32 %v3834_v38, %v585_v25  ;;  %v1138_v26 = vsel %vm1130_vm14, %v1121_v7, %v1137_v23 }
 0x1df   :  { %v2329_v31 = vxor.u32 2147483648, %v2323_v61  ;;  %v2333_v9 = vsel %vm2331_vm4, %v2332_v40, %v2323_v61  ;;  %v1140_v39 = vsel %vm1128_vm9, %v1118_v17, %v1121_v7  ;;  %v1139_v48 = vsel %vm1129_vm10, %v1136_v50, %v1138_v26 }
 0x1e0   :  { %v588_v15 = vshrl.u32 %v570_v36, %v586_v63  ;;  %v591_v14 = vadd.s32 127, %v590_v21  ;;  %v1141_v38 = vsel %vm1131_vm12, %v1127_v10, 1326507024  ;;  %v603_v46 = vsel %vm3863_vm6, 0, %v601_v47 }
 0x1e1   :  { %v2330_v1 = vsel %vm2328_vm2, %v2315_v62, %v2329_v31  ;;  %v1142_v28 = vsel %vm1130_vm14, %v1124_v37, %v1141_v38  ;;  %v1169_v54 = vand.u32 65535, %v1139_v48  ;;  %v1170_v33 = vshrl.u32 %v1139_v48, 16 }
 0x1e2   :  { %v2334_v34 = vsel %vm2327_vm5, %v2330_v1, %v2333_v9  ;;  %v589_v44 = vor.u32 %v588_v15, %v587_v18  ;;  %v592_v36 = vshll.u32 %v591_v14, 23  ;;  %v1132_v6 = vsel %vm1128_vm9, %v1112_v11, %v1115_v22 }
 0x1e3   :  { %v2335_v41 = vsel %vm2324_vm3, nan, %v2334_v34  ;;  %v1134_v19 = vsel %vm1130_vm14, %v1118_v17, %v1133_v3  ;;  %v1143_v59 = vsel %vm1129_vm10, %v1140_v39, %v1142_v28  ;;  %v1172_v12 = vmul.u32 %v1170_v33, %v3840_v56 }
 0x1e4   :  { %2660 = vst.msk [vmem:[%s4599_s3 + $0x68] sm:$0xff] %vm2646_vm8, %v2335_v41  ;;  %v593_v20 = vor.u32 4788187, %v592_v36  ;;  %v1147_v16 = vand.u32 65535, %v1143_v59  ;;  %v1148_v4 = vshrl.u32 %v1143_v59, 16  ;;  %v596_v42 = vcvt.s32.f32 %v589_v44 }
 0x1e5   :  { %v3916_v62 = vand.u32 8388607, %v1716_v24  ;;  %v3918_v35 = vadd.s32 3, %v603_v46  ;;  %v1173_v52 = vmul.u32 %v1169_v54, %v1146_v0  ;;  %v3922_v47 = vsel %vm1129_vm10, %v1132_v6, %v1134_v19 }
 0x1e6   :  { %v594_v43 = vand.u32 2147483647, %v593_v20  ;;  %v1150_v22 = vmul.u32 %v1148_v4, %v3840_v56  ;;  %v1151_v61 = vmul.u32 %v1147_v16, %v1146_v0  ;;  %v1728_v40 = vsel %vm1727_vm11, %v3842_v58, 0 }
 0x1e7   :  { %v1171_v37 = vmul.u32 %v1169_v54, %v3840_v56  ;;  %v1174_v11 = vmul.u32 %v1170_v33, %v1146_v0  ;;  %v1175_v7 = vshll.u32 %v1172_v12, 16  ;;  %v1149_v31 = vmul.u32 %v1147_v16, %v3840_v56 }
 0x1e8   :  { %v597_v17 = vmul.f32 %v596_v42, %v594_v43  ;;  %v1152_v25 = vmul.u32 %v1148_v4, %v1146_v0  ;;  %v1153_v10 = vshll.u32 %v1150_v22, 16  ;;  %v1177_v63 = vshll.u32 %v1173_v52, 16 }
 0x1e9   :  { %v1155_v21 = vshll.u32 %v1151_v61, 16  ;;  %vm1179_vm15 = vc.u32 %v1171_v37, %v1175_v7  ;;  %v1181_v1 = vadd.s32 %v1175_v7, %v1171_v37  ;;  %v1730_v23 = vand.u32 31, %v1728_v40 }
 0x1ea   :  { %v598_v60 = vxor.u32 2147483648, %v597_v17  ;;  %vm1157_vm13 = vc.u32 %v1149_v31, %v1153_v10  ;;  %v1159_v9 = vadd.s32 %v1153_v10, %v1149_v31  ;;  %v1180_v50 = vsel %vm1179_vm15, 1, %v2754_v8 }
 0x1eb   :  { %v1158_v34 = vsel %vm1157_vm13, 1, %v2754_v8  ;;  %v1182_v18 = vadd.s32 %v1180_v50, %v1174_v11  ;;  %vm1183_vm1 = vc.u32 %v1181_v1, %v1177_v63  ;;  %v1176_v3 = vshrl.u32 %v1172_v12, 16 }
 0x1ec   :  { %v599_v58 = vsel %vm478_vm0, %v598_v60, %v597_v17  ;;  %v1160_v0 = vadd.s32 %v1158_v34, %v1152_v25  ;;  %vm1161_vm2 = vc.u32 %v1159_v9, %v1155_v21  ;;  %v1184_v15 = vsel %vm1183_vm1, 1, %v2754_v8 }
 0x1ed   :  { %v602_v56 = vsel %vm3863_vm6, %v3594_v32, %v599_v58  ;;  %v1162_v41 = vsel %vm1161_vm2, 1, %v2754_v8  ;;  %v1186_v26 = vadd.s32 %v1184_v15, %v1182_v18  ;;  %v1154_v39 = vshrl.u32 %v1150_v22, 16 }
 0x1ee   :  { %v604_v14 = vmul.f32 %v602_v56, %v602_v56  ;;  %v1164_v44 = vadd.s32 %v1162_v41, %v1160_v0  ;;  %v1189_v36 = vmul.u32 %v3829_v30, %v3922_v47  ;;  %v3941_v48 = vsub.s32 32, %v1730_v23 }
 0x1ef   :  { %v1178_v13 = vshrl.u32 %v1173_v52, 16  ;;  %v1187_v28 = vadd.s32 %v1186_v26, %v1176_v3  ;;  %v1156_v54 = vshrl.u32 %v1151_v61, 16  ;;  %v3943_v20 = vadd.s32 %v1181_v1, %v1177_v63 }
 0x1f0   :  { %v605_v38 = vmul.f32 -0.001358992, %v604_v14  ;;  %v612_v46 = vmul.f32 -0.00019511016, %v604_v14  ;;  %v1165_v33 = vadd.s32 %v1164_v44, %v1154_v39  ;;  %v3945_v6 = vshrl.u32 %v1728_v40, 5 }
 0x1f1   :  { %v1188_v16 = vadd.s32 %v1187_v28, %v1178_v13  ;;  %v1733_v4 = vshll.u32 %v2748_v49, %v1730_v23  ;;  %v1734_v30 = vshrl.u32 %v2749_v51, %v3941_v48  ;;  %v1736_v43 = vshll.u32 %v2749_v51, %v1730_v23 }
 0x1f2   :  { %v606_v19 = vadd.f32 0.041655596, %v605_v38  ;;  %v613_v59 = vadd.f32 0.008332121, %v612_v46  ;;  %v3948_v12 = vadd.s32 %v1165_v33, %v1156_v54  ;;  %v1737_v42 = vshrl.u32 %v2750_v53, %v3941_v48 }
 0x1f3   :  { %v1192_v22 = vadd.s32 1, %v1188_v16  ;;  %v1740_v61 = vshrl.u32 %v2751_v55, %v3941_v48  ;;  %v1739_v40 = vshll.u32 %v2750_v53, %v1730_v23  ;;  %v1742_v17 = vshll.u32 %v2751_v55, %v1730_v23 }
 0x1f4   :  { %v607_v52 = vmul.f32 %v606_v19, %v604_v14  ;;  %v614_v47 = vmul.f32 %v613_v59, %v604_v14  ;;  %vm1191_vm0 = vc.u32 %v3948_v12, %v3943_v20  ;;  %v1743_v37 = vshrl.u32 %v2752_v57, %v3941_v48 }
 0x1f5   :  { %v1193_v31 = vsel %vm1191_vm0, %v1192_v22, %v1188_v16  ;;  %v1746_v25 = vshrl.u32 %v2753_v2, %v3941_v48  ;;  %v1735_v63 = vor.u32 %v1734_v30, %v1733_v4  ;;  %v1745_v21 = vshll.u32 %v2752_v57, %v1730_v23 }
 0x1f6   :  { %v608_v11 = vadd.f32 -0.4999988, %v607_v52  ;;  %v615_v7 = vadd.f32 -0.16666654, %v614_v47  ;;  %v1194_v10 = vadd.s32 %v1193_v31, %v1189_v36  ;;  %v1744_v60 = vor.u32 %v1743_v37, %v1742_v17 }
 0x1f7   :  { %v3966_v50 = vor.u32 %v1737_v42, %v1736_v43  ;;  %v1741_v58 = vor.u32 %v1740_v61, %v1739_v40  ;;  %v1724_v18 = vor.u32 8388608, %v3916_v62  ;;  %v1747_v0 = vor.u32 %v1746_v25, %v1745_v21 }
 0x1f8   :  { %v609_v1 = vmul.f32 %v608_v11, %v604_v14  ;;  %v616_v9 = vmul.f32 %v615_v7, %v604_v14  ;;  %v1195_v34 = vadd.s32 536870912, %v1194_v10  ;;  %vm1751_vm4 = vcmp.lt.s32.totalorder %v3945_v6, 4 }
 0x1f9   :  { %v621_v3 = vand.u32 3, %v3918_v35  ;;  %v1757_v26 = vsel %vm1751_vm4, %v1744_v60, 920167782  ;;  %vm619_vm5 = vweird.f32 %v3594_v32  ;;  %vm1748_vm3 = vcmp.lt.s32.totalorder %v3945_v6, 1 }
 0x1fa   :  { %v610_v15 = vadd.f32 1.0, %v609_v1  ;;  %v617_v41 = vadd.f32 1.0, %v616_v9  ;;  %v3974_v23 = vshrl.u32 %v1195_v34, 30  ;;  %vm1750_vm6 = vcmp.lt.s32.totalorder %v3945_v6, 3 }
 0x1fb   :  { %v1756_v39 = vsel %vm1748_vm3, %v1735_v63, %v3966_v50  ;;  %v1760_v35 = vsel %vm1748_vm3, %v3966_v50, %v1741_v58  ;;  %v1758_v36 = vsel %vm1750_vm6, %v1741_v58, %v1757_v26  ;;  %v1761_v38 = vsel %vm1751_vm4, %v1747_v0, 1326507024 }
 0x1fc   :  { %v618_v14 = vmul.f32 %v617_v41, %v602_v56  ;;  %v627_v62 = vxor.u32 2147483648, %v610_v15  ;;  %v1197_v44 = vshll.u32 %v3974_v23, 30  ;;  %v3989_v46 = vshll.u32 %v1724_v18, 8 }
 0x1fd   :  { %vm622_vm7 = vcmp.lt.s32.totalorder %v621_v3, 2  ;;  %vm1749_vm9 = vcmp.lt.s32.totalorder %v3945_v6, 2  ;;  %v1762_v13 = vsel %vm1750_vm6, %v1744_v60, %v1761_v38  ;;  %vm623_vm11 = vcmp.eq.s32.totalorder %v621_v3, 0 }
 0x1fe   :  { %v624_v56 = vxor.u32 2147483648, %v618_v14  ;;  %vm626_vm12 = vcmp.eq.s32.totalorder %v621_v3, 2  ;;  %v1198_v28 = vsub.s32 %v1194_v10, %v1197_v44  ;;  %v1763_v54 = vsel %vm1749_vm9, %v1760_v35, %v1762_v13  ;;  %v144_v44 = vpop.f32.mrf.mxu3 }
 0x1ff   :  { %v628_v19 = vsel %vm626_vm12, %v627_v62, %v618_v14  ;;  %v1759_v59 = vsel %vm1749_vm9, %v1756_v39, %v1758_v36  ;;  %v1767_v16 = vand.u32 65535, %v1763_v54  ;;  %v1766_v43 = vshrl.u32 %v3989_v46, 16 }
 0x200   :  { %v625_v33 = vsel %vm623_vm11, %v610_v15, %v624_v56  ;;  %vm1199_vm10 = vcmp.lt.s32.totalorder %v1198_v28, 0  ;;  %v1200_v30 = vsub.s32 0, %v1198_v28  ;;  %v1732_v52 = vshrl.u32 %v2748_v49, %v3941_v48 }
 0x201   :  { %v629_v4 = vsel %vm622_vm7, %v625_v33, %v628_v19  ;;  %v1765_v47 = vand.u32 65535, %v3989_v46  ;;  %v1768_v22 = vshrl.u32 %v1763_v54, 16  ;;  %v1771_v40 = vmul.u32 %v1767_v16, %v1766_v43  ;;  %v111_v54 = vpop.f32.mrf.mxu0 }
 0x202   :  { %v630_v42 = vsel %vm619_vm5, nan, %v629_v4  ;;  %v1201_v61 = vsel %vm1199_vm10, %v1200_v30, %v1198_v28  ;;  %v1789_v17 = vand.u32 65535, %v1759_v59  ;;  %v1790_v37 = vshrl.u32 %v1759_v59, 16 }
 0x203   :  { %2649 = vst.msk [vmem:[%s4599_s3 + $0x10] sm:$0xff] %vm2646_vm8, %v630_v42  ;;  %v1202_v11 = vclz %v1201_v61  ;;  %v1770_v7 = vmul.u32 %v1768_v22, %v1765_v47  ;;  %v1190_v32 = vadd.s32 %v3943_v20, %v3948_v12  ;;  %v1220_v31 = vsub.s32 4, %v3974_v23 }
 0x204   :  { %v1752_v48 = vsel %vm1748_vm3, %v1732_v52, %v1735_v63  ;;  %v1753_v25 = vsel %vm1751_vm4, %v1741_v58, 2102212464  ;;  %v1769_v60 = vmul.u32 %v1767_v16, %v1765_v47  ;;  %v1792_v1 = vmul.u32 %v1790_v37, %v1765_v47 }
 0x205   :  { %v2702_v10 = vadd.s32 4294967294, %v1202_v11  ;;  %v1773_v21 = vshll.u32 %v1770_v7, 16  ;;  %v1772_v9 = vmul.u32 %v1768_v22, %v1766_v43  ;;  %v1775_v34 = vshll.u32 %v1771_v40, 16 }
 0x206   :  { %v1791_v18 = vmul.u32 %v1789_v17, %v1765_v47  ;;  %v1793_v0 = vmul.u32 %v1789_v17, %v1766_v43  ;;  %v1795_v20 = vshll.u32 %v1792_v1, 16  ;;  %v1776_v41 = vshrl.u32 %v1771_v40, 16 }
 0x207   :  { %vm2703_vm14 = vcmp.lt.s32.totalorder %v2702_v10, 0  ;;  %vm1777_vm15 = vc.u32 %v1769_v60, %v1773_v21  ;;  %v1779_v15 = vadd.s32 %v1773_v21, %v1769_v60  ;;  %v1794_v63 = vmul.u32 %v1790_v37, %v1766_v43 }
 0x208   :  { %v1205_v12 = vsel %vm2703_vm14, 0, %v2702_v10  ;;  %v1778_v3 = vsel %vm1777_vm15, 1, %v2754_v8  ;;  %vm1098_vm13 = vcmp.lt.s32.totalorder %v3812_v27, 0  ;;  %v1797_v62 = vshll.u32 %v1793_v0, 16 }
 0x209   :  { %v1206_v58 = vsub.s32 32, %v1205_v12  ;;  %v1210_v26 = vsub.s32 4294967266, %v1205_v12  ;;  %v1780_v14 = vadd.s32 %v1778_v3, %v1772_v9  ;;  %v1207_v39 = vshll.u32 %v1198_v28, %v1205_v12 }
 0x20a   :  { %vm1781_vm1 = vc.u32 %v1779_v15, %v1775_v34  ;;  %vm1799_vm2 = vc.u32 %v1791_v18, %v1795_v20  ;;  %v1801_v35 = vadd.s32 %v1795_v20, %v1791_v18  ;;  %v1774_v33 = vshrl.u32 %v1770_v7, 16 }
 0x20b   :  { %v1208_v36 = vshrl.u32 %v1190_v32, %v1206_v58  ;;  %v1211_v38 = vadd.s32 127, %v1210_v26  ;;  %v1782_v56 = vsel %vm1781_vm1, 1, %v2754_v8  ;;  %v1800_v13 = vsel %vm1799_vm2, 1, %v2754_v8 }
 0x20c   :  { %v1784_v19 = vadd.s32 %v1782_v56, %v1780_v14  ;;  %v1802_v59 = vadd.s32 %v1800_v13, %v1794_v63  ;;  %vm1803_vm0 = vc.u32 %v1801_v35, %v1797_v62  ;;  %v145_v28 = vadd.f32 %v3807_v5, %v144_v44 }
 0x20d   :  { %v1209_v16 = vor.u32 %v1208_v36, %v1207_v39  ;;  %v1212_v4 = vshll.u32 %v1211_v38, 23  ;;  %v1804_v30 = vsel %vm1803_vm0, 1, %v2754_v8  ;;  %v1796_v42 = vshrl.u32 %v1792_v1, 16 }
 0x20e   :  { %v1785_v43 = vadd.s32 %v1784_v19, %v1774_v33  ;;  %v1806_v52 = vadd.s32 %v1804_v30, %v1802_v59  ;;  %v112_v47 = vadd.f32 %v3807_v5, %v111_v54  ;;  %v1754_v61 = vsel %vm1750_vm6, %v3966_v50, %v1753_v25 }
 0x20f   :  { %v1213_v22 = vor.u32 4788187, %v1212_v4  ;;  %v1798_v40 = vshrl.u32 %v1793_v0, 16  ;;  %v4025_v17 = vmul.f32 30.0, %v145_v28  ;;  %v1805_v11 = vadd.s32 %v1801_v35, %v1797_v62 }
 0x210   :  { %v1786_v37 = vadd.s32 %v1785_v43, %v1776_v41  ;;  %v1807_v7 = vadd.s32 %v1806_v52, %v1796_v42  ;;  %v4027_v32 = vmul.f32 30.0, %v112_v47  ;;  %v1216_v60 = vcvt.s32.f32 %v1209_v16 }
 0x211   :  { %v1214_v10 = vand.u32 2147483647, %v1213_v22  ;;  %v2336_v21 = vand.u32 2147483647, %v4025_v17  ;;  %v2339_v1 = vand.u32 2139095040, %v4025_v17  ;;  %v1221_v5 = vsel %vm1098_vm13, %v1220_v31, %v3974_v23 }
 0x212   :  { %v1755_v50 = vsel %vm1749_vm9, %v1752_v48, %v1754_v61  ;;  %v1808_v25 = vadd.s32 %v1807_v7, %v1798_v40  ;;  %vm1811_vm4 = vc.u32 %v1786_v37, %v1805_v11  ;;  %vm1097_vm5 = vcmp.le.f32.partialorder %v1096_v29, 0.7853982 }
 0x213   :  { %v1217_v9 = vmul.f32 %v1216_v60, %v1214_v10  ;;  %v2340_v34 = vshrl.u32 %v2339_v1, 23  ;;  %v2343_v18 = vand.u32 8388607, %v2336_v21  ;;  %v634_v15 = vand.u32 2139095040, %v4027_v32 }
 0x214   :  { %v1812_v0 = vadd.s32 1, %v1808_v25  ;;  %v1223_v12 = vsel %vm1097_vm5, 0, %v1221_v5  ;;  %v1809_v23 = vmul.u32 %v3989_v46, %v1755_v50  ;;  %v631_v46 = vand.u32 2147483647, %v4027_v32 }
 0x215   :  { %v1218_v20 = vxor.u32 2147483648, %v1217_v9  ;;  %v2725_v31 = vadd.s32 4294967169, %v2340_v34  ;;  %v2344_v48 = vor.u32 8388608, %v2343_v18  ;;  %v1240_v26 = vadd.s32 3, %v1223_v12 }
 0x216   :  { %v1813_v6 = vsel %vm1811_vm4, %v1812_v0, %v1808_v25  ;;  %v635_v14 = vshrl.u32 %v634_v15, 23  ;;  %vm1718_vm6 = vcmp.lt.s32.totalorder %v3814_v45, 0  ;;  %v4051_v16 = vadd.s32 %v1805_v11, %v1786_v37 }
 0x217   :  { %v1219_v41 = vsel %vm1098_vm13, %v1218_v20, %v1217_v9  ;;  %v1814_v3 = vadd.s32 %v1813_v6, %v1809_v23  ;;  %v2346_v63 = vadd.s32 1, %v2725_v31  ;;  %v4045_v35 = vshll.u32 %v2344_v48, 8 }
 0x218   :  { %v1222_v58 = vsel %vm1097_vm5, %v3812_v27, %v1219_v41  ;;  %v4048_v56 = vand.u32 3, %v1240_v26  ;;  %v2692_v54 = vadd.s32 4294967169, %v635_v14  ;;  %v4058_v28 = vand.u32 8388607, %v631_v46 }
 0x219   :  { %v1224_v29 = vmul.f32 %v1222_v58, %v1222_v58  ;;  %v1815_v62 = vadd.s32 536870912, %v1814_v3  ;;  %vm2347_vm3 = vcmp.gt.s32.totalorder %v2346_v63, 0  ;;  %v4054_v30 = vand.u32 65535, %v4045_v35 }
 0x21a   :  { %v2348_v39 = vsel %vm2347_vm3, %v2346_v63, 0  ;;  %v4063_v47 = vshrl.u32 %v4045_v35, 16  ;;  %vm1246_vm7 = vcmp.eq.s32.totalorder %v4048_v56, 2  ;;  %v4069_v37 = vadd.s32 1, %v2692_v54 }
 0x21b   :  { %v1225_v44 = vmul.f32 -0.001358992, %v1224_v29  ;;  %v1232_v36 = vmul.f32 -0.00019511016, %v1224_v29  ;;  %v1816_v38 = vshrl.u32 %v1815_v62, 30  ;;  %v2350_v13 = vand.u32 31, %v2348_v39 }
 0x21c   :  { %v4066_v61 = vshrl.u32 %v2348_v39, 5  ;;  %vm1243_vm11 = vcmp.eq.s32.totalorder %v4048_v56, 0  ;;  %vm1242_vm12 = vcmp.lt.s32.totalorder %v4048_v56, 2  ;;  %vm1239_vm10 = vweird.f32 %v3812_v27 }
 0x21d   :  { %v1226_v33 = vadd.f32 0.041655596, %v1225_v44  ;;  %v1233_v19 = vadd.f32 0.008332121, %v1232_v36  ;;  %v1817_v59 = vshll.u32 %v1816_v38, 30  ;;  %v2351_v4 = vsub.s32 32, %v2350_v13 }
 0x21e   :  { %v1840_v22 = vsub.s32 4, %v1816_v38  ;;  %v2353_v40 = vshll.u32 %v2748_v49, %v2350_v13  ;;  %v2356_v1 = vshll.u32 %v2749_v51, %v2350_v13  ;;  %v2359_v50 = vshll.u32 %v2750_v53, %v2350_v13 }
 0x21f   :  { %v1227_v43 = vmul.f32 %v1226_v33, %v1224_v29  ;;  %v1234_v42 = vmul.f32 %v1233_v19, %v1224_v29  ;;  %v4060_v52 = vsub.s32 %v1814_v3, %v1817_v59  ;;  %v2354_v60 = vshrl.u32 %v2749_v51, %v2351_v4 }
 0x220   :  { %v2357_v5 = vshrl.u32 %v2750_v53, %v2351_v4  ;;  %v2360_v18 = vshrl.u32 %v2751_v55, %v2351_v4  ;;  %v1841_v15 = vsel %vm1718_vm6, %v1840_v22, %v1816_v38  ;;  %v2352_v20 = vshrl.u32 %v2748_v49, %v2351_v4 }
 0x221   :  { %v1228_v11 = vadd.f32 -0.4999988, %v1227_v43  ;;  %v1235_v7 = vadd.f32 -0.16666654, %v1234_v42  ;;  %vm1819_vm9 = vcmp.lt.s32.totalorder %v4060_v52, 0  ;;  %v1820_v10 = vsub.s32 0, %v4060_v52 }
 0x222   :  { %v2363_v12 = vshrl.u32 %v2752_v57, %v2351_v4  ;;  %v2362_v6 = vshll.u32 %v2751_v55, %v2350_v13  ;;  %v2366_v48 = vshrl.u32 %v2753_v2, %v2351_v4  ;;  %vm4090_vm14 = vcmp.le.f32.partialorder %v1716_v24, 0.7853982 }
 0x223   :  { %v1229_v25 = vmul.f32 %v1228_v11, %v1224_v29  ;;  %v1236_v9 = vmul.f32 %v1235_v7, %v1224_v29  ;;  %v1821_v34 = vsel %vm1819_vm9, %v1820_v10, %v4060_v52  ;;  %v2355_v63 = vor.u32 %v2354_v60, %v2353_v40 }
 0x224   :  { %v1822_v0 = vclz %v1821_v34  ;;  %v2358_v26 = vor.u32 %v2357_v5, %v2356_v1  ;;  %v2365_v14 = vshll.u32 %v2752_v57, %v2350_v13  ;;  %v2361_v39 = vor.u32 %v2360_v18, %v2359_v50 }
 0x225   :  { %v1230_v23 = vadd.f32 1.0, %v1229_v25  ;;  %v1237_v31 = vadd.f32 1.0, %v1236_v9  ;;  %v2364_v44 = vor.u32 %v2363_v12, %v2362_v6  ;;  %vm2368_vm13 = vcmp.lt.s32.totalorder %v4066_v61, 1 }
 0x226   :  { %v2714_v3 = vadd.s32 4294967294, %v1822_v0  ;;  %v2367_v36 = vor.u32 %v2366_v48, %v2365_v14  ;;  %vm2369_vm1 = vcmp.lt.s32.totalorder %v4066_v61, 2  ;;  %vm2370_vm2 = vcmp.lt.s32.totalorder %v4066_v61, 3 }
 0x227   :  { %v1238_v29 = vmul.f32 %v1237_v31, %v1222_v58  ;;  %v1247_v62 = vxor.u32 2147483648, %v1230_v23  ;;  %vm2371_vm0 = vcmp.lt.s32.totalorder %v4066_v61, 4  ;;  %v2376_v4 = vsel %vm2368_vm13, %v2355_v63, %v2358_v26 }
 0x228   :  { %vm2715_vm15 = vcmp.lt.s32.totalorder %v2714_v3, 0  ;;  %v2373_v59 = vsel %vm2371_vm0, %v2361_v39, 2102212464  ;;  %v2377_v43 = vsel %vm2371_vm0, %v2364_v44, 920167782  ;;  %v2372_v40 = vsel %vm2368_vm13, %v2352_v20, %v2355_v63 }
 0x229   :  { %v1244_v38 = vxor.u32 2147483648, %v1238_v29  ;;  %v1248_v24 = vsel %vm1246_vm7, %v1247_v62, %v1238_v29  ;;  %v1825_v54 = vsel %vm2715_vm15, 0, %v2714_v3  ;;  %v2374_v7 = vsel %vm2370_vm2, %v2358_v26, %v2373_v59 }
 0x22a   :  { %v1826_v33 = vsub.s32 32, %v1825_v54  ;;  %v1827_v13 = vshll.u32 %v4060_v52, %v1825_v54  ;;  %v1830_v58 = vsub.s32 4294967266, %v1825_v54  ;;  %v2378_v10 = vsel %vm2370_vm2, %v2361_v39, %v2377_v43 }
 0x22b   :  { %v1245_v19 = vsel %vm1243_vm11, %v1230_v23, %v1244_v38  ;;  %v2380_v60 = vsel %vm2368_vm13, %v2358_v26, %v2361_v39  ;;  %v2379_v27 = vsel %vm2369_vm1, %v2376_v4, %v2378_v10  ;;  %v2381_v1 = vsel %vm2371_vm0, %v2367_v36, 1326507024 }
 0x22c   :  { %v1249_v42 = vsel %vm1242_vm12, %v1245_v19, %v1248_v24  ;;  %v1828_v52 = vshrl.u32 %v4051_v16, %v1826_v33  ;;  %v1831_v22 = vadd.s32 127, %v1830_v58  ;;  %v1843_v5 = vsel %vm4090_vm14, 0, %v1841_v15 }
 0x22d   :  { %v1250_v11 = vsel %vm1239_vm10, nan, %v1249_v42  ;;  %v2382_v50 = vsel %vm2370_vm2, %v2364_v44, %v2381_v1  ;;  %v2409_v25 = vand.u32 65535, %v2379_v27  ;;  %v2410_v9 = vshrl.u32 %v2379_v27, 16 }
 0x22e   :  { %2653 = vst.msk [vmem:[%s4599_s3 + $0x30] sm:$0xff] %vm2646_vm8, %v1250_v11  ;;  %v1829_v56 = vor.u32 %v1828_v52, %v1827_v13  ;;  %v1832_v16 = vshll.u32 %v1831_v22, 23  ;;  %v4137_v18 = vsel %vm2369_vm1, %v2372_v40, %v2374_v7  ;;  %v2383_v0 = vsel %vm2369_vm1, %v2380_v60, %v2382_v50 }
 0x22f   :  { %vm642_vm4 = vcmp.gt.s32.totalorder %v4069_v37, 0  ;;  %v2387_v20 = vand.u32 65535, %v2383_v0  ;;  %v2388_v12 = vshrl.u32 %v2383_v0, 16  ;;  %v2412_v23 = vmul.u32 %v2410_v9, %v4054_v30 }
 0x230   :  { %v1833_v34 = vor.u32 4788187, %v1832_v16  ;;  %v639_v15 = vor.u32 8388608, %v4058_v28  ;;  %v1836_v6 = vcvt.s32.f32 %v1829_v56  ;;  %v4144_v48 = vadd.s32 3, %v1843_v5 }
 0x231   :  { %v2413_v3 = vmul.u32 %v2409_v25, %v4063_v47  ;;  %v2390_v63 = vmul.u32 %v2388_v12, %v4054_v30  ;;  %v2391_v26 = vmul.u32 %v2387_v20, %v4063_v47  ;;  %v2429_v61 = vmul.u32 %v4045_v35, %v4137_v18 }
 0x232   :  { %v1834_v31 = vand.u32 2147483647, %v1833_v34  ;;  %v643_v14 = vsel %vm642_vm4, %v4069_v37, 0  ;;  %v2411_v62 = vmul.u32 %v2409_v25, %v4054_v30  ;;  %v2414_v39 = vmul.u32 %v2410_v9, %v4063_v47 }
 0x233   :  { %v2415_v44 = vshll.u32 %v2412_v23, 16  ;;  %v2389_v36 = vmul.u32 %v2387_v20, %v4054_v30  ;;  %v2392_v38 = vmul.u32 %v2388_v12, %v4063_v47  ;;  %v2393_v24 = vshll.u32 %v2390_v63, 16 }
 0x234   :  { %v1837_v29 = vmul.f32 %v1836_v6, %v1834_v31  ;;  %v2417_v54 = vshll.u32 %v2413_v3, 16  ;;  %v2395_v13 = vshll.u32 %v2391_v26, 16  ;;  %v645_v59 = vand.u32 31, %v643_v14 }
 0x235   :  { %vm2419_vm5 = vc.u32 %v2411_v62, %v2415_v44  ;;  %v2421_v58 = vadd.s32 %v2415_v44, %v2411_v62  ;;  %vm2397_vm3 = vc.u32 %v2389_v36, %v2393_v24  ;;  %v2399_v19 = vadd.s32 %v2393_v24, %v2389_v36 }
 0x236   :  { %v1838_v33 = vxor.u32 2147483648, %v1837_v29  ;;  %v2420_v37 = vsel %vm2419_vm5, 1, %v2754_v8  ;;  %v2398_v43 = vsel %vm2397_vm3, 1, %v2754_v8  ;;  %v2416_v11 = vshrl.u32 %v2412_v23, 16 }
 0x237   :  { %v2422_v42 = vadd.s32 %v2420_v37, %v2414_v39  ;;  %vm2423_vm7 = vc.u32 %v2421_v58, %v2417_v54  ;;  %v2400_v47 = vadd.s32 %v2398_v43, %v2392_v38  ;;  %vm2401_vm9 = vc.u32 %v2399_v19, %v2395_v13 }
 0x238   :  { %v1839_v4 = vsel %vm1718_vm6, %v1838_v33, %v1837_v29  ;;  %v2424_v52 = vsel %vm2423_vm7, 1, %v2754_v8  ;;  %v2402_v40 = vsel %vm2401_vm9, 1, %v2754_v8  ;;  %v2394_v10 = vshrl.u32 %v2390_v63, 16 }
 0x239   :  { %v1842_v30 = vsel %vm4090_vm14, %v3814_v45, %v1839_v4  ;;  %v2426_v7 = vadd.s32 %v2424_v52, %v2422_v42  ;;  %v2396_v60 = vshrl.u32 %v2391_v26, 16  ;;  %v2404_v56 = vadd.s32 %v2402_v40, %v2400_v47 }
 0x23a   :  { %v1844_v22 = vmul.f32 %v1842_v30, %v1842_v30  ;;  %v646_v16 = vsub.s32 32, %v645_v59  ;;  %v2418_v5 = vshrl.u32 %v2413_v3, 16  ;;  %v4165_v41 = vadd.s32 %v2421_v58, %v2417_v54 }
 0x23b   :  { %v2427_v50 = vadd.s32 %v2426_v7, %v2416_v11  ;;  %v2405_v25 = vadd.s32 %v2404_v56, %v2394_v10  ;;  %v648_v9 = vshll.u32 %v2748_v49, %v645_v59  ;;  %v651_v34 = vshll.u32 %v2749_v51, %v645_v59 }
 0x23c   :  { %v1845_v27 = vmul.f32 -0.001358992, %v1844_v22  ;;  %v1852_v1 = vmul.f32 -0.00019511016, %v1844_v22  ;;  %v654_v23 = vshll.u32 %v2750_v53, %v645_v59  ;;  %v649_v6 = vshrl.u32 %v2749_v51, %v646_v16 }
 0x23d   :  { %v2428_v12 = vadd.s32 %v2427_v50, %v2418_v5  ;;  %v4170_v31 = vadd.s32 %v2405_v25, %v2396_v60  ;;  %v652_v63 = vshrl.u32 %v2750_v53, %v646_v16  ;;  %v657_v3 = vshll.u32 %v2751_v55, %v645_v59 }
 0x23e   :  { %v1846_v0 = vadd.f32 0.041655596, %v1845_v27  ;;  %v1853_v20 = vadd.f32 0.008332121, %v1852_v1  ;;  %v655_v39 = vshrl.u32 %v2751_v55, %v646_v16  ;;  %v4178_v44 = vshrl.u32 %v643_v14, 5 }
 0x23f   :  { %v2432_v62 = vadd.s32 1, %v2428_v12  ;;  %vm2431_vm6 = vc.u32 %v4170_v31, %v4165_v41  ;;  %v658_v36 = vshrl.u32 %v2752_v57, %v646_v16  ;;  %v660_v38 = vshll.u32 %v2752_v57, %v645_v59 }
 0x240   :  { %v1847_v26 = vmul.f32 %v1846_v0, %v1844_v22  ;;  %v1854_v29 = vmul.f32 %v1853_v20, %v1844_v22  ;;  %v661_v13 = vshrl.u32 %v2753_v2, %v646_v16  ;;  %v1861_v58 = vand.u32 3, %v4144_v48 }
 0x241   :  { %v2433_v33 = vsel %vm2431_vm6, %v2432_v62, %v2428_v12  ;;  %v650_v37 = vor.u32 %v649_v6, %v648_v9  ;;  %v659_v4 = vor.u32 %v658_v36, %v657_v3  ;;  %v653_v42 = vor.u32 %v652_v63, %v651_v34 }
 0x242   :  { %v1848_v24 = vadd.f32 -0.4999988, %v1847_v26  ;;  %v1855_v54 = vadd.f32 -0.16666654, %v1854_v29  ;;  %v2434_v19 = vadd.s32 %v2433_v33, %v2429_v61  ;;  %v656_v47 = vor.u32 %v655_v39, %v654_v23 }
 0x243   :  { %v662_v40 = vor.u32 %v661_v13, %v660_v38  ;;  %vm663_vm11 = vcmp.lt.s32.totalorder %v4178_v44, 1  ;;  %vm666_vm12 = vcmp.lt.s32.totalorder %v4178_v44, 4  ;;  %vm665_vm10 = vcmp.lt.s32.totalorder %v4178_v44, 3 }
 0x244   :  { %v1849_v43 = vmul.f32 %v1848_v24, %v1844_v22  ;;  %v1856_v14 = vmul.f32 %v1855_v54, %v1844_v22  ;;  %v2435_v52 = vadd.s32 536870912, %v2434_v19  ;;  %v672_v35 = vsel %vm666_vm12, %v659_v4, 920167782 }
 0x245   :  { %vm1859_vm14 = vweird.f32 %v3814_v45  ;;  %vm1862_vm15 = vcmp.lt.s32.totalorder %v1861_v58, 2  ;;  %v671_v22 = vsel %vm663_vm11, %v650_v37, %v653_v42  ;;  %v675_v7 = vsel %vm663_vm11, %v653_v42, %v656_v47 }
 0x246   :  { %v1850_v59 = vadd.f32 1.0, %v1849_v43  ;;  %v1857_v11 = vadd.f32 1.0, %v1856_v14  ;;  %v4193_v18 = vshrl.u32 %v2435_v52, 30  ;;  %v673_v60 = vsel %vm665_vm10, %v656_v47, %v672_v35 }
 0x247   :  { %v676_v56 = vsel %vm666_vm12, %v662_v40, 1326507024  ;;  %v4206_v27 = vshll.u32 %v639_v15, 8  ;;  %vm1863_vm13 = vcmp.eq.s32.totalorder %v1861_v58, 0  ;;  %vm664_vm1 = vcmp.lt.s32.totalorder %v4178_v44, 2 }
 0x248   :  { %v1858_v48 = vmul.f32 %v1857_v11, %v1842_v30  ;;  %v1867_v61 = vxor.u32 2147483648, %v1850_v59  ;;  %v2437_v10 = vshll.u32 %v4193_v18, 30  ;;  %v677_v1 = vsel %vm665_vm10, %v659_v4, %v676_v56 }
 0x249   :  { %vm1866_vm2 = vcmp.eq.s32.totalorder %v1861_v58, 2  ;;  %v647_v50 = vshrl.u32 %v2748_v49, %v646_v16  ;;  %v678_v25 = vsel %vm664_vm1, %v675_v7, %v677_v1  ;;  %v674_v28 = vsel %vm664_vm1, %v671_v22, %v673_v60  ;;  %v123_v22 = vpop.f32.mrf.mxu1 }
 0x24a   :  { %v1864_v30 = vxor.u32 2147483648, %v1858_v48  ;;  %v2438_v5 = vsub.s32 %v2434_v19, %v2437_v10  ;;  %v1868_v34 = vsel %vm1866_vm2, %v1867_v61, %v1858_v48  ;;  %v682_v15 = vand.u32 65535, %v678_v25 }
 0x24b   :  { %v681_v12 = vshrl.u32 %v4206_v27, 16  ;;  %v668_v16 = vsel %vm666_vm12, %v656_v47, 2102212464  ;;  %v680_v6 = vand.u32 65535, %v4206_v27  ;;  %v683_v63 = vshrl.u32 %v678_v25, 16 }
 0x24c   :  { %v1865_v9 = vsel %vm1863_vm13, %v1850_v59, %v1864_v30  ;;  %vm2439_vm0 = vcmp.lt.s32.totalorder %v2438_v5, 0  ;;  %v2440_v20 = vsub.s32 0, %v2438_v5  ;;  %v704_v29 = vand.u32 65535, %v674_v28  ;;  %v135_v30 = vpop.f32.mrf.mxu2 }
 0x24d   :  { %v1869_v0 = vsel %vm1862_vm15, %v1865_v9, %v1868_v34  ;;  %v686_v26 = vmul.u32 %v682_v15, %v681_v12  ;;  %v705_v62 = vshrl.u32 %v674_v28, 16  ;;  %v685_v36 = vmul.u32 %v683_v63, %v680_v6 }
 0x24e   :  { %v1870_v23 = vsel %vm1859_vm14, nan, %v1869_v0  ;;  %v2441_v3 = vsel %vm2439_vm0, %v2440_v20, %v2438_v5  ;;  %v2430_v45 = vadd.s32 %v4165_v41, %v4170_v31  ;;  %v667_v38 = vsel %vm663_vm11, %v647_v50, %v650_v37 }
 0x24f   :  { %2657 = vst.msk [vmem:[%s4599_s3 + $0x50] sm:$0xff] %vm2646_vm8, %v1870_v23  ;;  %v2442_v39 = vclz %v2441_v3  ;;  %v669_v24 = vsel %vm665_vm10, %v653_v42, %v668_v16  ;;  %v684_v33 = vmul.u32 %v682_v15, %v680_v6  ;;  %v688_v13 = vshll.u32 %v685_v36, 16 }
 0x250   :  { %v707_v58 = vmul.u32 %v705_v62, %v680_v6  ;;  %v687_v19 = vmul.u32 %v683_v63, %v681_v12  ;;  %v690_v4 = vshll.u32 %v686_v26, 16  ;;  %v706_v43 = vmul.u32 %v704_v29, %v680_v6 }
 0x251   :  { %v2726_v54 = vadd.s32 4294967294, %v2442_v39  ;;  %v708_v14 = vmul.u32 %v704_v29, %v681_v12  ;;  %vm692_vm5 = vc.u32 %v684_v33, %v688_v13  ;;  %v694_v47 = vadd.s32 %v688_v13, %v684_v33 }
 0x252   :  { %v710_v52 = vshll.u32 %v707_v58, 16  ;;  %v691_v41 = vshrl.u32 %v686_v26, 16  ;;  %v693_v31 = vsel %vm692_vm5, 1, %v2754_v8  ;;  %v709_v37 = vmul.u32 %v705_v62, %v681_v12 }
 0x253   :  { %vm2727_vm4 = vcmp.lt.s32.totalorder %v2726_v54, 0  ;;  %v695_v42 = vadd.s32 %v693_v31, %v687_v19  ;;  %v712_v35 = vshll.u32 %v708_v14, 16  ;;  %vm696_vm3 = vc.u32 %v694_v47, %v690_v4 }
 0x254   :  { %v2445_v40 = vsel %vm2727_vm4, 0, %v2726_v54  ;;  %vm714_vm7 = vc.u32 %v706_v43, %v710_v52  ;;  %v716_v61 = vadd.s32 %v710_v52, %v706_v43  ;;  %v697_v60 = vsel %vm696_vm3, 1, %v2754_v8 }
 0x255   :  { %v2446_v59 = vsub.s32 32, %v2445_v40  ;;  %v2450_v11 = vsub.s32 4294967266, %v2445_v40  ;;  %v2447_v48 = vshll.u32 %v2438_v5, %v2445_v40  ;;  %v715_v56 = vsel %vm714_vm7, 1, %v2754_v8  ;;  %v4240_v5 = vld [vmem:[%s4598_s2] ss:$0 sm:$0xff] }
 0x256   :  { %v689_v1 = vshrl.u32 %v685_v36, 16  ;;  %v699_v50 = vadd.s32 %v697_v60, %v695_v42  ;;  %v717_v25 = vadd.s32 %v715_v56, %v709_v37  ;;  %vm718_vm9 = vc.u32 %v716_v61, %v712_v35 }
 0x257   :  { %v2448_v7 = vshrl.u32 %v2430_v45, %v2446_v59  ;;  %v2451_v10 = vadd.s32 127, %v2450_v11  ;;  %v719_v28 = vsel %vm718_vm9, 1, %v2754_v8  ;;  %v124_v15 = vadd.f32 %v4240_v5, %v123_v22 }
 0x258   :  { %v700_v0 = vadd.s32 %v699_v50, %v689_v1  ;;  %v711_v20 = vshrl.u32 %v707_v58, 16  ;;  %v721_v12 = vadd.s32 %v719_v28, %v717_v25  ;;  %v136_v23 = vadd.f32 %v4240_v5, %v135_v30 }
 0x259   :  { %v2449_v9 = vor.u32 %v2448_v7, %v2447_v48  ;;  %v2452_v34 = vshll.u32 %v2451_v10, 23  ;;  %v2460_v6 = vsub.s32 4, %v4193_v18  ;;  %v713_v63 = vshrl.u32 %v708_v14, 16 }
 0x25a   :  { %v4245_v3 = vmul.f32 30.0, %v124_v15  ;;  %v701_v26 = vadd.s32 %v700_v0, %v691_v41  ;;  %v720_v29 = vadd.s32 %v716_v61, %v712_v35  ;;  %v722_v62 = vadd.s32 %v721_v12, %v711_v20 }
 0x25b   :  { %v2453_v16 = vor.u32 4788187, %v2452_v34  ;;  %v4247_v39 = vmul.f32 30.0, %v136_v23  ;;  %v2456_v45 = vcvt.s32.f32 %v2449_v9  ;;  %v670_v13 = vsel %vm664_vm1, %v667_v38, %v669_v24 }
 0x25c   :  { %v1251_v54 = vand.u32 2147483647, %v4245_v3  ;;  %v1254_v33 = vand.u32 2139095040, %v4245_v3  ;;  %v723_v58 = vadd.s32 %v722_v62, %v713_v63  ;;  %vm2338_vm6 = vcmp.lt.s32.totalorder %v4025_v17, 0 }
 0x25d   :  { %v2454_v36 = vand.u32 2147483647, %v2453_v16  ;;  %vm726_vm11 = vc.u32 %v701_v26, %v720_v29  ;;  %v2461_v43 = vsel %vm2338_vm6, %v2460_v6, %v4193_v18  ;;  %v1874_v52 = vand.u32 2139095040, %v4247_v39 }
 0x25e   :  { %v1255_v4 = vshrl.u32 %v1254_v33, 23  ;;  %v727_v14 = vadd.s32 1, %v723_v58  ;;  %v1258_v47 = vand.u32 8388607, %v1251_v54  ;;  %v724_v41 = vmul.u32 %v4206_v27, %v670_v13 }
 0x25f   :  { %v2457_v19 = vmul.f32 %v2456_v45, %v2454_v36  ;;  %vm2337_vm12 = vcmp.le.f32.partialorder %v2336_v21, 0.7853982  ;;  %v1875_v42 = vshrl.u32 %v1874_v52, 23  ;;  %v725_v15 = vadd.s32 %v720_v29, %v701_v26 }
 0x260   :  { %v2704_v31 = vadd.s32 4294967169, %v1255_v4  ;;  %v728_v44 = vsel %vm726_vm11, %v727_v14, %v723_v58  ;;  %v2463_v24 = vsel %vm2337_vm12, 0, %v2461_v43  ;;  %v1259_v11 = vor.u32 8388608, %v1258_v47 }
 0x261   :  { %v2458_v40 = vxor.u32 2147483648, %v2457_v19  ;;  %v729_v37 = vadd.s32 %v728_v44, %v724_v41  ;;  %v2480_v61 = vadd.s32 3, %v2463_v24  ;;  %v2716_v56 = vadd.s32 4294967169, %v1875_v42 }
 0x262   :  { %v1261_v59 = vadd.s32 1, %v2704_v31  ;;  %v4264_v21 = vshll.u32 %v1259_v11, 8  ;;  %v1871_v23 = vand.u32 2147483647, %v4247_v39  ;;  %vm2479_vm2 = vweird.f32 %v4025_v17 }
 0x263   :  { %v2459_v38 = vsel %vm2338_vm6, %v2458_v40, %v2457_v19  ;;  %v730_v48 = vadd.s32 536870912, %v729_v37  ;;  %v4267_v25 = vand.u32 3, %v2480_v61  ;;  %v4277_v16 = vadd.s32 1, %v2716_v56 }
 0x264   :  { %v2462_v18 = vsel %vm2337_vm12, %v4025_v17, %v2459_v38  ;;  %vm1262_vm10 = vcmp.gt.s32.totalorder %v1261_v59, 0  ;;  %v4274_v12 = vand.u32 65535, %v4264_v21  ;;  %vm633_vm0 = vcmp.lt.s32.totalorder %v4027_v32, 0 }
 0x265   :  { %v2464_v35 = vmul.f32 %v2462_v18, %v2462_v18  ;;  %v1263_v22 = vsel %vm1262_vm10, %v1261_v59, 0  ;;  %v4262_v10 = vshrl.u32 %v730_v48, 30  ;;  %vm2483_vm15 = vcmp.eq.s32.totalorder %v4267_v25, 0 }
 0x266   :  { %v1265_v60 = vand.u32 31, %v1263_v22  ;;  %v4271_v20 = vshrl.u32 %v1263_v22, 5  ;;  %vm2486_vm13 = vcmp.eq.s32.totalorder %v4267_v25, 2  ;;  %vm2482_vm1 = vcmp.lt.s32.totalorder %v4267_v25, 2 }
 0x267   :  { %v2465_v7 = vmul.f32 -0.001358992, %v2464_v35  ;;  %v2472_v27 = vmul.f32 -0.00019511016, %v2464_v35  ;;  %v732_v50 = vshll.u32 %v4262_v10, 30  ;;  %v755_v38 = vsub.s32 4, %v4262_v10 }
 0x268   :  { %v1266_v9 = vsub.s32 32, %v1265_v60  ;;  %v1268_v26 = vshll.u32 %v2748_v49, %v1265_v60  ;;  %v1271_v36 = vshll.u32 %v2749_v51, %v1265_v60  ;;  %v1277_v19 = vshll.u32 %v2751_v55, %v1265_v60 }
 0x269   :  { %v2466_v30 = vadd.f32 0.041655596, %v2465_v7  ;;  %v2473_v1 = vadd.f32 0.008332121, %v2472_v27  ;;  %v4269_v0 = vsub.s32 %v729_v37, %v732_v50  ;;  %v1274_v43 = vshll.u32 %v2750_v53, %v1265_v60 }
 0x26a   :  { %v1269_v29 = vshrl.u32 %v2749_v51, %v1266_v9  ;;  %v1272_v45 = vshrl.u32 %v2750_v53, %v1266_v9  ;;  %v1275_v14 = vshrl.u32 %v2751_v55, %v1266_v9  ;;  %v1278_v47 = vshrl.u32 %v2752_v57, %v1266_v9 }
 0x26b   :  { %v2467_v34 = vmul.f32 %v2466_v30, %v2464_v35  ;;  %v2474_v28 = vmul.f32 %v2473_v1, %v2464_v35  ;;  %vm734_vm14 = vcmp.lt.s32.totalorder %v4269_v0, 0  ;;  %v735_v62 = vsub.s32 0, %v4269_v0 }
 0x26c   :  { %v1280_v41 = vshll.u32 %v2752_v57, %v1265_v60  ;;  %v1281_v31 = vshrl.u32 %v2753_v2, %v1266_v9  ;;  %v1270_v24 = vor.u32 %v1269_v29, %v1268_v26  ;;  %v1301_v37 = vshrl.u32 %v4264_v21, 16 }
 0x26d   :  { %v2468_v6 = vadd.f32 -0.4999988, %v2467_v34  ;;  %v2475_v63 = vadd.f32 -0.16666654, %v2474_v28  ;;  %v736_v58 = vsel %vm734_vm14, %v735_v62, %v4269_v0  ;;  %v1273_v42 = vor.u32 %v1272_v45, %v1271_v36 }
 0x26e   :  { %v737_v4 = vclz %v736_v58  ;;  %v1267_v48 = vshrl.u32 %v2748_v49, %v1266_v9  ;;  %v1276_v61 = vor.u32 %v1275_v14, %v1274_v43  ;;  %vm1283_vm5 = vcmp.lt.s32.totalorder %v4271_v20, 1 }
 0x26f   :  { %v2469_v33 = vmul.f32 %v2468_v6, %v2464_v35  ;;  %v2476_v13 = vmul.f32 %v2475_v63, %v2464_v35  ;;  %v1279_v35 = vor.u32 %v1278_v47, %v1277_v19  ;;  %vm1882_vm3 = vcmp.gt.s32.totalorder %v4277_v16, 0 }
 0x270   :  { %v2693_v44 = vadd.s32 4294967294, %v737_v4  ;;  %vm4304_vm7 = vcmp.le.f32.partialorder %v631_v46, 0.7853982  ;;  %vm1286_vm9 = vcmp.lt.s32.totalorder %v4271_v20, 4  ;;  %vm1284_vm6 = vcmp.lt.s32.totalorder %v4271_v20, 2 }
 0x271   :  { %v2470_v52 = vadd.f32 1.0, %v2469_v33  ;;  %v2477_v40 = vadd.f32 1.0, %v2476_v13  ;;  %vm1285_vm11 = vcmp.lt.s32.totalorder %v4271_v20, 3  ;;  %v1291_v46 = vsel %vm1283_vm5, %v1270_v24, %v1273_v42 }
 0x272   :  { %vm2694_vm4 = vcmp.lt.s32.totalorder %v2693_v44, 0  ;;  %v1292_v50 = vsel %vm1286_vm9, %v1279_v35, 920167782  ;;  %v1288_v62 = vsel %vm1286_vm9, %v1276_v61, 2102212464  ;;  %v1295_v29 = vsel %vm1283_vm5, %v1273_v42, %v1276_v61 }
 0x273   :  { %v2478_v59 = vmul.f32 %v2477_v40, %v2462_v18  ;;  %v2487_v11 = vxor.u32 2147483648, %v2470_v52  ;;  %v740_v27 = vsel %vm2694_vm4, 0, %v2693_v44  ;;  %v1282_v18 = vor.u32 %v1281_v31, %v1280_v41 }
 0x274   :  { %v741_v60 = vsub.s32 32, %v740_v27  ;;  %v745_v56 = vsub.s32 4294967266, %v740_v27  ;;  %v742_v34 = vshll.u32 %v4269_v0, %v740_v27  ;;  %v1293_v26 = vsel %vm1285_vm11, %v1276_v61, %v1292_v50 }
 0x275   :  { %v2484_v22 = vxor.u32 2147483648, %v2478_v59  ;;  %v2488_v1 = vsel %vm2486_vm13, %v2487_v11, %v2478_v59  ;;  %v1294_v17 = vsel %vm1284_vm6, %v1291_v46, %v1293_v26  ;;  %v1296_v0 = vsel %vm1286_vm9, %v1282_v18, 1326507024 }
 0x276   :  { %v743_v28 = vshrl.u32 %v725_v15, %v741_v60  ;;  %v746_v6 = vadd.s32 127, %v745_v56  ;;  %v756_v36 = vsel %vm633_vm0, %v755_v38, %v4262_v10  ;;  %v1297_v45 = vsel %vm1285_vm11, %v1279_v35, %v1296_v0 }
 0x277   :  { %v2485_v30 = vsel %vm2483_vm15, %v2470_v52, %v2484_v22  ;;  %v1324_v33 = vand.u32 65535, %v1294_v17  ;;  %v1325_v13 = vshrl.u32 %v1294_v17, 16  ;;  %v1287_v19 = vsel %vm1283_vm5, %v1267_v48, %v1270_v24 }
 0x278   :  { %v2489_v9 = vsel %vm2482_vm1, %v2485_v30, %v2488_v1  ;;  %v744_v25 = vor.u32 %v743_v28, %v742_v34  ;;  %v747_v15 = vshll.u32 %v746_v6, 23  ;;  %v1289_v4 = vsel %vm1285_vm11, %v1273_v42, %v1288_v62 }
 0x279   :  { %v2490_v63 = vsel %vm2479_vm2, nan, %v2489_v9  ;;  %v1298_v43 = vsel %vm1284_vm6, %v1295_v29, %v1297_v45  ;;  %v1327_v52 = vmul.u32 %v1325_v13, %v4274_v12  ;;  %v4352_v10 = vand.u32 8388607, %v1871_v23 }
 0x27a   :  { %2661 = vst.msk [vmem:[%s4599_s3 + $0x70] sm:$0xff] %vm2646_vm8, %v2490_v63  ;;  %v748_v58 = vor.u32 4788187, %v747_v15  ;;  %v1302_v14 = vand.u32 65535, %v1298_v43  ;;  %v1303_v47 = vshrl.u32 %v1298_v43, 16  ;;  %v751_v41 = vcvt.s32.f32 %v744_v25 }
 0x27b   :  { %v758_v31 = vsel %vm4304_vm7, 0, %v756_v36  ;;  %v1328_v44 = vmul.u32 %v1324_v33, %v1301_v37  ;;  %v4358_v38 = vsel %vm1284_vm6, %v1287_v19, %v1289_v4  ;;  %v1883_v11 = vsel %vm1882_vm3, %v4277_v16, 0 }
 0x27c   :  { %v749_v40 = vand.u32 2147483647, %v748_v58  ;;  %v1305_v24 = vmul.u32 %v1303_v47, %v4274_v12  ;;  %v1306_v59 = vmul.u32 %v1302_v14, %v1301_v37  ;;  %v1326_v35 = vmul.u32 %v1324_v33, %v4274_v12 }
 0x27d   :  { %v1329_v48 = vmul.u32 %v1325_v13, %v1301_v37  ;;  %v1330_v61 = vshll.u32 %v1327_v52, 16  ;;  %v1304_v22 = vmul.u32 %v1302_v14, %v4274_v12  ;;  %v1307_v27 = vmul.u32 %v1303_v47, %v1301_v37 }
 0x27e   :  { %v752_v42 = vmul.f32 %v751_v41, %v749_v40  ;;  %v1308_v18 = vshll.u32 %v1305_v24, 16  ;;  %v1332_v60 = vshll.u32 %v1328_v44, 16  ;;  %v1310_v56 = vshll.u32 %v1306_v59, 16 }
 0x27f   :  { %vm1334_vm12 = vc.u32 %v1326_v35, %v1330_v61  ;;  %v1336_v30 = vadd.s32 %v1330_v61, %v1326_v35  ;;  %v1885_v50 = vand.u32 31, %v1883_v11  ;;  %v1331_v62 = vshrl.u32 %v1327_v52, 16 }
 0x280   :  { %v753_v20 = vxor.u32 2147483648, %v752_v42  ;;  %vm1312_vm10 = vc.u32 %v1304_v22, %v1308_v18  ;;  %v1314_v1 = vadd.s32 %v1308_v18, %v1304_v22  ;;  %v1335_v46 = vsel %vm1334_vm12, 1, %v2754_v8 }
 0x281   :  { %v1313_v9 = vsel %vm1312_vm10, 1, %v2754_v8  ;;  %v1337_v34 = vadd.s32 %v1335_v46, %v1329_v48  ;;  %vm1338_vm14 = vc.u32 %v1336_v30, %v1332_v60  ;;  %v775_v29 = vadd.s32 3, %v758_v31 }
 0x282   :  { %v754_v16 = vsel %vm633_vm0, %v753_v20, %v752_v42  ;;  %v1315_v37 = vadd.s32 %v1313_v9, %v1307_v27  ;;  %vm1316_vm15 = vc.u32 %v1314_v1, %v1310_v56  ;;  %v1339_v28 = vsel %vm1338_vm14, 1, %v2754_v8 }
 0x283   :  { %v757_v12 = vsel %vm4304_vm7, %v4027_v32, %v754_v16  ;;  %v1317_v63 = vsel %vm1316_vm15, 1, %v2754_v8  ;;  %v1341_v26 = vadd.s32 %v1339_v28, %v1337_v34  ;;  %v1309_v25 = vshrl.u32 %v1305_v24, 16 }
 0x284   :  { %v759_v6 = vmul.f32 %v757_v12, %v757_v12  ;;  %v1319_v15 = vadd.s32 %v1317_v63, %v1315_v37  ;;  %v4375_v17 = vsub.s32 32, %v1885_v50  ;;  %v1333_v45 = vshrl.u32 %v1328_v44, 16 }
 0x285   :  { %v1342_v33 = vadd.s32 %v1341_v26, %v1331_v62  ;;  %v1311_v7 = vshrl.u32 %v1306_v59, 16  ;;  %v1344_v58 = vmul.u32 %v4264_v21, %v4358_v38  ;;  %v4379_v19 = vshrl.u32 %v1883_v11, 5 }
 0x286   :  { %v760_v0 = vmul.f32 -0.001358992, %v759_v6  ;;  %v767_v36 = vmul.f32 -0.00019511016, %v759_v6  ;;  %v1320_v13 = vadd.s32 %v1319_v15, %v1309_v25  ;;  %v4381_v14 = vadd.s32 %v1336_v30, %v1332_v60 }
 0x287   :  { %v1343_v47 = vadd.s32 %v1342_v33, %v1333_v45  ;;  %v1891_v40 = vshll.u32 %v2749_v51, %v1885_v50  ;;  %v1892_v41 = vshrl.u32 %v2750_v53, %v4375_v17  ;;  %v1894_v31 = vshll.u32 %v2750_v53, %v1885_v50 }
 0x288   :  { %v761_v4 = vadd.f32 0.041655596, %v760_v0  ;;  %v768_v43 = vadd.f32 0.008332121, %v767_v36  ;;  %v4383_v52 = vadd.s32 %v1320_v13, %v1311_v7  ;;  %v1895_v21 = vshrl.u32 %v2751_v55, %v4375_v17 }
 0x289   :  { %v1347_v59 = vadd.s32 1, %v1343_v47  ;;  %v1889_v38 = vshrl.u32 %v2749_v51, %v4375_v17  ;;  %v1897_v11 = vshll.u32 %v2751_v55, %v1885_v50  ;;  %v1898_v42 = vshrl.u32 %v2752_v57, %v4375_v17 }
 0x28a   :  { %v762_v44 = vmul.f32 %v761_v4, %v759_v6  ;;  %v769_v24 = vmul.f32 %v768_v43, %v759_v6  ;;  %vm1346_vm13 = vc.u32 %v4383_v52, %v4381_v14  ;;  %v1901_v22 = vshrl.u32 %v2753_v2, %v4375_v17 }
 0x28b   :  { %v1348_v61 = vsel %vm1346_vm13, %v1347_v59, %v1343_v47  ;;  %v1888_v18 = vshll.u32 %v2748_v49, %v1885_v50  ;;  %v1899_v60 = vor.u32 %v1898_v42, %v1897_v11  ;;  %v1900_v20 = vshll.u32 %v2752_v57, %v1885_v50 }
 0x28c   :  { %v763_v35 = vadd.f32 -0.4999988, %v762_v44  ;;  %v770_v48 = vadd.f32 -0.16666654, %v769_v24  ;;  %v1349_v27 = vadd.s32 %v1348_v61, %v1344_v58  ;;  %v4402_v1 = vor.u32 %v1892_v41, %v1891_v40 }
 0x28d   :  { %v1896_v46 = vor.u32 %v1895_v21, %v1894_v31  ;;  %v4404_v9 = vor.u32 %v1889_v38, %v1888_v18  ;;  %v1902_v34 = vor.u32 %v1901_v22, %v1900_v20  ;;  %vm1906_vm1 = vcmp.lt.s32.totalorder %v4379_v19, 4 }
 0x28e   :  { %v764_v56 = vmul.f32 %v763_v35, %v759_v6  ;;  %v771_v30 = vmul.f32 %v770_v48, %v759_v6  ;;  %v1350_v16 = vadd.s32 536870912, %v1349_v27  ;;  %v1879_v63 = vor.u32 8388608, %v4352_v10 }
 0x28f   :  { %v1912_v62 = vsel %vm1906_vm1, %v1899_v60, 920167782  ;;  %vm774_vm2 = vweird.f32 %v4027_v32  ;;  %v776_v50 = vand.u32 3, %v775_v29  ;;  %vm1903_vm0 = vcmp.lt.s32.totalorder %v4379_v19, 1 }
 0x290   :  { %v765_v37 = vadd.f32 1.0, %v764_v56  ;;  %v772_v28 = vadd.f32 1.0, %v771_v30  ;;  %v4411_v6 = vshrl.u32 %v1350_v16, 30  ;;  %vm1905_vm4 = vcmp.lt.s32.totalorder %v4379_v19, 3 }
 0x291   :  { %v1915_v15 = vsel %vm1903_vm0, %v4402_v1, %v1896_v46  ;;  %v1911_v0 = vsel %vm1903_vm0, %v4404_v9, %v4402_v1  ;;  %v1913_v29 = vsel %vm1905_vm4, %v1896_v46, %v1912_v62  ;;  %vm1904_vm5 = vcmp.lt.s32.totalorder %v4379_v19, 2 }
 0x292   :  { %v773_v26 = vmul.f32 %v772_v28, %v757_v12  ;;  %v782_v25 = vxor.u32 2147483648, %v765_v37  ;;  %v1352_v10 = vshll.u32 %v4411_v6, 30  ;;  %v1916_v12 = vsel %vm1906_vm1, %v1902_v34, 1326507024 }
 0x293   :  { %v1917_v45 = vsel %vm1905_vm4, %v1899_v60, %v1916_v12  ;;  %v4430_v33 = vshll.u32 %v1879_v63, 8  ;;  %vm778_vm3 = vcmp.eq.s32.totalorder %v776_v50, 0  ;;  %vm781_vm7 = vcmp.eq.s32.totalorder %v776_v50, 2 }
 0x294   :  { %v779_v36 = vxor.u32 2147483648, %v773_v26  ;;  %v1353_v7 = vsub.s32 %v1349_v27, %v1352_v10  ;;  %v1918_v13 = vsel %vm1904_vm5, %v1915_v15, %v1917_v45  ;;  %vm777_vm9 = vcmp.lt.s32.totalorder %v776_v50, 2  ;;  %v147_v15 = vpop.f32.mrf.mxu3 }
 0x295   :  { %v783_v4 = vsel %vm781_vm7, %v782_v25, %v773_v26  ;;  %v1914_v43 = vsel %vm1904_vm5, %v1911_v0, %v1913_v29  ;;  %v1922_v41 = vand.u32 65535, %v1918_v13  ;;  %v1920_v44 = vand.u32 65535, %v4430_v33 }
 0x296   :  { %v780_v58 = vsel %vm778_vm3, %v765_v37, %v779_v36  ;;  %vm1354_vm6 = vcmp.lt.s32.totalorder %v1353_v7, 0  ;;  %v1355_v40 = vsub.s32 0, %v1353_v7  ;;  %v1923_v24 = vshrl.u32 %v1918_v13, 16 }
 0x297   :  { %v784_v47 = vsel %vm777_vm9, %v780_v58, %v783_v4  ;;  %v1921_v21 = vshrl.u32 %v4430_v33, 16  ;;  %v1944_v38 = vand.u32 65535, %v1914_v43  ;;  %v1945_v11 = vshrl.u32 %v1914_v43, 16 }
 0x298   :  { %v785_v31 = vsel %vm774_vm2, nan, %v784_v47  ;;  %v1356_v59 = vsel %vm1354_vm6, %v1355_v40, %v1353_v7  ;;  %v1925_v35 = vmul.u32 %v1923_v24, %v1920_v44  ;;  %v1345_v48 = vadd.s32 %v4381_v14, %v4383_v52 }
 0x299   :  { %2650 = vst.msk [vmem:[%s4599_s3 + $0x18] sm:$0xff] %vm2646_vm8, %v785_v31  ;;  %v1357_v42 = vclz %v1356_v59  ;;  %v1887_v32 = vshrl.u32 %v2748_v49, %v4375_v17  ;;  %v1926_v61 = vmul.u32 %v1922_v41, %v1921_v21  ;;  %v1924_v27 = vmul.u32 %v1922_v41, %v1920_v44 }
 0x29a   :  { %v1928_v18 = vshll.u32 %v1925_v35, 16  ;;  %v1947_v60 = vmul.u32 %v1945_v11, %v1920_v44  ;;  %v1908_v20 = vsel %vm1906_vm1, %v1896_v46, 2102212464  ;;  %v1927_v56 = vmul.u32 %v1923_v24, %v1921_v21 }
 0x29b   :  { %v2705_v22 = vadd.s32 4294967294, %v1357_v42  ;;  %v1946_v30 = vmul.u32 %v1944_v38, %v1920_v44  ;;  %v1948_v16 = vmul.u32 %v1944_v38, %v1921_v21  ;;  %v1930_v14 = vshll.u32 %v1926_v61, 16 }
 0x29c   :  { %vm1932_vm12 = vc.u32 %v1924_v27, %v1928_v18  ;;  %v1934_v34 = vadd.s32 %v1928_v18, %v1924_v27  ;;  %v1950_v37 = vshll.u32 %v1947_v60, 16  ;;  %v1949_v17 = vmul.u32 %v1945_v11, %v1921_v21 }
 0x29d   :  { %vm2706_vm11 = vcmp.lt.s32.totalorder %v2705_v22, 0  ;;  %v1933_v52 = vsel %vm1932_vm12, 1, %v2754_v8  ;;  %v1952_v26 = vshll.u32 %v1948_v16, 16  ;;  %v1929_v36 = vshrl.u32 %v1925_v35, 16 }
 0x29e   :  { %v1360_v28 = vsel %vm2706_vm11, 0, %v2705_v22  ;;  %v1935_v50 = vadd.s32 %v1933_v52, %v1927_v56  ;;  %vm1936_vm10 = vc.u32 %v1934_v34, %v1930_v14  ;;  %vm1954_vm14 = vc.u32 %v1946_v30, %v1950_v37 }
 0x29f   :  { %v1361_v63 = vsub.s32 32, %v1360_v28  ;;  %v1365_v62 = vsub.s32 4294967266, %v1360_v28  ;;  %v1362_v25 = vshll.u32 %v1353_v7, %v1360_v28  ;;  %v1956_v46 = vadd.s32 %v1950_v37, %v1946_v30 }
 0x2a0   :  { %v1937_v29 = vsel %vm1936_vm10, 1, %v2754_v8  ;;  %v1955_v12 = vsel %vm1954_vm14, 1, %v2754_v8  ;;  %v148_v7 = vadd.f32 %v4240_v5, %v147_v15  ;;  %v1931_v47 = vshrl.u32 %v1926_v61, 16 }
 0x2a1   :  { %v1363_v10 = vshrl.u32 %v1345_v48, %v1361_v63  ;;  %v1366_v0 = vadd.s32 127, %v1365_v62  ;;  %v1939_v45 = vadd.s32 %v1937_v29, %v1935_v50  ;;  %v1957_v13 = vadd.s32 %v1955_v12, %v1949_v17 }
 0x2a2   :  { %vm1958_vm15 = vc.u32 %v1956_v46, %v1952_v26  ;;  %v1951_v41 = vshrl.u32 %v1947_v60, 16  ;;  %v1907_v24 = vsel %vm1903_vm0, %v1887_v32, %v4404_v9  ;;  %v1909_v59 = vsel %vm1905_vm4, %v4402_v1, %v1908_v20 }
 0x2a3   :  { %v1364_v58 = vor.u32 %v1363_v10, %v1362_v25  ;;  %v1367_v4 = vshll.u32 %v1366_v0, 23  ;;  %v1959_v43 = vsel %vm1958_vm15, 1, %v2754_v8  ;;  %v1940_v40 = vadd.s32 %v1939_v45, %v1929_v36 }
 0x2a4   :  { %v1961_v31 = vadd.s32 %v1959_v43, %v1957_v13  ;;  %v4461_v21 = vmul.f32 30.0, %v148_v7  ;;  %v1375_v38 = vsub.s32 4, %v4411_v6  ;;  %v1953_v5 = vshrl.u32 %v1948_v16, 16 }
 0x2a5   :  { %v1368_v44 = vor.u32 4788187, %v1367_v4  ;;  %v4464_v11 = vadd.s32 %v1940_v40, %v1931_v47  ;;  %v1371_v48 = vcvt.s32.f32 %v1364_v58  ;;  %v4466_v61 = vadd.s32 %v1956_v46, %v1952_v26 }
 0x2a6   :  { %v1962_v42 = vadd.s32 %v1961_v31, %v1951_v41  ;;  %v2494_v22 = vand.u32 2139095040, %v4461_v21  ;;  %v1910_v9 = vsel %vm1904_vm5, %v1907_v24, %v1909_v59  ;;  %vm1253_vm13 = vcmp.lt.s32.totalorder %v4245_v3, 0 }
 0x2a7   :  { %v1369_v35 = vand.u32 2147483647, %v1368_v44  ;;  %vm1966_vm1 = vc.u32 %v4464_v11, %v4466_v61  ;;  %v1376_v18 = vsel %vm1253_vm13, %v1375_v38, %v4411_v6  ;;  %v1964_v56 = vmul.u32 %v4430_v33, %v1910_v9 }
 0x2a8   :  { %v1963_v32 = vadd.s32 %v1962_v42, %v1953_v5  ;;  %v2495_v27 = vshrl.u32 %v2494_v22, 23  ;;  %vm1252_vm2 = vcmp.le.f32.partialorder %v1251_v54, 0.7853982  ;;  %v2491_v6 = vand.u32 2147483647, %v4461_v21 }
 0x2a9   :  { %v1372_v1 = vmul.f32 %v1371_v48, %v1369_v35  ;;  %v1378_v34 = vsel %vm1252_vm2, 0, %v1376_v18  ;;  %vm1394_vm9 = vweird.f32 %v4245_v3  ;;  %vm1873_vm15 = vcmp.lt.s32.totalorder %v4247_v39, 0 }
 0x2aa   :  { %v1967_v60 = vadd.s32 1, %v1963_v32  ;;  %v2728_v30 = vadd.s32 4294967169, %v2495_v27  ;;  %v1395_v63 = vadd.s32 3, %v1378_v34  ;;  %v2498_v0 = vand.u32 8388607, %v2491_v6 }
 0x2ab   :  { %v1373_v20 = vxor.u32 2147483648, %v1372_v1 }
 0x2ac   :  { %v1968_v19 = vsel %vm1966_vm1, %v1967_v60, %v1963_v32  ;;  %v2501_v28 = vadd.s32 1, %v2728_v30  ;;  %v1396_v10 = vand.u32 3, %v1395_v63  ;;  %v2499_v43 = vor.u32 8388608, %v2498_v0 }
 0x2ad   :  { %v1374_v16 = vsel %vm1253_vm13, %v1373_v20, %v1372_v1  ;;  %v1969_v37 = vadd.s32 %v1968_v19, %v1964_v56  ;;  %v1965_v30 = vadd.s32 %v4466_v61, %v4464_v11  ;;  %vm4550_vm13 = vcmp.le.f32.partialorder %v1871_v23, 0.7853982 }
 0x2ae   :  { %v1377_v14 = vsel %vm1252_vm2, %v4245_v3, %v1374_v16  ;;  %vm2502_vm0 = vcmp.gt.s32.totalorder %v2501_v28, 0  ;;  %vm1398_vm5 = vcmp.eq.s32.totalorder %v1396_v10, 0  ;;  %vm1401_vm3 = vcmp.eq.s32.totalorder %v1396_v10, 2 }
 0x2af   :  { %v1379_v52 = vmul.f32 %v1377_v14, %v1377_v14  ;;  %v1970_v17 = vadd.s32 536870912, %v1969_v37  ;;  %v2503_v62 = vsel %vm2502_vm0, %v2501_v28, 0  ;;  %vm1397_vm7 = vcmp.lt.s32.totalorder %v1396_v10, 2 }
 0x2b0   :  { %v2505_v25 = vand.u32 31, %v2503_v62  ;;  %v4487_v7 = vshrl.u32 %v2503_v62, 5  ;;  %v4511_v19 = vshll.u32 %v2499_v43, 8 }
 0x2b1   :  { %v1380_v50 = vmul.f32 -0.001358992, %v1379_v52  ;;  %v1387_v33 = vmul.f32 -0.00019511016, %v1379_v52  ;;  %v4480_v26 = vshrl.u32 %v1970_v17, 30 }
 0x2b2   :  { %v4485_v29 = vsub.s32 32, %v2505_v25  ;;  %v2508_v24 = vshll.u32 %v2748_v49, %v2505_v25  ;;  %v2511_v38 = vshll.u32 %v2749_v51, %v2505_v25  ;;  %v2517_v22 = vshll.u32 %v2751_v55, %v2505_v25 }
 0x2b3   :  { %v1381_v54 = vadd.f32 0.041655596, %v1380_v50  ;;  %v1388_v46 = vadd.f32 0.008332121, %v1387_v33  ;;  %v1972_v15 = vshll.u32 %v4480_v26, 30  ;;  %v2520_v56 = vshll.u32 %v2752_v57, %v2505_v25 }
 0x2b4   :  { %v2509_v47 = vshrl.u32 %v2749_v51, %v4485_v29  ;;  %v2512_v40 = vshrl.u32 %v2750_v53, %v4485_v29  ;;  %v2515_v5 = vshrl.u32 %v2751_v55, %v4485_v29  ;;  %v2518_v42 = vshrl.u32 %v2752_v57, %v4485_v29 }
 0x2b5   :  { %v1382_v12 = vmul.f32 %v1381_v54, %v1379_v52  ;;  %v1389_v36 = vmul.f32 %v1388_v46, %v1379_v52  ;;  %v1973_v45 = vsub.s32 %v1969_v37, %v1972_v15  ;;  %v2521_v9 = vshrl.u32 %v2753_v2, %v4485_v29 }
 0x2b6   :  { %v4503_v1 = vor.u32 %v2509_v47, %v2508_v24  ;;  %v4505_v27 = vor.u32 %v2512_v40, %v2511_v38  ;;  %v2514_v51 = vshll.u32 %v2750_v53, %v2505_v25  ;;  %v2519_v20 = vor.u32 %v2518_v42, %v2517_v22 }
 0x2b7   :  { %v1383_v13 = vadd.f32 -0.4999988, %v1382_v12  ;;  %v1390_v58 = vadd.f32 -0.16666654, %v1389_v36  ;;  %vm1974_vm4 = vcmp.lt.s32.totalorder %v1973_v45, 0  ;;  %v1975_v4 = vsub.s32 0, %v1973_v45 }
 0x2b8   :  { %v2516_v55 = vor.u32 %v2515_v5, %v2514_v51  ;;  %v2522_v34 = vor.u32 %v2521_v9, %v2520_v56  ;;  %vm2523_vm11 = vcmp.lt.s32.totalorder %v4487_v7, 1  ;;  %vm2525_vm12 = vcmp.lt.s32.totalorder %v4487_v7, 3 }
 0x2b9   :  { %v1384_v41 = vmul.f32 %v1383_v13, %v1379_v52  ;;  %v1391_v31 = vmul.f32 %v1390_v58, %v1379_v52  ;;  %v1976_v44 = vsel %vm1974_vm4, %v1975_v4, %v1973_v45  ;;  %vm2526_vm10 = vcmp.lt.s32.totalorder %v4487_v7, 4 }
 0x2ba   :  { %v1977_v59 = vclz %v1976_v44  ;;  %v2531_v11 = vsel %vm2523_vm11, %v4503_v1, %v4505_v27  ;;  %v2532_v61 = vsel %vm2526_vm10, %v2519_v20, 920167782  ;;  %vm2524_vm14 = vcmp.lt.s32.totalorder %v4487_v7, 2 }
 0x2bb   :  { %v1385_v35 = vadd.f32 1.0, %v1384_v41  ;;  %v1392_v48 = vadd.f32 1.0, %v1391_v31  ;;  %v2533_v50 = vsel %vm2525_vm12, %v2516_v55, %v2532_v61  ;;  %v2535_v33 = vsel %vm2523_vm11, %v4505_v27, %v2516_v55 }
 0x2bc   :  { %v2717_v32 = vadd.s32 4294967294, %v1977_v59  ;;  %v2534_v3 = vsel %vm2524_vm14, %v2531_v11, %v2533_v50  ;;  %v2536_v46 = vsel %vm2526_vm10, %v2522_v34, 1326507024  ;;  %v2540_v10 = vand.u32 65535, %v4511_v19 }
 0x2bd   :  { %v1393_v18 = vmul.f32 %v1392_v48, %v1377_v14  ;;  %v1402_v60 = vxor.u32 2147483648, %v1385_v35  ;;  %v2537_v15 = vsel %vm2525_vm12, %v2519_v20, %v2536_v46  ;;  %v2564_v0 = vand.u32 65535, %v2534_v3 }
 0x2be   :  { %vm2718_vm6 = vcmp.lt.s32.totalorder %v2717_v32, 0  ;;  %v2565_v12 = vshrl.u32 %v2534_v3, 16  ;;  %v2541_v13 = vshrl.u32 %v4511_v19, 16  ;;  %v1995_v44 = vsub.s32 4, %v4480_v26 }
 0x2bf   :  { %v1399_v2 = vxor.u32 2147483648, %v1393_v18  ;;  %v1980_v16 = vsel %vm2718_vm6, 0, %v2717_v32  ;;  %v1403_v57 = vsel %vm1401_vm3, %v1402_v60, %v1393_v18  ;;  %v2507_v24 = vshrl.u32 %v2748_v49, %v4485_v29 }
 0x2c0   :  { %v1981_v37 = vsub.s32 32, %v1980_v16  ;;  %v1985_v28 = vsub.s32 4294967266, %v1980_v16  ;;  %v1982_v52 = vshll.u32 %v1973_v45, %v1980_v16  ;;  %v2538_v45 = vsel %vm2524_vm14, %v2535_v33, %v2537_v15 }
 0x2c1   :  { %v1400_v53 = vsel %vm1398_vm5, %v1385_v35, %v1399_v2  ;;  %v2542_v58 = vand.u32 65535, %v2538_v45  ;;  %v2543_v4 = vshrl.u32 %v2538_v45, 16  ;;  %v2567_v43 = vmul.u32 %v2565_v12, %v2540_v10 }
 0x2c2   :  { %v1404_v14 = vsel %vm1397_vm7, %v1400_v53, %v1403_v57  ;;  %v1983_v17 = vshrl.u32 %v1965_v30, %v1981_v37  ;;  %v1986_v63 = vadd.s32 127, %v1985_v28  ;;  %v2568_v31 = vmul.u32 %v2564_v0, %v2541_v13 }
 0x2c3   :  { %v1405_v62 = vsel %vm1394_vm9, nan, %v1404_v14  ;;  %v2545_v59 = vmul.u32 %v2543_v4, %v2540_v10  ;;  %v2546_v38 = vmul.u32 %v2542_v58, %v2541_v13  ;;  %v2528_v42 = vsel %vm2526_vm10, %v2516_v55, 2102212464 }
 0x2c4   :  { %2654 = vst.msk [vmem:[%s4599_s3 + $0x38] sm:$0xff] %vm2646_vm8, %v1405_v62  ;;  %v1984_v25 = vor.u32 %v1983_v17, %v1982_v52  ;;  %v1987_v54 = vshll.u32 %v1986_v63, 23  ;;  %v2566_v35 = vmul.u32 %v2564_v0, %v2540_v10  ;;  %v2570_v48 = vshll.u32 %v2567_v43, 16 }
 0x2c5   :  { %v2544_v23 = vmul.u32 %v2542_v58, %v2540_v10  ;;  %v2547_v22 = vmul.u32 %v2543_v4, %v2541_v13  ;;  %v2548_v9 = vshll.u32 %v2545_v59, 16  ;;  %v2569_v32 = vmul.u32 %v2565_v12, %v2541_v13 }
 0x2c6   :  { %v1988_v36 = vor.u32 4788187, %v1987_v54  ;;  %v1991_v41 = vcvt.s32.f32 %v1984_v25  ;;  %v2572_v18 = vshll.u32 %v2568_v31, 16  ;;  %vm2574_vm1 = vc.u32 %v2566_v35, %v2570_v48 }
 0x2c7   :  { %v2576_v60 = vadd.s32 %v2570_v48, %v2566_v35  ;;  %v2550_v20 = vshll.u32 %v2546_v38, 16  ;;  %vm2552_vm2 = vc.u32 %v2544_v23, %v2548_v9  ;;  %v2554_v56 = vadd.s32 %v2548_v9, %v2544_v23 }
 0x2c8   :  { %v1989_v40 = vand.u32 2147483647, %v1988_v36  ;;  %v2575_v49 = vsel %vm2574_vm1, 1, %v2754_v8  ;;  %v2553_v30 = vsel %vm2552_vm2, 1, %v2754_v8  ;;  %v2571_v53 = vshrl.u32 %v2567_v43, 16 }
 0x2c9   :  { %v2577_v55 = vadd.s32 %v2575_v49, %v2569_v32  ;;  %vm2578_vm0 = vc.u32 %v2576_v60, %v2572_v18  ;;  %v2555_v16 = vadd.s32 %v2553_v30, %v2547_v22  ;;  %vm2556_vm4 = vc.u32 %v2554_v56, %v2550_v20 }
 0x2ca   :  { %v1992_v5 = vmul.f32 %v1991_v41, %v1989_v40  ;;  %v2579_v34 = vsel %vm2578_vm0, 1, %v2754_v8  ;;  %v2557_v28 = vsel %vm2556_vm4, 1, %v2754_v8  ;;  %v2527_v11 = vsel %vm2523_vm11, %v2507_v24, %v4503_v1 }
 0x2cb   :  { %v2581_v57 = vadd.s32 %v2579_v34, %v2577_v55  ;;  %v2529_v61 = vsel %vm2525_vm12, %v4505_v27, %v2528_v42  ;;  %v2549_v14 = vshrl.u32 %v2545_v59, 16  ;;  %v2559_v52 = vadd.s32 %v2557_v28, %v2555_v16 }
 0x2cc   :  { %v1993_v51 = vxor.u32 2147483648, %v1992_v5  ;;  %v2573_v62 = vshrl.u32 %v2568_v31, 16  ;;  %v1996_v8 = vsel %vm1873_vm15, %v1995_v44, %v4480_v26  ;;  %v2551_v33 = vshrl.u32 %v2546_v38, 16 }
 0x2cd   :  { %v2582_v50 = vadd.s32 %v2581_v57, %v2571_v53  ;;  %v2560_v25 = vadd.s32 %v2559_v52, %v2549_v14  ;;  %v2530_v1 = vsel %vm2524_vm14, %v2527_v11, %v2529_v61  ;;  %v2580_v27 = vadd.s32 %v2576_v60, %v2572_v18 }
 0x2ce   :  { %v1994_v29 = vsel %vm1873_vm15, %v1993_v51, %v1992_v5  ;;  %v1998_v10 = vsel %vm4550_vm13, 0, %v1996_v8  ;;  %v2584_v45 = vmul.u32 %v4511_v19, %v2530_v1  ;;  %vm2014_vm6 = vweird.f32 %v4247_v39 }
 0x2cf   :  { %v1997_v2 = vsel %vm4550_vm13, %v4247_v39, %v1994_v29  ;;  %v2583_v46 = vadd.s32 %v2582_v50, %v2573_v62  ;;  %v2561_v15 = vadd.s32 %v2560_v25, %v2551_v33  ;;  %v2015_v4 = vadd.s32 3, %v1998_v10 }
 0x2d0   :  { %v1999_v37 = vmul.f32 %v1997_v2, %v1997_v2  ;;  %vm2493_vm10 = vcmp.lt.s32.totalorder %v4461_v21, 0  ;;  %vm2492_vm14 = vcmp.le.f32.partialorder %v2491_v6, 0.7853982  ;;  %vm2634_vm2 = vweird.f32 %v4461_v21 }
 0x2d1   :  { %v2587_v36 = vadd.s32 1, %v2583_v46  ;;  %vm2586_vm5 = vc.u32 %v2561_v15, %v2580_v27  ;;  %v2016_v24 = vand.u32 3, %v2015_v4  ;;  %v2585_v20 = vadd.s32 %v2580_v27, %v2561_v15 }
 0x2d2   :  { %v2000_v17 = vmul.f32 -0.001358992, %v1999_v37  ;;  %v2007_v63 = vmul.f32 -0.00019511016, %v1999_v37 }
 0x2d3   :  { %v2588_v58 = vsel %vm2586_vm5, %v2587_v36, %v2583_v46  ;;  %vm2018_vm3 = vcmp.eq.s32.totalorder %v2016_v24, 0  ;;  %vm2021_vm7 = vcmp.eq.s32.totalorder %v2016_v24, 2  ;;  %vm2017_vm9 = vcmp.lt.s32.totalorder %v2016_v24, 2 }
 0x2d4   :  { %v2001_v54 = vadd.f32 0.041655596, %v2000_v17  ;;  %v2008_v3 = vadd.f32 0.008332121, %v2007_v63  ;;  %v2589_v43 = vadd.s32 %v2588_v58, %v2584_v45 }
 0x2d6   :  { %v2002_v0 = vmul.f32 %v2001_v54, %v1999_v37  ;;  %v2009_v12 = vmul.f32 %v2008_v3, %v1999_v37  ;;  %v2590_v41 = vadd.s32 536870912, %v2589_v43 }
 0x2d8   :  { %v2003_v26 = vadd.f32 -0.4999988, %v2002_v0  ;;  %v2010_v13 = vadd.f32 -0.16666654, %v2009_v12  ;;  %v2591_v59 = vshrl.u32 %v2590_v41, 30 }
 0x2da   :  { %v2004_v40 = vmul.f32 %v2003_v26, %v1999_v37  ;;  %v2011_v7 = vmul.f32 %v2010_v13, %v1999_v37  ;;  %v2592_v5 = vshll.u32 %v2591_v59, 30  ;;  %v2615_v11 = vsub.s32 4, %v2591_v59 }
 0x2dc   :  { %v2005_v31 = vadd.f32 1.0, %v2004_v40  ;;  %v2012_v44 = vadd.f32 1.0, %v2011_v7  ;;  %v2593_v19 = vsub.s32 %v2589_v43, %v2592_v5  ;;  %v2616_v63 = vsel %vm2493_vm10, %v2615_v11, %v2591_v59 }
 0x2dd   :  { %v2618_v8 = vsel %vm2492_vm14, 0, %v2616_v63 }
 0x2de   :  { %v2013_v47 = vmul.f32 %v2012_v44, %v1997_v2  ;;  %v2022_v38 = vxor.u32 2147483648, %v2005_v31  ;;  %vm2594_vm11 = vcmp.lt.s32.totalorder %v2593_v19, 0  ;;  %v2595_v22 = vsub.s32 0, %v2593_v19 }
 0x2df   :  { %v2635_v1 = vadd.s32 3, %v2618_v8 }
 0x2e0   :  { %v2019_v42 = vxor.u32 2147483648, %v2013_v47  ;;  %v2023_v48 = vsel %vm2021_vm7, %v2022_v38, %v2013_v47  ;;  %v2596_v32 = vsel %vm2594_vm11, %v2595_v22, %v2593_v19 }
 0x2e1   :  { %v2597_v51 = vclz %v2596_v32  ;;  %v2636_v10 = vand.u32 3, %v2635_v1 }
 0x2e2   :  { %v2020_v35 = vsel %vm2018_vm3, %v2005_v31, %v2019_v42 }
 0x2e3   :  { %v2024_v23 = vsel %vm2017_vm9, %v2020_v35, %v2023_v48  ;;  %v2729_v18 = vadd.s32 4294967294, %v2597_v51  ;;  %vm2638_vm15 = vcmp.eq.s32.totalorder %v2636_v10, 0  ;;  %vm2641_vm13 = vcmp.eq.s32.totalorder %v2636_v10, 2 }
 0x2e4   :  { %v2025_v9 = vsel %vm2014_vm6, nan, %v2024_v23  ;;  %vm2637_vm1 = vcmp.lt.s32.totalorder %v2636_v10, 2 }
 0x2e5   :  { %2658 = vst.msk [vmem:[%s4599_s3 + $0x58] sm:$0xff] %vm2646_vm8, %v2025_v9  ;;  %vm2730_vm12 = vcmp.lt.s32.totalorder %v2729_v18, 0 }
 0x2e6   :  { %v2600_v60 = vsel %vm2730_vm12, 0, %v2729_v18 }
 0x2e7   :  { %v2601_v56 = vsub.s32 32, %v2600_v60  ;;  %v2605_v49 = vsub.s32 4294967266, %v2600_v60  ;;  %v2602_v29 = vshll.u32 %v2593_v19, %v2600_v60 }
 0x2e9   :  { %v2603_v30 = vshrl.u32 %v2585_v20, %v2601_v56  ;;  %v2606_v39 = vadd.s32 127, %v2605_v49 }
 0x2eb   :  { %v2604_v55 = vor.u32 %v2603_v30, %v2602_v29  ;;  %v2607_v2 = vshll.u32 %v2606_v39, 23 }
 0x2ed   :  { %v2608_v16 = vor.u32 4788187, %v2607_v2  ;;  %v2611_v37 = vcvt.s32.f32 %v2604_v55 }
 0x2ef   :  { %v2609_v34 = vand.u32 2147483647, %v2608_v16 }
 0x2f1   :  { %v2612_v28 = vmul.f32 %v2611_v37, %v2609_v34 }
 0x2f3   :  { %v2613_v53 = vxor.u32 2147483648, %v2612_v28 }
 0x2f5   :  { %v2614_v57 = vsel %vm2493_vm10, %v2613_v53, %v2612_v28 }
 0x2f6   :  { %v2617_v61 = vsel %vm2492_vm14, %v4461_v21, %v2614_v57 }
 0x2f7   :  { %v2619_v14 = vmul.f32 %v2617_v61, %v2617_v61 }
 0x2f9   :  { %v2620_v52 = vmul.f32 -0.001358992, %v2619_v14  ;;  %v2627_v17 = vmul.f32 -0.00019511016, %v2619_v14 }
 0x2fb   :  { %v2621_v62 = vadd.f32 0.041655596, %v2620_v52  ;;  %v2628_v50 = vadd.f32 0.008332121, %v2627_v17 }
 0x2fd   :  { %v2622_v33 = vmul.f32 %v2621_v62, %v2619_v14  ;;  %v2629_v25 = vmul.f32 %v2628_v50, %v2619_v14 }
 0x2ff   :  { %v2623_v54 = vadd.f32 -0.4999988, %v2622_v33  ;;  %v2630_v3 = vadd.f32 -0.16666654, %v2629_v25 }
 0x301   :  { %v2624_v46 = vmul.f32 %v2623_v54, %v2619_v14  ;;  %v2631_v15 = vmul.f32 %v2630_v3, %v2619_v14 }
 0x303   :  { %v2625_v27 = vadd.f32 1.0, %v2624_v46  ;;  %v2632_v6 = vadd.f32 1.0, %v2631_v15 }
 0x305   :  { %v2633_v0 = vmul.f32 %v2632_v6, %v2617_v61  ;;  %v2642_v12 = vxor.u32 2147483648, %v2625_v27 }
 0x307   :  { %v2639_v36 = vxor.u32 2147483648, %v2633_v0  ;;  %v2643_v26 = vsel %vm2641_vm13, %v2642_v12, %v2633_v0 }
 0x309   :  { %v2640_v45 = vsel %vm2638_vm15, %v2625_v27, %v2639_v36 }
 0x30a   :  { %v2644_v13 = vsel %vm2637_vm1, %v2640_v45, %v2643_v26 }
 0x30b   :  { %v2645_v58 = vsel %vm2634_vm2, nan, %v2644_v13 }
 0x30c   :  { %2662 = vst.msk [vmem:[%s4599_s3 + $0x78] sm:$0xff] %vm2646_vm8, %v2645_v58 }

</bundles_post_ra>
